<compile_context>
chip_gen: v7x
topology: tpu7x:2x2x1
jax: 0.10.0
libtpu: 0.0.40
codegen_flags: <defaults>
</compile_context>

<pallas_src>
import functools

import jax
import jax.numpy as jnp
from jax import lax
from jax.experimental import pallas as pl
from jax.experimental.pallas import tpu as pltpu


# ----------------------------------------------------------------------------
# Pallas kernel: folded KxK conv via per-tap MXU matmuls (bias + mean scale
# are pre-folded into the weights/bias, so the epilogue is just a cast+store)
# ----------------------------------------------------------------------------
def _inception_conv_kernel(x_ref, w_ref, b_ref, o_ref, acc_ref, *,
                           h_tile, W, K):
    """One (batch, H-tile) grid step.

    x_ref  : (1, Hp, Wp, Cin)         zero-padded input image of this batch
    w_ref  : (K*K, Cin, Cout_pad)     folded + pre-scaled weights, one slab per tap
    b_ref  : (1, Cout_pad)            summed + pre-scaled bias (f32)
    o_ref  : (1, h_tile*W, Cout_pad)  output rows of this tile (f32, lane-dense)
    acc_ref: (h_tile*W, Cout_pad)     f32 accumulator scratch (VMEM)
    """
    h0 = pl.program_id(1) * h_tile
    M = h_tile * W

    # Seed the accumulator with the (already summed & 1/nk-scaled) bias, so
    # there is no separate per-element add/mul in the epilogue.
    acc_ref[...] = jnp.broadcast_to(b_ref[...], acc_ref.shape)

    def kh_body(kh, carry):
        row0 = h0 + kh
        partial = jnp.zeros(acc_ref.shape, jnp.float32)
        # kw unrolled: static sublane offsets and K independent MXU matmuls
        # per iteration for the scheduler to pipeline.
        for kw in range(K):
            patch = x_ref[0, pl.ds(row0, h_tile), pl.ds(kw, W), :]  # (h_tile, W, Cin)
            patch2d = patch.reshape(M, -1)                          # (M, Cin)
            w_tap = w_ref[kh * K + kw]                              # (Cin, Cout_pad)
            partial = partial + jnp.dot(patch2d, w_tap,
                                        preferred_element_type=jnp.float32)
        acc_ref[...] += partial
        return carry

    lax.fori_loop(0, K, kh_body, 0)

    o_ref[0] = acc_ref[...].astype(o_ref.dtype)


# ----------------------------------------------------------------------------
# Wrapper: weight folding, layout / padding, tiling, pallas_call
# ----------------------------------------------------------------------------
def _pick_h_tile(H, W, target_rows=1024):
    """Largest divisor of H with h_tile*W <= target_rows and sublane aligned."""
    for d in range(H, 0, -1):
        if H % d:
            continue
        if d * W <= target_rows and (d == H or (d * W) % 8 == 0):
            return d
    return H


def _rup(v, m):
    return ((v + m - 1) // m) * m


def inception_block_v1_pallas(x_nchw, weights, biases, num_kernels,
                              *, compute_dtype=jnp.bfloat16, h_tile=None):
    """x_nchw: (B, Cin, H, W); weights[i]: (Cout, Cin, 2i+1, 2i+1); biases[i]: (Cout,)."""
    B, Cin, H, W = x_nchw.shape
    Cout = weights[0].shape[0]
    P = num_kernels - 1
    K = 2 * P + 1
    Hp, Wp = H + 2 * P, W + 2 * P
    Cout_pad = _rup(Cout, 128)                       # lane-dense output channels

    if h_tile is None:
        h_tile = _pick_h_tile(H, W)
    assert H % h_tile == 0, (H, h_tile)
    assert h_tile == H or (h_tile * W) % 8 == 0, (h_tile, W)
    n_ht = H // h_tile
    M = h_tile * W

    # ---- fold all branches into one zero-padded, summed KxK kernel ---------
    # The 1/num_kernels mean and the bias sum are folded here (one-time, tiny
    # tensors), so the kernel body has no per-element scale/add epilogue.
    inv_nk = 1.0 / num_kernels
    comb = jnp.zeros((K, K, Cin, Cout_pad), jnp.float32)
    b_sum = jnp.zeros((Cout_pad,), jnp.float32)
    for i in range(num_kernels):
        k = 2 * i + 1
        off = P - i
        wt = jnp.transpose(weights[i].astype(jnp.float32), (2, 3, 1, 0))  # (k,k,Cin,Cout)
        comb = comb.at[off:off + k, off:off + k, :, :Cout].add(wt)
        b_sum = b_sum.at[:Cout].add(biases[i].astype(jnp.float32))
    w_folded = (comb * inv_nk).reshape(K * K, Cin, Cout_pad).astype(compute_dtype)
    b_2d = (b_sum * inv_nk).reshape(1, Cout_pad)                          # f32

    # ---- NCHW -> NHWC, spatial zero-pad by the largest padding P -----------
    x_nhwc = jnp.transpose(x_nchw, (0, 2, 3, 1))
    x_pad = jnp.pad(x_nhwc, ((0, 0), (P, P), (P, P), (0, 0))).astype(compute_dtype)

    kernel = functools.partial(_inception_conv_kernel, h_tile=h_tile, W=W, K=K)

    itemsize = jnp.dtype(compute_dtype).itemsize
    # VMEM budget: account for (8,128) layout padding of the last two dims of
    # each block, double-buffering of inputs/outputs, plus the f32 scratch.
    # Capped so it also fits v7x's 64 MiB VMEM.
    x_blk = Hp * _rup(Wp, 8) * _rup(Cin, 128) * itemsize
    w_blk = K * K * _rup(Cin, 8) * Cout_pad * itemsize
    o_blk = _rup(M, 8) * Cout_pad * 4
    est_vmem = 2 * x_blk + 2 * w_blk + 3 * o_blk + 2 * Cout_pad * 4 + (1 << 20)
    vmem_limit = int(min(max(2 * est_vmem, 16 * 2**20), 48 * 2**20))

    flops = 2 * B * H * W * K * K * Cin * Cout_pad
    bytes_accessed = (x_pad.size * itemsize + w_folded.size * itemsize
                      + b_2d.size * 4 + B * H * W * Cout_pad * 4)

    out_flat = pl.pallas_call(
        kernel,
        out_shape=jax.ShapeDtypeStruct((B, H * W, Cout_pad), jnp.float32),
        grid=(B, n_ht),
        in_specs=[
            # Full padded image of the current batch; block index is constant
            # along the H-tile axis => fetched once per batch by the pipeline.
            pl.BlockSpec((1, Hp, Wp, Cin), lambda b, h: (b, 0, 0, 0)),
            pl.BlockSpec((K * K, Cin, Cout_pad), lambda b, h: (0, 0, 0)),
            pl.BlockSpec((1, Cout_pad), lambda b, h: (0, 0)),
        ],
        out_specs=pl.BlockSpec((1, M, Cout_pad), lambda b, h: (b, h, 0)),
        scratch_shapes=[pltpu.VMEM((M, Cout_pad), jnp.float32)],
        compiler_params=pltpu.CompilerParams(
            # Every (batch, h-tile) step is independent -> both axes parallel
            # (megacore sharding on v7x).
            dimension_semantics=("parallel", "parallel"),
            vmem_limit_bytes=vmem_limit),
        cost_estimate=pl.CostEstimate(flops=flops, transcendentals=0,
                                      bytes_accessed=bytes_accessed),
    )(x_pad, w_folded, b_2d)

    out = out_flat.reshape(B, H, W, Cout_pad)[..., :Cout]
    return jnp.transpose(out, (0, 3, 1, 2))          # back to NCHW


# ----------------------------------------------------------------------------
# Pure-JAX reference (mirrors the PyTorch forward exactly)
# ----------------------------------------------------------------------------
def inception_block_v1_ref(x, weights, biases, num_kernels):
    outs = []
    for i in range(num_kernels):
        pad = i
        o = lax.conv_general_dilated(
            x, weights[i], window_strides=(1, 1),
            padding=[(pad, pad), (pad, pad)],
            dimension_numbers=("NCHW", "OIHW", "NCHW"),
            precision=lax.Precision.HIGHEST,
        ) + biases[i][None, :, None, None]
        outs.append(o)
    return jnp.mean(jnp.stack(outs, axis=-1), axis=-1)


if __name__ == "__main__":
    B, Cin, Cout, H, W = 2, 4, 8, 16, 16
    num_kernels = 6

    key = jax.random.PRNGKey(0)
    key, kx = jax.random.split(key)
    x = jax.random.normal(kx, (B, Cin, H, W), dtype=jnp.float32)

    # Deterministic synthetic parameters (shapes match nn.Conv2d in __init__).
    weights, biases = [], []
    for i in range(num_kernels):
        k = 2 * i + 1
        key, kw_, kb_ = jax.random.split(key, 3)
        scale = 1.0 / (Cin * k * k) ** 0.5
        weights.append(scale * jax.random.normal(kw_, (Cout, Cin, k, k), dtype=jnp.float32))
        biases.append(scale * jax.random.normal(kb_, (Cout,), dtype=jnp.float32))

    ref = inception_block_v1_ref(x, weights, biases, num_kernels)

    # Default optimized path: bf16-streamed operands, f32 MXU accumulation.
    # Tolerance reflects bf16 operand quantization (accumulation is f32).
    out_bf16 = jax.block_until_ready(
        inception_block_v1_pallas(x, weights, biases, num_kernels))
    assert out_bf16.shape == (B, Cout, H, W), out_bf16.shape
    assert jnp.allclose(out_bf16, ref, atol=2e-2, rtol=2e-2), \
        float(jnp.max(jnp.abs(out_bf16 - ref)))

    # f32-streamed path with an explicit multi-tile H grid (exercises the
    # halo indexing and the (B, H-tiles) pipeline).
    out_f32 = jax.block_until_ready(
        inception_block_v1_pallas(x, weights, biases, num_kernels,
                                  compute_dtype=jnp.float32, h_tile=4))
    assert out_f32.shape == (B, Cout, H, W), out_f32.shape
    assert jnp.allclose(out_f32, ref, atol=2e-2, rtol=2e-2), \
        float(jnp.max(jnp.abs(out_f32 - ref)))

    print("KERNEL_OK")
</pallas_src>

<mosaic_0001>
module attributes {stable_mosaic.version = 11 : i64} {
  func.func @_inception_conv_kernel(%arg0: i32, %arg1: i32, %arg2: memref<1x26x26x4xbf16, #tpu.memory_space<vmem>>, %arg3: memref<121x4x128xbf16, #tpu.memory_space<vmem>>, %arg4: memref<1x128xf32, #tpu.memory_space<vmem>>, %arg5: memref<1x256x128xf32, #tpu.memory_space<vmem>>, %arg6: memref<256x128xf32, #tpu.memory_space<vmem>>) attributes {dimension_semantics = [#tpu.dimension_semantics<parallel>, #tpu.dimension_semantics<parallel>], iteration_bounds = array<i64: 2, 1>, scalar_prefetch = 0 : i64, scratch_operands = 1 : i64, tpu.core_type = #tpu.core_type<tc>, window_params = [{transform_indices = @transform_0, window_bounds = array<i64: 1, 26, 26, 4>}, {pipeline_mode = #tpu.pipeline_mode<synchronous>, transform_indices = @transform_1, window_bounds = array<i64: 121, 4, 128>}, {pipeline_mode = #tpu.pipeline_mode<synchronous>, transform_indices = @transform_2, window_bounds = array<i64: 1, 128>}, {transform_indices = @transform_3, window_bounds = array<i64: 1, 256, 128>}]} {
    %c16_i32 = arith.constant 16 : i32
    %0 = arith.muli %arg1, %c16_i32 : i32
    %c0 = arith.constant 0 : index
    %c0_0 = arith.constant 0 : index
    %1 = vector.load %arg4[%c0, %c0_0] : memref<1x128xf32, #tpu.memory_space<vmem>>, vector<1x128xf32>
    %2 = vector.shape_cast %1 : vector<1x128xf32> to vector<1x128xf32>
    %3 = vector.broadcast %2 : vector<1x128xf32> to vector<256x128xf32>
    %c0_1 = arith.constant 0 : index
    %c0_2 = arith.constant 0 : index
    %4 = vector.load %arg6[%c0_1, %c0_2] : memref<256x128xf32, #tpu.memory_space<vmem>>, vector<256x128xf32>
    tpu.vector_store %arg6[%c0_1, %c0_2], %3 {strides = array<i32>} : memref<256x128xf32, #tpu.memory_space<vmem>>, vector<256x128xf32>,
    %c0_i32 = arith.constant 0 : i32
    %c11_i32 = arith.constant 11 : i32
    %5 = arith.addi %c0_i32, %c11_i32 : i32
    %c1_i32 = arith.constant 1 : i32
    scf.for %arg7 = %c0_i32 to %5 step %c1_i32  : i32 {
      %10 = arith.addi %0, %arg7 : i32
      %cst = arith.constant 0.000000e+00 : f32
      %11 = vector.broadcast %cst : f32 to vector<256x128xf32>
      %c0_9 = arith.constant 0 : index
      %12 = arith.index_cast %10 : i32 to index
      %c0_10 = arith.constant 0 : index
      %c0_11 = arith.constant 0 : index
      %13 = vector.load %arg2[%c0_9, %12, %c0_10, %c0_11] : memref<1x26x26x4xbf16, #tpu.memory_space<vmem>>, vector<1x16x16x4xbf16>
      %14 = vector.shape_cast %13 : vector<1x16x16x4xbf16> to vector<16x16x4xbf16>
      %15 = vector.shape_cast %14 : vector<16x16x4xbf16> to vector<256x4xbf16>
      %c11_i32_12 = arith.constant 11 : i32
      %16 = arith.muli %arg7, %c11_i32_12 : i32
      %c0_i32_13 = arith.constant 0 : i32
      %17 = arith.addi %16, %c0_i32_13 : i32
      %18 = arith.index_cast %17 : i32 to index
      %c0_14 = arith.constant 0 : index
      %c0_15 = arith.constant 0 : index
      %19 = vector.load %arg3[%18, %c0_14, %c0_15] : memref<121x4x128xbf16, #tpu.memory_space<vmem>>, vector<1x4x128xbf16>
      %20 = vector.shape_cast %19 : vector<1x4x128xbf16> to vector<4x128xbf16>
      %cst_16 = arith.constant dense<0.000000e+00> : vector<256x128xf32>
      %21 = tpu.matmul %15, %20, %cst_16 {dimension_numbers = #tpu.dot_dimension_numbers<[1], [0], [0], [1], [0, 0, 1, 1], [], []>} : vector<256x4xbf16>, vector<4x128xbf16>, vector<256x128xf32> -> vector<256x128xf32>
      %22 = arith.addf %11, %21 : vector<256x128xf32>
      %c0_17 = arith.constant 0 : index
      %23 = arith.index_cast %10 : i32 to index
      %c1 = arith.constant 1 : index
      %c0_18 = arith.constant 0 : index
      %24 = vector.load %arg2[%c0_17, %23, %c1, %c0_18] : memref<1x26x26x4xbf16, #tpu.memory_space<vmem>>, vector<1x16x16x4xbf16>
      %25 = vector.shape_cast %24 : vector<1x16x16x4xbf16> to vector<16x16x4xbf16>
      %26 = vector.shape_cast %25 : vector<16x16x4xbf16> to vector<256x4xbf16>
      %c11_i32_19 = arith.constant 11 : i32
      %27 = arith.muli %arg7, %c11_i32_19 : i32
      %c1_i32_20 = arith.constant 1 : i32
      %28 = arith.addi %27, %c1_i32_20 : i32
      %29 = arith.index_cast %28 : i32 to index
      %c0_21 = arith.constant 0 : index
      %c0_22 = arith.constant 0 : index
      %30 = vector.load %arg3[%29, %c0_21, %c0_22] : memref<121x4x128xbf16, #tpu.memory_space<vmem>>, vector<1x4x128xbf16>
      %31 = vector.shape_cast %30 : vector<1x4x128xbf16> to vector<4x128xbf16>
      %cst_23 = arith.constant dense<0.000000e+00> : vector<256x128xf32>
      %32 = tpu.matmul %26, %31, %cst_23 {dimension_numbers = #tpu.dot_dimension_numbers<[1], [0], [0], [1], [0, 0, 1, 1], [], []>} : vector<256x4xbf16>, vector<4x128xbf16>, vector<256x128xf32> -> vector<256x128xf32>
      %33 = arith.addf %22, %32 : vector<256x128xf32>
      %c0_24 = arith.constant 0 : index
      %34 = arith.index_cast %10 : i32 to index
      %c2 = arith.constant 2 : index
      %c0_25 = arith.constant 0 : index
      %35 = vector.load %arg2[%c0_24, %34, %c2, %c0_25] : memref<1x26x26x4xbf16, #tpu.memory_space<vmem>>, vector<1x16x16x4xbf16>
      %36 = vector.shape_cast %35 : vector<1x16x16x4xbf16> to vector<16x16x4xbf16>
      %37 = vector.shape_cast %36 : vector<16x16x4xbf16> to vector<256x4xbf16>
      %c11_i32_26 = arith.constant 11 : i32
      %38 = arith.muli %arg7, %c11_i32_26 : i32
      %c2_i32 = arith.constant 2 : i32
      %39 = arith.addi %38, %c2_i32 : i32
      %40 = arith.index_cast %39 : i32 to index
      %c0_27 = arith.constant 0 : index
      %c0_28 = arith.constant 0 : index
      %41 = vector.load %arg3[%40, %c0_27, %c0_28] : memref<121x4x128xbf16, #tpu.memory_space<vmem>>, vector<1x4x128xbf16>
      %42 = vector.shape_cast %41 : vector<1x4x128xbf16> to vector<4x128xbf16>
      %cst_29 = arith.constant dense<0.000000e+00> : vector<256x128xf32>
      %43 = tpu.matmul %37, %42, %cst_29 {dimension_numbers = #tpu.dot_dimension_numbers<[1], [0], [0], [1], [0, 0, 1, 1], [], []>} : vector<256x4xbf16>, vector<4x128xbf16>, vector<256x128xf32> -> vector<256x128xf32>
      %44 = arith.addf %33, %43 : vector<256x128xf32>
      %c0_30 = arith.constant 0 : index
      %45 = arith.index_cast %10 : i32 to index
      %c3 = arith.constant 3 : index
      %c0_31 = arith.constant 0 : index
      %46 = vector.load %arg2[%c0_30, %45, %c3, %c0_31] : memref<1x26x26x4xbf16, #tpu.memory_space<vmem>>, vector<1x16x16x4xbf16>
      %47 = vector.shape_cast %46 : vector<1x16x16x4xbf16> to vector<16x16x4xbf16>
      %48 = vector.shape_cast %47 : vector<16x16x4xbf16> to vector<256x4xbf16>
      %c11_i32_32 = arith.constant 11 : i32
      %49 = arith.muli %arg7, %c11_i32_32 : i32
      %c3_i32 = arith.constant 3 : i32
      %50 = arith.addi %49, %c3_i32 : i32
      %51 = arith.index_cast %50 : i32 to index
      %c0_33 = arith.constant 0 : index
      %c0_34 = arith.constant 0 : index
      %52 = vector.load %arg3[%51, %c0_33, %c0_34] : memref<121x4x128xbf16, #tpu.memory_space<vmem>>, vector<1x4x128xbf16>
      %53 = vector.shape_cast %52 : vector<1x4x128xbf16> to vector<4x128xbf16>
      %cst_35 = arith.constant dense<0.000000e+00> : vector<256x128xf32>
      %54 = tpu.matmul %48, %53, %cst_35 {dimension_numbers = #tpu.dot_dimension_numbers<[1], [0], [0], [1], [0, 0, 1, 1], [], []>} : vector<256x4xbf16>, vector<4x128xbf16>, vector<256x128xf32> -> vector<256x128xf32>
      %55 = arith.addf %44, %54 : vector<256x128xf32>
      %c0_36 = arith.constant 0 : index
      %56 = arith.index_cast %10 : i32 to index
      %c4 = arith.constant 4 : index
      %c0_37 = arith.constant 0 : index
      %57 = vector.load %arg2[%c0_36, %56, %c4, %c0_37] : memref<1x26x26x4xbf16, #tpu.memory_space<vmem>>, vector<1x16x16x4xbf16>
      %58 = vector.shape_cast %57 : vector<1x16x16x4xbf16> to vector<16x16x4xbf16>
      %59 = vector.shape_cast %58 : vector<16x16x4xbf16> to vector<256x4xbf16>
      %c11_i32_38 = arith.constant 11 : i32
      %60 = arith.muli %arg7, %c11_i32_38 : i32
      %c4_i32 = arith.constant 4 : i32
      %61 = arith.addi %60, %c4_i32 : i32
      %62 = arith.index_cast %61 : i32 to index
      %c0_39 = arith.constant 0 : index
      %c0_40 = arith.constant 0 : index
      %63 = vector.load %arg3[%62, %c0_39, %c0_40] : memref<121x4x128xbf16, #tpu.memory_space<vmem>>, vector<1x4x128xbf16>
      %64 = vector.shape_cast %63 : vector<1x4x128xbf16> to vector<4x128xbf16>
      %cst_41 = arith.constant dense<0.000000e+00> : vector<256x128xf32>
      %65 = tpu.matmul %59, %64, %cst_41 {dimension_numbers = #tpu.dot_dimension_numbers<[1], [0], [0], [1], [0, 0, 1, 1], [], []>} : vector<256x4xbf16>, vector<4x128xbf16>, vector<256x128xf32> -> vector<256x128xf32>
      %66 = arith.addf %55, %65 : vector<256x128xf32>
      %c0_42 = arith.constant 0 : index
      %67 = arith.index_cast %10 : i32 to index
      %c5 = arith.constant 5 : index
      %c0_43 = arith.constant 0 : index
      %68 = vector.load %arg2[%c0_42, %67, %c5, %c0_43] : memref<1x26x26x4xbf16, #tpu.memory_space<vmem>>, vector<1x16x16x4xbf16>
      %69 = vector.shape_cast %68 : vector<1x16x16x4xbf16> to vector<16x16x4xbf16>
      %70 = vector.shape_cast %69 : vector<16x16x4xbf16> to vector<256x4xbf16>
      %c11_i32_44 = arith.constant 11 : i32
      %71 = arith.muli %arg7, %c11_i32_44 : i32
      %c5_i32 = arith.constant 5 : i32
      %72 = arith.addi %71, %c5_i32 : i32
      %73 = arith.index_cast %72 : i32 to index
      %c0_45 = arith.constant 0 : index
      %c0_46 = arith.constant 0 : index
      %74 = vector.load %arg3[%73, %c0_45, %c0_46] : memref<121x4x128xbf16, #tpu.memory_space<vmem>>, vector<1x4x128xbf16>
      %75 = vector.shape_cast %74 : vector<1x4x128xbf16> to vector<4x128xbf16>
      %cst_47 = arith.constant dense<0.000000e+00> : vector<256x128xf32>
      %76 = tpu.matmul %70, %75, %cst_47 {dimension_numbers = #tpu.dot_dimension_numbers<[1], [0], [0], [1], [0, 0, 1, 1], [], []>} : vector<256x4xbf16>, vector<4x128xbf16>, vector<256x128xf32> -> vector<256x128xf32>
      %77 = arith.addf %66, %76 : vector<256x128xf32>
      %c0_48 = arith.constant 0 : index
      %78 = arith.index_cast %10 : i32 to index
      %c6 = arith.constant 6 : index
      %c0_49 = arith.constant 0 : index
      %79 = vector.load %arg2[%c0_48, %78, %c6, %c0_49] : memref<1x26x26x4xbf16, #tpu.memory_space<vmem>>, vector<1x16x16x4xbf16>
      %80 = vector.shape_cast %79 : vector<1x16x16x4xbf16> to vector<16x16x4xbf16>
      %81 = vector.shape_cast %80 : vector<16x16x4xbf16> to vector<256x4xbf16>
      %c11_i32_50 = arith.constant 11 : i32
      %82 = arith.muli %arg7, %c11_i32_50 : i32
      %c6_i32 = arith.constant 6 : i32
      %83 = arith.addi %82, %c6_i32 : i32
      %84 = arith.index_cast %83 : i32 to index
      %c0_51 = arith.constant 0 : index
      %c0_52 = arith.constant 0 : index
      %85 = vector.load %arg3[%84, %c0_51, %c0_52] : memref<121x4x128xbf16, #tpu.memory_space<vmem>>, vector<1x4x128xbf16>
      %86 = vector.shape_cast %85 : vector<1x4x128xbf16> to vector<4x128xbf16>
      %cst_53 = arith.constant dense<0.000000e+00> : vector<256x128xf32>
      %87 = tpu.matmul %81, %86, %cst_53 {dimension_numbers = #tpu.dot_dimension_numbers<[1], [0], [0], [1], [0, 0, 1, 1], [], []>} : vector<256x4xbf16>, vector<4x128xbf16>, vector<256x128xf32> -> vector<256x128xf32>
      %88 = arith.addf %77, %87 : vector<256x128xf32>
      %c0_54 = arith.constant 0 : index
      %89 = arith.index_cast %10 : i32 to index
      %c7 = arith.constant 7 : index
      %c0_55 = arith.constant 0 : index
      %90 = vector.load %arg2[%c0_54, %89, %c7, %c0_55] : memref<1x26x26x4xbf16, #tpu.memory_space<vmem>>, vector<1x16x16x4xbf16>
      %91 = vector.shape_cast %90 : vector<1x16x16x4xbf16> to vector<16x16x4xbf16>
      %92 = vector.shape_cast %91 : vector<16x16x4xbf16> to vector<256x4xbf16>
      %c11_i32_56 = arith.constant 11 : i32
      %93 = arith.muli %arg7, %c11_i32_56 : i32
      %c7_i32 = arith.constant 7 : i32
      %94 = arith.addi %93, %c7_i32 : i32
      %95 = arith.index_cast %94 : i32 to index
      %c0_57 = arith.constant 0 : index
      %c0_58 = arith.constant 0 : index
      %96 = vector.load %arg3[%95, %c0_57, %c0_58] : memref<121x4x128xbf16, #tpu.memory_space<vmem>>, vector<1x4x128xbf16>
      %97 = vector.shape_cast %96 : vector<1x4x128xbf16> to vector<4x128xbf16>
      %cst_59 = arith.constant dense<0.000000e+00> : vector<256x128xf32>
      %98 = tpu.matmul %92, %97, %cst_59 {dimension_numbers = #tpu.dot_dimension_numbers<[1], [0], [0], [1], [0, 0, 1, 1], [], []>} : vector<256x4xbf16>, vector<4x128xbf16>, vector<256x128xf32> -> vector<256x128xf32>
      %99 = arith.addf %88, %98 : vector<256x128xf32>
      %c0_60 = arith.constant 0 : index
      %100 = arith.index_cast %10 : i32 to index
      %c8 = arith.constant 8 : index
      %c0_61 = arith.constant 0 : index
      %101 = vector.load %arg2[%c0_60, %100, %c8, %c0_61] : memref<1x26x26x4xbf16, #tpu.memory_space<vmem>>, vector<1x16x16x4xbf16>
      %102 = vector.shape_cast %101 : vector<1x16x16x4xbf16> to vector<16x16x4xbf16>
      %103 = vector.shape_cast %102 : vector<16x16x4xbf16> to vector<256x4xbf16>
      %c11_i32_62 = arith.constant 11 : i32
      %104 = arith.muli %arg7, %c11_i32_62 : i32
      %c8_i32 = arith.constant 8 : i32
      %105 = arith.addi %104, %c8_i32 : i32
      %106 = arith.index_cast %105 : i32 to index
      %c0_63 = arith.constant 0 : index
      %c0_64 = arith.constant 0 : index
      %107 = vector.load %arg3[%106, %c0_63, %c0_64] : memref<121x4x128xbf16, #tpu.memory_space<vmem>>, vector<1x4x128xbf16>
      %108 = vector.shape_cast %107 : vector<1x4x128xbf16> to vector<4x128xbf16>
      %cst_65 = arith.constant dense<0.000000e+00> : vector<256x128xf32>
      %109 = tpu.matmul %103, %108, %cst_65 {dimension_numbers = #tpu.dot_dimension_numbers<[1], [0], [0], [1], [0, 0, 1, 1], [], []>} : vector<256x4xbf16>, vector<4x128xbf16>, vector<256x128xf32> -> vector<256x128xf32>
      %110 = arith.addf %99, %109 : vector<256x128xf32>
      %c0_66 = arith.constant 0 : index
      %111 = arith.index_cast %10 : i32 to index
      %c9 = arith.constant 9 : index
      %c0_67 = arith.constant 0 : index
      %112 = vector.load %arg2[%c0_66, %111, %c9, %c0_67] : memref<1x26x26x4xbf16, #tpu.memory_space<vmem>>, vector<1x16x16x4xbf16>
      %113 = vector.shape_cast %112 : vector<1x16x16x4xbf16> to vector<16x16x4xbf16>
      %114 = vector.shape_cast %113 : vector<16x16x4xbf16> to vector<256x4xbf16>
      %c11_i32_68 = arith.constant 11 : i32
      %115 = arith.muli %arg7, %c11_i32_68 : i32
      %c9_i32 = arith.constant 9 : i32
      %116 = arith.addi %115, %c9_i32 : i32
      %117 = arith.index_cast %116 : i32 to index
      %c0_69 = arith.constant 0 : index
      %c0_70 = arith.constant 0 : index
      %118 = vector.load %arg3[%117, %c0_69, %c0_70] : memref<121x4x128xbf16, #tpu.memory_space<vmem>>, vector<1x4x128xbf16>
      %119 = vector.shape_cast %118 : vector<1x4x128xbf16> to vector<4x128xbf16>
      %cst_71 = arith.constant dense<0.000000e+00> : vector<256x128xf32>
      %120 = tpu.matmul %114, %119, %cst_71 {dimension_numbers = #tpu.dot_dimension_numbers<[1], [0], [0], [1], [0, 0, 1, 1], [], []>} : vector<256x4xbf16>, vector<4x128xbf16>, vector<256x128xf32> -> vector<256x128xf32>
      %121 = arith.addf %110, %120 : vector<256x128xf32>
      %c0_72 = arith.constant 0 : index
      %122 = arith.index_cast %10 : i32 to index
      %c10 = arith.constant 10 : index
      %c0_73 = arith.constant 0 : index
      %123 = vector.load %arg2[%c0_72, %122, %c10, %c0_73] : memref<1x26x26x4xbf16, #tpu.memory_space<vmem>>, vector<1x16x16x4xbf16>
      %124 = vector.shape_cast %123 : vector<1x16x16x4xbf16> to vector<16x16x4xbf16>
      %125 = vector.shape_cast %124 : vector<16x16x4xbf16> to vector<256x4xbf16>
      %c11_i32_74 = arith.constant 11 : i32
      %126 = arith.muli %arg7, %c11_i32_74 : i32
      %c10_i32 = arith.constant 10 : i32
      %127 = arith.addi %126, %c10_i32 : i32
      %128 = arith.index_cast %127 : i32 to index
      %c0_75 = arith.constant 0 : index
      %c0_76 = arith.constant 0 : index
      %129 = vector.load %arg3[%128, %c0_75, %c0_76] : memref<121x4x128xbf16, #tpu.memory_space<vmem>>, vector<1x4x128xbf16>
      %130 = vector.shape_cast %129 : vector<1x4x128xbf16> to vector<4x128xbf16>
      %cst_77 = arith.constant dense<0.000000e+00> : vector<256x128xf32>
      %131 = tpu.matmul %125, %130, %cst_77 {dimension_numbers = #tpu.dot_dimension_numbers<[1], [0], [0], [1], [0, 0, 1, 1], [], []>} : vector<256x4xbf16>, vector<4x128xbf16>, vector<256x128xf32> -> vector<256x128xf32>
      %132 = arith.addf %121, %131 : vector<256x128xf32>
      %c0_78 = arith.constant 0 : index
      %c0_79 = arith.constant 0 : index
      %133 = vector.load %arg6[%c0_78, %c0_79] : memref<256x128xf32, #tpu.memory_space<vmem>>, vector<256x128xf32>
      %134 = arith.addf %133, %132 : vector<256x128xf32>
      %c0_80 = arith.constant 0 : index
      %c0_81 = arith.constant 0 : index
      %135 = vector.load %arg6[%c0_80, %c0_81] : memref<256x128xf32, #tpu.memory_space<vmem>>, vector<256x128xf32>
      tpu.vector_store %arg6[%c0_80, %c0_81], %134 {strides = array<i32>} : memref<256x128xf32, #tpu.memory_space<vmem>>, vector<256x128xf32>,
    }
    %c11_i32_3 = arith.constant 11 : i32
    %c0_4 = arith.constant 0 : index
    %c0_5 = arith.constant 0 : index
    %6 = vector.load %arg6[%c0_4, %c0_5] : memref<256x128xf32, #tpu.memory_space<vmem>>, vector<256x128xf32>
    %c0_6 = arith.constant 0 : index
    %c0_7 = arith.constant 0 : index
    %c0_8 = arith.constant 0 : index
    %7 = vector.load %arg5[%c0_6, %c0_7, %c0_8] : memref<1x256x128xf32, #tpu.memory_space<vmem>>, vector<1x256x128xf32>
    %8 = vector.shape_cast %7 : vector<1x256x128xf32> to vector<256x128xf32>
    %9 = vector.shape_cast %6 : vector<256x128xf32> to vector<1x256x128xf32>
    tpu.vector_store %arg5[%c0_6, %c0_7, %c0_8], %9 {strides = array<i32>} : memref<1x256x128xf32, #tpu.memory_space<vmem>>, vector<1x256x128xf32>,
    return
  }
  func.func @transform_0(%arg0: i32, %arg1: i32) -> (i32, i32, i32, i32) {
    %c0_i32 = arith.constant 0 : i32
    %c0_i32_0 = arith.constant 0 : i32
    %c0_i32_1 = arith.constant 0 : i32
    %c0_i32_2 = arith.constant 0 : i32
    return %arg0, %c0_i32, %c0_i32_0, %c0_i32_1 : i32, i32, i32, i32
  }
  func.func @transform_1(%arg0: i32, %arg1: i32) -> (i32, i32, i32) {
    %c0_i32 = arith.constant 0 : i32
    %c0_i32_0 = arith.constant 0 : i32
    %c0_i32_1 = arith.constant 0 : i32
    %c0_i32_2 = arith.constant 0 : i32
    return %c0_i32, %c0_i32_0, %c0_i32_1 : i32, i32, i32
  }
  func.func @transform_2(%arg0: i32, %arg1: i32) -> (i32, i32) {
    %c0_i32 = arith.constant 0 : i32
    %c0_i32_0 = arith.constant 0 : i32
    %c0_i32_1 = arith.constant 0 : i32
    return %c0_i32, %c0_i32_0 : i32, i32
  }
  func.func @transform_3(%arg0: i32, %arg1: i32) -> (i32, i32, i32) {
    %c0_i32 = arith.constant 0 : i32
    %c0_i32_0 = arith.constant 0 : i32
    return %arg0, %arg1, %c0_i32 : i32, i32, i32
  }
}

</mosaic_0001>

<bundles_post_ra>
// kernel: tpu_custom_call.1
= control target key start
LH: loop header
LB: loop body
LE: loop exit
PB: predicated region body
PF: predicated region fallthrough
CT: control target
= control target key end

     0   :  { %8 = vsyncpa [#allocation4], 0  ;;  %s10601_s0 = inlined_call_operand.vmem [shape: bf16[2,26,26,4], index: 0, kind: input, shape index: {}]   ;;  %s10602_s1 = inlined_call_operand.vmem [shape: bf16[121,4,128], index: 1, kind: input, shape index: {}]   ;;  %s10603_s2 = inlined_call_operand.vmem [shape: f32[1,128], index: 2, kind: input, shape index: {}]   ;;  %s10604_s3 = inlined_call_operand.hbm [shape: f32[2,256,128], index: 3, kind: output, shape index: {}]  }
   0x1   :  { %10 = vsyncpa [#allocation4 + $0x1], 0  ;;  %s8015_s12 = smov 0   ;;  %s8017_s13 = smov 0  }
   0x2   :  { %s8019_s14 = smov 0   ;;  %s8021_s15 = smov 0  }
   0x3   :  { %s8023_s16 = smov 0   ;;  %s8025_s17 = smov 0  }
   0x4 LB: > { %s6358_s18 = sadd.s32 4294967295, %s7986_s17   ;;  %s6359_s19 = sadd.s32 4294967294, %s7986_s17   ;;  %s7986_s17 = sphi %s8025_s17, %s16_s17   ;;  %s7982_s16 = sphi %s8023_s16, %s10973_s16   ;;  %s7978_s15 = sphi %s8021_s15, %s10972_s15   ;;  %s7974_s14 = sphi %s8019_s14, %s10971_s14   ;;  %s7970_s13 = sphi %s8017_s13, %s10970_s13   ;;  %s7966_s12 = sphi %s8015_s12, %s10969_s12  }
   0x5   : > { %s28_s20 = sadd.s32 1, %s7982_s16  ;;  %s105_s21 = sadd.s32 1, %s7974_s14 }
   0x6   : > { %p30_p0 = scmp.ge.s32.totalorder %s28_s20, 2  ;;  %p115_p1 = scmp.ne.s32.totalorder %s7974_s14, %s7970_s13 }
   0x7   : > { %p116_p2 = scmp.eq.s32.totalorder %s6358_s18, 1  ;;  %p121_p3 = scmp.ne.s32.totalorder %s7970_s13, %s7966_s12 }
   0x8   : > { %s10975_s20 = smov (%p30_p0, %s28_s20), 0  ;;  %p122_p5 = scmp.eq.s32.totalorder %s6359_s19, 1 }
   0x9   : > { %p8055_p4 = por %p116_p2, %p115_p1  ;;  %s100_s23 = ssub.s32 %s7982_s16, %s10975_s20 }
   0xa   : > { %p6362_p6 = scmp.ge.s32.totalorder %s7986_s17, 1  ;;  %p103_p7 = scmp.eq.s32.totalorder %s100_s23, 0 }
   0xb   : > { %p8062_p8 = por %p122_p5, %p121_p3  ;;  %p154_p9 = scmp.lt.s32.totalorder %s7986_s17, 3 }
   0xc   : > { %s8068_s25 = scalar_select %p103_p7, %s7974_s14, %s105_s21  }
   0xd   : > { %p155_p10 = pnand %p6362_p6, %p154_p9 }
   0xe   : > { %s175_s26 = sand.u32 (!%p155_p10), 1, %s7970_s13   ;;  %p178_p11 = scmp.lt.s32.totalorder (!%p155_p10), %s7978_s15, 1  ;;  %v6365_v0 = vld [vmem:[%s10603_s2] ss:$0 sm:$0xff] (!%p155_p10) }
   0xf   : > { %158 = sbr.rel (%p155_p10) target bundleno = 736 (0x2e0), region = 32  ;;  %s8077_s29 = sshll.u32 (!%p155_p10), %s175_s26, 8  ;;  %193 = vst [vmem:[#allocation2] sm:$0xff] (!%p155_p10), %v6365_v0  ;;  %194 = vst [vmem:[#allocation2 + $0x8] sm:$0xff] (!%p155_p10), %v6365_v0 }
  0x10   : > { %195 = vst [vmem:[#allocation2 + $0x10] sm:$0xff] (!%p155_p10), %v6365_v0  ;;  %196 = vst [vmem:[#allocation2 + $0x18] sm:$0xff] (!%p155_p10), %v6365_v0  ;;  %s8088_s8 = scalar_lea.vmem (!%p155_p10), [#allocation3], %s8077_s29  ;;  %s8090_s9 = smov (!%p155_p10), 0  }
  0x11   : > { %197 = vst [vmem:[#allocation2 + $0x20] sm:$0xff] (!%p155_p10), %v6365_v0  ;;  %198 = vst [vmem:[#allocation2 + $0x28] sm:$0xff] (!%p155_p10), %v6365_v0 }
  0x12   : > { %199 = vst [vmem:[#allocation2 + $0x30] sm:$0xff] (!%p155_p10), %v6365_v0  ;;  %200 = vst [vmem:[#allocation2 + $0x38] sm:$0xff] (!%p155_p10), %v6365_v0 }
  0x13   : > { %201 = vst [vmem:[#allocation2 + $0x40] sm:$0xff] (!%p155_p10), %v6365_v0  ;;  %202 = vst [vmem:[#allocation2 + $0x48] sm:$0xff] (!%p155_p10), %v6365_v0 }
  0x14   : > { %203 = vst [vmem:[#allocation2 + $0x50] sm:$0xff] (!%p155_p10), %v6365_v0  ;;  %204 = vst [vmem:[#allocation2 + $0x58] sm:$0xff] (!%p155_p10), %v6365_v0 }
  0x15   : > { %205 = vst [vmem:[#allocation2 + $0x60] sm:$0xff] (!%p155_p10), %v6365_v0  ;;  %206 = vst [vmem:[#allocation2 + $0x68] sm:$0xff] (!%p155_p10), %v6365_v0 }
  0x16   : > { %207 = vst [vmem:[#allocation2 + $0x70] sm:$0xff] %v6365_v0  ;;  %208 = vst [vmem:[#allocation2 + $0x78] sm:$0xff] %v6365_v0  ;;  %s179_s30 = scalar_select %p178_p11, %s7978_s15, 1 }
  0x17   : > { %209 = vst [vmem:[#allocation2 + $0x80] sm:$0xff] %v6365_v0  ;;  %210 = vst [vmem:[#allocation2 + $0x88] sm:$0xff] %v6365_v0 }
  0x18   : > { %211 = vst [vmem:[#allocation2 + $0x90] sm:$0xff] %v6365_v0  ;;  %212 = vst [vmem:[#allocation2 + $0x98] sm:$0xff] %v6365_v0  ;;  %s7724_s4 = smul.u32 416, %s179_s30 }
  0x19   : > { %213 = vst [vmem:[#allocation2 + $0xa0] sm:$0xff] %v6365_v0  ;;  %214 = vst [vmem:[#allocation2 + $0xa8] sm:$0xff] %v6365_v0 }
  0x1a   : > { %215 = vst [vmem:[#allocation2 + $0xb0] sm:$0xff] %v6365_v0  ;;  %216 = vst [vmem:[#allocation2 + $0xb8] sm:$0xff] %v6365_v0  ;;  %s8085_s7 = scalar_lea.vmem %s10601_s0, %s7724_s4 }
  0x1b   : > { %217 = vst [vmem:[#allocation2 + $0xc0] sm:$0xff] %v6365_v0  ;;  %218 = vst [vmem:[#allocation2 + $0xc8] sm:$0xff] %v6365_v0 }
  0x1c   : > { %219 = vst [vmem:[#allocation2 + $0xd0] sm:$0xff] %v6365_v0  ;;  %220 = vst [vmem:[#allocation2 + $0xd8] sm:$0xff] %v6365_v0 }
  0x1d   : > { %221 = vst [vmem:[#allocation2 + $0xe0] sm:$0xff] %v6365_v0  ;;  %222 = vst [vmem:[#allocation2 + $0xe8] sm:$0xff] %v6365_v0 }
  0x1e   : > { %223 = vst [vmem:[#allocation2 + $0xf0] sm:$0xff] %v6365_v0  ;;  %224 = vst [vmem:[#allocation2 + $0xf8] sm:$0xff] %v6365_v0 }
  0x1f LB: >> { %s6826_s10 = sshll.u32 %s7990_s9, 4  ;;  %s6827_s11 = smul.u32 22, %s7990_s9  ;;  %vm775_vm0 = vcmask 1041408   ;;  %vm287_vm1 = vsmask.f32 3328  ;;  %vm726_vm5 = vcmask 31744   ;;  %s7990_s9 = sphi %s8090_s9, %s230_s9  }
  0x20   : >> { %s8098_s18 = scalar_lea.vmem %s8085_s7, %s6826_s10  ;;  %vm288_vm2 = vsmask.f32 7440  ;;  %vm2849_vm3 = vsmask.f32 1280  ;;  %vm2850_vm4 = vsmask.f32 5392 }
  0x21   : >> { %s8103_s23 = scalar_lea.vmem %s10602_s1, %s6827_s11  ;;  %v8106_v1 = vld [vmem:[%s8098_s18] sm:$0xf]  ;;  %v8109_v2 = vld [vmem:[%s8098_s18 + $0x4] sm:$0xf]  ;;  %v8112_v3 = vld [vmem:[%s8098_s18 + $0x8] sm:$0x1] }
  0x22   : >> { %10733 = vst [vmem:[#allocation6_spill] sm:$0xff] %v8112_v3  ;;  %v6370_v4 = vld [vmem:[%s8103_s23 + $0x2] sm:$0x3]  ;;  %v6570_v5 = vld [vmem:[%s8103_s23 + $0xa] sm:$0x3]  ;;  %v291_v6 = vshrl.u32 %v8106_v1, 16  ;;  %vm8149_vm6 = vmor %vm287_vm1, %vm288_vm2 }
  0x23   : >> { %v294_v7 = vshll.u32 %v8106_v1, 16  ;;  %7712 = vmatprep.subr.msk.bf16.mxu1 %vm775_vm0, %v6370_v4  ;;  %7717 = vmatprep.subr.msk.bf16.mxu0 %vm775_vm0, %v6570_v5  ;;  %v777_v8 = vsel %vm775_vm0, %v6370_v4, 0  ;;  %v8122_v9 = vsel %vm775_vm0, %v6570_v5, 0  ;;  %v8125_v10 = vshll.u32 %v8109_v2, 16  ;;  %v270_v12 = vld [vmem:[%s8103_s23] sm:$0x3]  ;;  %vm8166_vm7 = vmor %vm2849_vm3, %vm2850_vm4 }
  0x24   : >> { %10734 = vst [vmem:[#allocation7_spill] sm:$0xff] %v8122_v9  ;;  %v8128_v11 = vshrl.u32 %v8109_v2, 16  ;;  %7017 = vmatpush3.bf16.msra.mxu1 %v777_v8  ;;  %7187 = vmatpush3.bf16.msra.mxu0 %v8122_v9  ;;  %v293_v13 = vrot.slane %v291_v6, 4  ;;  %v310_v15 = vshll.u32 %v8112_v3, 16  ;;  %v2374_v16 = vld [vmem:[%s8098_s18] sm:$0xc] }
  0x25   : >> { %v296_v14 = vrot.slane %v294_v7, 5  ;;  %v302_v18 = vrot.slane %v8125_v10, 5  ;;  %7713 = vmatprep.subr.msk.bf16.mxu1 %vm775_vm0, %v270_v12  ;;  %v8140_v20 = vld [vmem:[%s8098_s18 + $0x8] sm:$0x7]  ;;  %v2853_v21 = vshrl.u32 %v2374_v16, 16  ;;  %v2856_v22 = vshll.u32 %v2374_v16, 16 }
  0x26   : >> { %v306_v19 = vrot.slane %v8128_v11, 4  ;;  %v312_v24 = vrot.slane %v310_v15, 5  ;;  %v2861_v25 = vrot.slane %v8128_v11, 6  ;;  %v2862_v26 = vrot.slane %v8125_v10, 7  ;;  %v8145_v27 = vld [vmem:[%s8103_s23 + $0xc] sm:$0x3] }
  0x27   : >> { %v297_v23 = vor.u32 %v296_v14, %v293_v13  ;;  %v10735_v28 = vmov 0  ;;  %v2855_v30 = vrot.slane %v2853_v21, 6  ;;  %v2858_v31 = vrot.slane %v2856_v22, 7  ;;  %7719 = vmatprep.subr.msk.bf16.mxu0 %vm775_vm0, %v8145_v27  ;;  %v237_v33 = vld [vmem:[%s8098_s18 + $0x10] sm:$0xf]  ;;  %s230_s9 = sadd.s32 1, %s7990_s9  }
  0x28   : >> { %v10736_v28 = vsel %vm8149_vm6, 4294967295, %v10735_v28  ;;  %v307_v29 = vor.u32 %v306_v19, %v302_v18  ;;  %v2867_v32 = vshrl.u32 %v8140_v20, 16  ;;  %v2863_v36 = vor.u32 %v2862_v26, %v2861_v25  ;;  %v8160_v38 = vld [vmem:[%s8098_s18 + $0x14] sm:$0xf]  ;;  %v8171_v47 = vld [vmem:[%s8098_s18 + $0x18] sm:$0x1] }
  0x29   : >> { %10737 = vst [vmem:[#allocation8_spill] sm:$0xff] %v10736_v28  ;;  %v298_v34 = vrot.slane %v297_v23, 4  ;;  %v2870_v37 = vshll.u32 %v8140_v20, 16  ;;  %v2859_v40 = vor.u32 %v2858_v31, %v2855_v30  ;;  %v315_v42 = vshrl.u32 %v237_v33, 16  ;;  %10741 = vst [vmem:[#allocation10_spill] sm:$0xff] %v8171_v47  ;;  %p227_p12 = scmp.ge.s32.totalorder %s230_s9, 11  }
  0x2a   : >> { %v308_v39 = vrot.slane %v307_v29, 4  ;;  %v2869_v41 = vrot.slane %v2867_v32, 6  ;;  %v10738_v44 = vmov 0  ;;  %v2865_v45 = vrot.slane %v2863_v36, 4  ;;  %v8182_v57 = vld [vmem:[%s8098_s18 + $0x10] sm:$0xc] }
  0x2b   : >> { %v303_v43 = vsel %vm8149_vm6, %v298_v34, %v302_v18  ;;  %v10739_v44 = vsel %vm8166_vm7, 4294967295, %v10738_v44  ;;  %v2872_v46 = vrot.slane %v2870_v37, 7  ;;  %v318_v48 = vshll.u32 %v237_v33, 16  ;;  %10742 = vst [vmem:[#allocation11_spill] sm:$0xff] %v8182_v57  ;;  %v8195_v5 = vld [vmem:[%s8098_s18 + $0x18] sm:$0x7] }
  0x2c   : >> { %10740 = vst [vmem:[#allocation9_spill] sm:$0xff] %v10739_v44  ;;  %v313_v49 = vsel %vm8149_vm6, %v308_v39, %v312_v24  ;;  %v2860_v50 = vrot.slane %v2859_v40, 4  ;;  %v317_v51 = vrot.slane %v315_v42, 4  ;;  %v8176_v52 = vshll.u32 %v8160_v38, 16  ;;  %v239_v23 = vld [vmem:[%s8098_s18 + $0x20] sm:$0xf] }
  0x2d   : >> { %v6371_v53 = vcombine.low %v303_v43, %v313_v49  ;;  %v2873_v54 = vor.u32 %v2872_v46, %v2869_v41  ;;  %v320_v55 = vrot.slane %v318_v48, 5  ;;  %v8179_v56 = vshrl.u32 %v8160_v38, 16  ;;  %v8210_v30 = vld [vmem:[%s8098_s18 + $0x24] sm:$0xf]  ;;  %v273_v39 = vld [vmem:[%s8098_s18 + $0x28] sm:$0x1] }
  0x2e   : >> { %v2864_v58 = vsel %vm8166_vm7, %v2860_v50, %v2863_v36  ;;  %v326_v59 = vrot.slane %v8176_v52, 5  ;;  %v334_v60 = vshll.u32 %v8171_v47, 16  ;;  %v1069_v4 = vsel %vm775_vm0, %v270_v12, 0  ;;  %v2376_v42 = vld [vmem:[%s8098_s18 + $0x20] sm:$0xc]  ;;  %s6828_s27 = sshll.u32 (%p227_p12), %s7978_s15, 12 }
  0x2f   : >> { %7018 = vmatprep.mubr.msk.bf16.mxu1 %vm726_vm5, %v6371_v53  ;;  %v2874_v62 = vsel %vm8166_vm7, %v2865_v45, %v2873_v54  ;;  %v321_v63 = vor.u32 %v320_v55, %v317_v51  ;;  %v330_v0 = vrot.slane %v8179_v56, 4  ;;  %v2876_v13 = vshrl.u32 %v8182_v57, 16  ;;  %v8367_v61 = vld [vmem:[%s8098_s18 + $0x68] sm:$0x7]  ;;  %v8370_v17 = vld [vmem:[%s8103_s23 + $0x4] sm:$0x3]  ;;  %s10541_s30 = scalar_lea.hbm (%p227_p12), %s10604_s3, %s6828_s27 }
  0x30   : >> { %v6571_v6 = vcombine.low %v2864_v58, %v2874_v62  ;;  %v336_v7 = vrot.slane %v334_v60, 5  ;;  %v2879_v16 = vshll.u32 %v8182_v57, 16  ;;  %v2884_v18 = vrot.slane %v8179_v56, 6  ;;  %v8740_v28 = vld [vmem:[%s8098_s18 + $0xb0] sm:$0x8]  ;;  %s6234_s28 = sshll.u32 (%p227_p12), %s8088_s8, 4  ;;  %s10543_s28 = int_to_ptr.vmem [resolvable:$true] %s6234_s28 }
  0x31   : >> { %v322_v14 = vrot.slane %v321_v63, 4  ;;  %v331_v15 = vor.u32 %v330_v0, %v326_v59  ;;  %v2878_v19 = vrot.slane %v2876_v13, 6  ;;  %v2885_v12 = vrot.slane %v8176_v52, 7  ;;  %v8232_v63 = vld [vmem:[%s8098_s18 + $0x28] sm:$0x7]  ;;  %10783 = vst [vmem:[#allocation49_spill] sm:$0xff] %v8740_v28 }
  0x32   : >> { %7188 = vmatprep.mubr.msk.bf16.mxu0 %vm726_vm5, %v6571_v6  ;;  %v2890_v21 = vshrl.u32 %v8195_v5, 16  ;;  %v2893_v22 = vshll.u32 %v8195_v5, 16  ;;  %v2881_v26 = vrot.slane %v2879_v16, 7  ;;  %v3780_v34 = vsel %vm775_vm0, %v8145_v27, 0  ;;  %v241_v6 = vld [vmem:[%s8098_s18 + $0x30] sm:$0xf] }
  0x33   : >> { %v327_v24 = vsel %vm8149_vm6, %v322_v14, %v326_v59  ;;  %v332_v25 = vrot.slane %v331_v15, 4  ;;  %v2886_v31 = vor.u32 %v2885_v12, %v2884_v18  ;;  %v339_v40 = vshrl.u32 %v239_v23, 16  ;;  %s10555_s4 = scalar_lea.sflag (%p227_p12), [#allocation4], %s175_s26  ;;  %s7904_s5 = scalar_lea.vmem (%p227_p12), %s10543_s28, 4096 }
  0x34   : >> { %v2892_v32 = vrot.slane %v2890_v21, 6  ;;  %v2895_v33 = vrot.slane %v2893_v22, 7  ;;  %v2882_v37 = vor.u32 %v2881_v26, %v2878_v19  ;;  %v342_v41 = vshll.u32 %v239_v23, 16  ;;  %v8241_v22 = vld [vmem:[%s8098_s18 + $0x34] sm:$0xf]  ;;  %p7905_p13 = scmp.ne.s32.totalorder (%p227_p12), %s10543_s28, %s7904_s5  ;;  %s7992_s6 = smov (%p227_p12), [#allocation3]  }
  0x35   : >> { %v337_v36 = vsel %vm8149_vm6, %v332_v25, %v336_v7  ;;  %v2888_v45 = vrot.slane %v2886_v31, 4  ;;  %v8219_v48 = vshll.u32 %v8210_v30, 16  ;;  %v341_v50 = vrot.slane %v339_v40, 4  ;;  %s7908_s7 = sshll.u32 (%p227_p12), %s7992_s6, 4  ;;  %s7909_s7 = int_to_ptr.vmem [resolvable:$false] %s7908_s7 }
  0x36   : >> { %v6372_v43 = vcombine.low %v327_v24, %v337_v36  ;;  %v2896_v46 = vor.u32 %v2895_v33, %v2892_v32  ;;  %v2883_v49 = vrot.slane %v2882_v37, 4  ;;  %v344_v51 = vrot.slane %v342_v41, 5  ;;  %v274_v33 = vld [vmem:[%s8098_s18 + $0x38] sm:$0x1]  ;;  %v2377_v41 = vld [vmem:[%s8098_s18 + $0x30] sm:$0xc]  ;;  %p7906_p0 = pnand (%p227_p12), %p7905_p13, %p8055_p4  ;;  %p7911_p2 = scmp.lt.s32.totalorder (%p227_p12), %s10543_s28, %s7909_s7 }
  0x37   : >> { %10743 = vst [vmem:[#allocation12_spill] sm:$0xff] %v8219_v48  ;;  %v8222_v27 = vshrl.u32 %v8210_v30, 16  ;;  %v350_v54 = vrot.slane %v8219_v48, 5  ;;  %v358_v55 = vshll.u32 %v273_v39, 16  ;;  %v2899_v58 = vshrl.u32 %v2376_v42, 16  ;;  %s7910_s9 = scalar_lea.vmem (%p227_p12), %s7909_s7, 8192 }
  0x38   : >> { %7019 = vmatmul.mubr.msk.bf16.vlgmr.msra.gmra.mrb[0].mxu1 %vm726_vm5, %v6372_v43  ;;  %v2897_v53 = vsel %vm8166_vm7, %v2888_v45, %v2896_v46  ;;  %v2887_v59 = vsel %vm8166_vm7, %v2883_v49, %v2886_v31  ;;  %v345_v60 = vor.u32 %v344_v51, %v341_v50  ;;  %v2902_v0 = vshll.u32 %v2376_v42, 16  ;;  %p7907_p1 = pneg (%p227_p12), %p7906_p0  ;;  %p7912_p3 = scmp.lt.s32.totalorder (%p227_p12), %s7910_s9, %s7904_s5 }
  0x39   : >> { %10744 = vst [vmem:[#allocation13_spill] sm:$0xff] %v8222_v27  ;;  %7051 = vmatpush3.bf16.msra.mxu1 %v1069_v4  ;;  %v354_v62 = vrot.slane %v8222_v27, 4  ;;  %v6572_v7 = vcombine.low %v2887_v59, %v2897_v53  ;;  %v360_v13 = vrot.slane %v358_v55, 5  ;;  %v2901_v14 = vrot.slane %v2899_v58, 6  ;;  %v8259_v58 = vld [vmem:[%s8098_s18 + $0x38] sm:$0x7] }
  0x3a   : >> { %v2907_v15 = vrot.slane %v8222_v27, 6  ;;  %v346_v16 = vrot.slane %v345_v60, 4  ;;  %v2904_v4 = vrot.slane %v2902_v0, 7  ;;  %v2908_v19 = vrot.slane %v8219_v48, 7  ;;  %7714 = vmatprep.subr.msk.bf16.mxu1 %vm775_vm0, %v8370_v17  ;;  %p7913_p5 = por (%p227_p12), %p7912_p3, %p7911_p2 }
  0x3b   : >> { %v355_v18 = vor.u32 %v354_v62, %v350_v54  ;;  %7189 = vmatmul.mubr.msk.bf16.vlgmr.msra.gmra.mrb[0].mxu0 %vm726_vm5, %v6572_v7  ;;  %v2913_v12 = vshrl.u32 %v8232_v63, 16  ;;  %v2916_v21 = vshll.u32 %v8232_v63, 16  ;;  %v363_v23 = vshrl.u32 %v241_v6, 16  ;;  %v8266_v7 = vld [vmem:[%s8098_s18 + $0x40] sm:$0xf] }
  0x3c   : >> { %v366_v24 = vshll.u32 %v241_v6, 16  ;;  %7221 = vmatpush3.bf16.msra.mxu0 %v3780_v34  ;;  %v351_v25 = vsel %vm8149_vm6, %v346_v16, %v350_v54  ;;  %v2905_v31 = vor.u32 %v2904_v4, %v2901_v14  ;;  %v2909_v32 = vor.u32 %v2908_v19, %v2907_v15  ;;  %p7914_p6 = pnand (%p227_p12), %p7913_p5, %p7907_p1 }
  0x3d   : >> { %v356_v26 = vrot.slane %v355_v18, 4  ;;  %v2915_v36 = vrot.slane %v2913_v12, 6  ;;  %v2918_v37 = vrot.slane %v2916_v21, 7  ;;  %v365_v39 = vrot.slane %v363_v23, 4  ;;  %v8270_v18 = vld [vmem:[%s8098_s18 + $0x44] sm:$0xf] }
  0x3e   : >> { %v368_v40 = vrot.slane %v366_v24, 5  ;;  %v2906_v43 = vrot.slane %v2905_v31, 4  ;;  %v2911_v45 = vrot.slane %v2909_v32, 4  ;;  %v8250_v34 = vshll.u32 %v8241_v22, 16 }
  0x3f   : >> { %v361_v42 = vsel %vm8149_vm6, %v356_v26, %v360_v13  ;;  %v2919_v49 = vor.u32 %v2918_v37, %v2915_v36  ;;  %v8253_v51 = vshrl.u32 %v8241_v22, 16  ;;  %v382_v55 = vshll.u32 %v274_v33, 16  ;;  %v275_v36 = vld [vmem:[%s8098_s18 + $0x48] sm:$0x1] }
  0x40   : >> { %10745 = vst [vmem:[#allocation14_spill] sm:$0xff] %v8250_v34  ;;  %v6373_v46 = vcombine.low %v351_v25, %v361_v42  ;;  %v369_v50 = vor.u32 %v368_v40, %v365_v39  ;;  %v2910_v53 = vsel %vm8166_vm7, %v2906_v43, %v2909_v32  ;;  %v374_v54 = vrot.slane %v8250_v34, 5  ;;  %v8285_v39 = vld [vmem:[%s8103_s23 + $0xe] sm:$0x3] }
  0x41   : >> { %10746 = vst [vmem:[#allocation15_spill] sm:$0xff] %v8253_v51  ;;  %v2922_v59 = vshrl.u32 %v2377_v41, 16  ;;  %v2920_v60 = vsel %vm8166_vm7, %v2911_v45, %v2919_v49  ;;  %v378_v0 = vrot.slane %v8253_v51, 4  ;;  %v2925_v6 = vshll.u32 %v2377_v41, 16  ;;  %v2378_v45 = vld [vmem:[%s8098_s18 + $0x40] sm:$0xc]  ;;  %7720 = vmatprep.subr.msk.bf16.mxu0 %vm775_vm0, %v8285_v39 }
  0x42   : >> { %7022 = vmatprep.mubr.msk.bf16.mxu1 %vm726_vm5, %v6373_v46  ;;  %v370_v62 = vrot.slane %v369_v50, 4  ;;  %v6573_v13 = vcombine.low %v2910_v53, %v2920_v60  ;;  %v384_v14 = vrot.slane %v382_v55, 5  ;;  %v2930_v16 = vrot.slane %v8253_v51, 6 }
  0x43   : >> { %v2924_v15 = vrot.slane %v2922_v59, 6  ;;  %v379_v19 = vor.u32 %v378_v0, %v374_v54  ;;  %v2927_v12 = vrot.slane %v2925_v6, 7  ;;  %v2931_v21 = vrot.slane %v8250_v34, 7  ;;  %v8299_v6 = vld [vmem:[%s8098_s18 + $0x48] sm:$0x7] }
  0x44   : >> { %v375_v4 = vsel %vm8149_vm6, %v370_v62, %v374_v54  ;;  %7192 = vmatprep.mubr.msk.bf16.mxu0 %vm726_vm5, %v6573_v13  ;;  %v2936_v23 = vshrl.u32 %v8259_v58, 16  ;;  %v2939_v24 = vshll.u32 %v8259_v58, 16  ;;  %v387_v25 = vshrl.u32 %v8266_v7, 16 }
  0x45   : >> { %v390_v26 = vshll.u32 %v8266_v7, 16  ;;  %v380_v31 = vrot.slane %v379_v19, 4  ;;  %v2928_v32 = vor.u32 %v2927_v12, %v2924_v15  ;;  %v2932_v33 = vor.u32 %v2931_v21, %v2930_v16  ;;  %v8307_v12 = vld [vmem:[%s8098_s18 + $0x50] sm:$0xf] }
  0x46   : >> { %v8282_v37 = vshll.u32 %v8270_v18, 16  ;;  %v2938_v40 = vrot.slane %v2936_v23, 6  ;;  %v2941_v41 = vrot.slane %v2939_v24, 7  ;;  %v389_v42 = vrot.slane %v387_v25, 4 }
  0x47   : >> { %v392_v43 = vrot.slane %v390_v26, 5  ;;  %v385_v46 = vsel %vm8149_vm6, %v380_v31, %v384_v14  ;;  %v2929_v49 = vrot.slane %v2928_v32, 4  ;;  %v2934_v50 = vrot.slane %v2932_v33, 4  ;;  %v8310_v26 = vld [vmem:[%s8098_s18 + $0x54] sm:$0xf] }
  0x48   : >> { %10747 = vst [vmem:[#allocation16_spill] sm:$0xff] %v8282_v37  ;;  %v398_v53 = vrot.slane %v8282_v37, 5  ;;  %v6374_v54 = vcombine.low %v375_v4, %v385_v46  ;;  %v2942_v55 = vor.u32 %v2941_v41, %v2938_v40  ;;  %v8294_v60 = vshrl.u32 %v8270_v18, 16 }
  0x49   : >> { %v393_v59 = vor.u32 %v392_v43, %v389_v42  ;;  %v2933_v62 = vsel %vm8166_vm7, %v2929_v49, %v2932_v33  ;;  %v406_v0 = vshll.u32 %v275_v36, 16  ;;  %v2945_v13 = vshrl.u32 %v2378_v45, 16 }
  0x4a   : >> { %10748 = vst [vmem:[#allocation17_spill] sm:$0xff] %v8294_v60  ;;  %v2948_v14 = vshll.u32 %v2378_v45, 16  ;;  %7023 = vmatmul.mubr.msk.bf16.gmra.mrb[4].mxu1 %vm726_vm5, %v6374_v54  ;;  %v2943_v15 = vsel %vm8166_vm7, %v2934_v50, %v2942_v55  ;;  %v402_v4 = vrot.slane %v8294_v60, 4  ;;  %v2953_v19 = vrot.slane %v8294_v60, 6  ;;  %v276_v50 = vld [vmem:[%s8098_s18 + $0x58] sm:$0x1] }
  0x4b   : >> { %v394_v16 = vrot.slane %v393_v59, 4  ;;  %v6574_v21 = vcombine.low %v2933_v62, %v2943_v15  ;;  %v408_v23 = vrot.slane %v406_v0, 5  ;;  %v2947_v24 = vrot.slane %v2945_v13, 6  ;;  %v2379_v0 = vld [vmem:[%s8098_s18 + $0x50] sm:$0xc] }
  0x4c   : >> { %v2950_v25 = vrot.slane %v2948_v14, 7  ;;  %v403_v32 = vor.u32 %v402_v4, %v398_v53  ;;  %v2954_v33 = vrot.slane %v8282_v37, 7  ;;  %v2959_v36 = vshrl.u32 %v8299_v6, 16  ;;  %v8598_v60 = vld [vmem:[%s8098_s18 + $0xd4] sm:$0xf] }
  0x4d   : >> { %v399_v31 = vsel %vm8149_vm6, %v394_v16, %v398_v53  ;;  %7193 = vmatmul.mubr.msk.bf16.gmra.mrb[4].mxu0 %vm726_vm5, %v6574_v21  ;;  %v2962_v41 = vshll.u32 %v8299_v6, 16  ;;  %v411_v42 = vshrl.u32 %v8307_v12, 16  ;;  %v414_v43 = vshll.u32 %v8307_v12, 16 }
  0x4e   : >> { %v2951_v40 = vor.u32 %v2950_v25, %v2947_v24  ;;  %v404_v45 = vrot.slane %v403_v32, 4  ;;  %v2955_v46 = vor.u32 %v2954_v33, %v2953_v19  ;;  %v2961_v49 = vrot.slane %v2959_v36, 6  ;;  %v8335_v33 = vld [vmem:[%s8098_s18 + $0x58] sm:$0x7] }
  0x4f   : >> { %v8322_v53 = vshll.u32 %v8310_v26, 16  ;;  %v2964_v55 = vrot.slane %v2962_v41, 7  ;;  %v413_v59 = vrot.slane %v411_v42, 4  ;;  %v416_v62 = vrot.slane %v414_v43, 5  ;;  %v8343_v43 = vld [vmem:[%s8098_s18 + $0x60] sm:$0xf] }
  0x50   : >> { %v2952_v54 = vrot.slane %v2951_v40, 4  ;;  %v409_v13 = vsel %vm8149_vm6, %v404_v45, %v408_v23  ;;  %v2957_v14 = vrot.slane %v2955_v46, 4  ;;  %v8329_v16 = vshrl.u32 %v8310_v26, 16 }
  0x51   : >> { %10749 = vst [vmem:[#allocation18_spill] sm:$0xff] %v8322_v53  ;;  %v422_v15 = vrot.slane %v8322_v53, 5  ;;  %v6375_v4 = vcombine.low %v399_v31, %v409_v13  ;;  %v2965_v21 = vor.u32 %v2964_v55, %v2961_v49  ;;  %v417_v24 = vor.u32 %v416_v62, %v413_v59 }
  0x52   : >> { %10750 = vst [vmem:[#allocation19_spill] sm:$0xff] %v8329_v16  ;;  %v2956_v19 = vsel %vm8166_vm7, %v2952_v54, %v2955_v46  ;;  %v426_v25 = vrot.slane %v8329_v16, 4  ;;  %v430_v32 = vshll.u32 %v276_v50, 16  ;;  %v2968_v23 = vshrl.u32 %v2379_v0, 16  ;;  %v8346_v54 = vld [vmem:[%s8098_s18 + $0x64] sm:$0xf] }
  0x53   : >> { %v2971_v36 = vshll.u32 %v2379_v0, 16  ;;  %7026 = vmatprep.mubr.msk.bf16.mxu1 %vm726_vm5, %v6375_v4  ;;  %v2966_v40 = vsel %vm8166_vm7, %v2957_v14, %v2965_v21  ;;  %v418_v41 = vrot.slane %v417_v24, 4  ;;  %v2976_v31 = vrot.slane %v8329_v16, 6  ;;  %v277_v4 = vld [vmem:[%s8098_s18 + $0x68] sm:$0x1] }
  0x54   : >> { %v2977_v42 = vrot.slane %v8322_v53, 7  ;;  %v6575_v45 = vcombine.low %v2956_v19, %v2966_v40  ;;  %v427_v46 = vor.u32 %v426_v25, %v422_v15  ;;  %v432_v49 = vrot.slane %v430_v32, 5  ;;  %v8527_v16 = vld [vmem:[%s8098_s18 + $0xb4] sm:$0xf] }
  0x55   : >> { %v2970_v50 = vrot.slane %v2968_v23, 6  ;;  %v423_v55 = vsel %vm8149_vm6, %v418_v41, %v422_v15  ;;  %v2973_v59 = vrot.slane %v2971_v36, 7  ;;  %v2982_v0 = vshrl.u32 %v8335_v33, 16  ;;  %v2380_v23 = vld [vmem:[%s8098_s18 + $0x60] sm:$0xc] }
  0x56   : >> { %v2978_v62 = vor.u32 %v2977_v42, %v2976_v31  ;;  %7196 = vmatprep.mubr.msk.bf16.mxu0 %vm726_vm5, %v6575_v45  ;;  %v428_v13 = vrot.slane %v427_v46, 4  ;;  %v2985_v14 = vshll.u32 %v8335_v33, 16  ;;  %v435_v19 = vshrl.u32 %v8343_v43, 16 }
  0x57   : >> { %v438_v21 = vshll.u32 %v8343_v43, 16  ;;  %v2974_v24 = vor.u32 %v2973_v59, %v2970_v50  ;;  %v2984_v32 = vrot.slane %v2982_v0, 6  ;;  %v8357_v15 = vshll.u32 %v8346_v54, 16 }
  0x58   : >> { %v2980_v25 = vrot.slane %v2978_v62, 4  ;;  %v433_v36 = vsel %vm8149_vm6, %v428_v13, %v432_v49  ;;  %v2987_v40 = vrot.slane %v2985_v14, 7  ;;  %v437_v41 = vrot.slane %v435_v19, 4  ;;  %v8378_v19 = vld [vmem:[%s8098_s18 + $0x70] sm:$0xf] }
  0x59   : >> { %10751 = vst [vmem:[#allocation20_spill] sm:$0xff] %v8357_v15  ;;  %v440_v31 = vrot.slane %v438_v21, 5  ;;  %v6376_v42 = vcombine.low %v423_v55, %v433_v36  ;;  %v2975_v45 = vrot.slane %v2974_v24, 4  ;;  %v446_v46 = vrot.slane %v8357_v15, 5 }
  0x5a   : >> { %v8364_v50 = vshrl.u32 %v8346_v54, 16  ;;  %v2988_v59 = vor.u32 %v2987_v40, %v2984_v32  ;;  %v454_v8 = vshll.u32 %v277_v4, 16  ;;  %v2991_v35 = vshrl.u32 %v2380_v23, 16 }
  0x5b   : >> { %v441_v0 = vor.u32 %v440_v31, %v437_v41  ;;  %7027 = vmatmul.mubr.msk.bf16.gmra.mrb[8].mxu1 %vm726_vm5, %v6376_v42  ;;  %v2979_v49 = vsel %vm8166_vm7, %v2975_v45, %v2978_v62  ;;  %v2994_v13 = vshll.u32 %v2380_v23, 16  ;;  %v3000_v41 = vrot.slane %v8357_v15, 7  ;;  %v8386_v23 = vld [vmem:[%s8098_s18 + $0x74] sm:$0xf] }
  0x5c   : >> { %10752 = vst [vmem:[#allocation21_spill] sm:$0xff] %v8364_v50  ;;  %v450_v55 = vrot.slane %v8364_v50, 4  ;;  %v2999_v14 = vrot.slane %v8364_v50, 6  ;;  %v2989_v4 = vsel %vm8166_vm7, %v2980_v25, %v2988_v59  ;;  %v456_v24 = vrot.slane %v454_v8, 5 }
  0x5d   : >> { %v442_v21 = vrot.slane %v441_v0, 4  ;;  %v2993_v32 = vrot.slane %v2991_v35, 6  ;;  %v6576_v36 = vcombine.low %v2979_v49, %v2989_v4  ;;  %v2996_v62 = vrot.slane %v2994_v13, 7  ;;  %v278_v0 = vld [vmem:[%s8098_s18 + $0x78] sm:$0x1] }
  0x5e   : >> { %v451_v40 = vor.u32 %v450_v55, %v446_v46  ;;  %v3005_v42 = vshrl.u32 %v8367_v61, 16  ;;  %v3008_v45 = vshll.u32 %v8367_v61, 16  ;;  %v459_v25 = vshrl.u32 %v8378_v19, 16 }
  0x5f   : >> { %v447_v31 = vsel %vm8149_vm6, %v442_v21, %v446_v46  ;;  %7197 = vmatmul.mubr.msk.bf16.gmra.mrb[8].mxu0 %vm726_vm5, %v6576_v36  ;;  %v2997_v8 = vor.u32 %v2996_v62, %v2993_v32  ;;  %v3001_v59 = vor.u32 %v3000_v41, %v2999_v14  ;;  %v462_v49 = vshll.u32 %v8378_v19, 16  ;;  %v2381_v21 = vld [vmem:[%s8098_s18 + $0x70] sm:$0xc] }
  0x60   : >> { %v452_v35 = vrot.slane %v451_v40, 4  ;;  %v3007_v55 = vrot.slane %v3005_v42, 6  ;;  %v3010_v13 = vrot.slane %v3008_v45, 7  ;;  %v461_v4 = vrot.slane %v459_v25, 4  ;;  %v8409_v25 = vld [vmem:[%s8098_s18 + $0x78] sm:$0x7] }
  0x61   : >> { %v8397_v46 = vshll.u32 %v8386_v23, 16  ;;  %v2998_v9 = vrot.slane %v2997_v8, 4  ;;  %v3003_v57 = vrot.slane %v3001_v59, 4  ;;  %v464_v36 = vrot.slane %v462_v49, 5  ;;  %v8417_v49 = vld [vmem:[%s8098_s18 + $0x80] sm:$0xf] }
  0x62   : >> { %v457_v29 = vsel %vm8149_vm6, %v452_v35, %v456_v24  ;;  %vm3564_vm8 = vcmask 1040384   ;;  %vm3565_vm9 = vcmask 1044484   ;;  %v3011_v32 = vor.u32 %v3010_v13, %v3007_v55 }
  0x63   : >> { %10753 = vst [vmem:[#allocation22_spill] sm:$0xff] %v8397_v46  ;;  %v6377_v14 = vcombine.low %v447_v31, %v457_v29  ;;  %v470_v40 = vrot.slane %v8397_v46, 5  ;;  %v8404_v62 = vshrl.u32 %v8386_v23, 16  ;;  %v3002_v41 = vsel %vm8166_vm7, %v2998_v9, %v3001_v59  ;;  %vm8451_vm10 = vmor %vm3564_vm8, %vm3565_vm9 }
  0x64   : >> { %v465_v42 = vor.u32 %v464_v36, %v461_v4  ;;  %v478_v45 = vshll.u32 %v278_v0, 16  ;;  %v3014_v24 = vshrl.u32 %v2381_v21, 16  ;;  %v3012_v29 = vsel %vm8166_vm7, %v3003_v57, %v3011_v32  ;;  %v8422_v57 = vld [vmem:[%s8098_s18 + $0x84] sm:$0xf] }
  0x65   : >> { %10754 = vst [vmem:[#allocation23_spill] sm:$0xff] %v8404_v62  ;;  %7030 = vmatprep.mubr.msk.bf16.mxu1 %vm726_vm5, %v6377_v14  ;;  %v474_v31 = vrot.slane %v8404_v62, 4  ;;  %v3017_v35 = vshll.u32 %v2381_v21, 16  ;;  %v3022_v8 = vrot.slane %v8404_v62, 6  ;;  %v6577_v55 = vcombine.low %v3002_v41, %v3012_v29  ;;  %v8435_v62 = vld [vmem:[%s8098_s18] sm:$0x8] }
  0x66   : >> { %v466_v9 = vrot.slane %v465_v42, 4  ;;  %v480_v59 = vrot.slane %v478_v45, 5  ;;  %v3016_v0 = vrot.slane %v3014_v24, 6  ;;  %v3023_v36 = vrot.slane %v8397_v46, 7 }
  0x67   : >> { %v475_v13 = vor.u32 %v474_v31, %v470_v40  ;;  %v3019_v4 = vrot.slane %v3017_v35, 7  ;;  %v3028_v14 = vshrl.u32 %v8409_v25, 16  ;;  %7200 = vmatprep.mubr.msk.bf16.mxu0 %vm726_vm5, %v6577_v55  ;;  %v3031_v32 = vshll.u32 %v8409_v25, 16  ;;  %v279_v35 = vld [vmem:[%s8098_s18 + $0x88] sm:$0x1] }
  0x68   : >> { %v471_v21 = vsel %vm8149_vm6, %v466_v9, %v470_v40  ;;  %v483_v41 = vshrl.u32 %v8417_v49, 16  ;;  %v486_v42 = vshll.u32 %v8417_v49, 16  ;;  %v3024_v29 = vor.u32 %v3023_v36, %v3022_v8 }
  0x69   : >> { %v476_v45 = vrot.slane %v475_v13, 4  ;;  %v3020_v24 = vor.u32 %v3019_v4, %v3016_v0  ;;  %v3030_v31 = vrot.slane %v3028_v14, 6  ;;  %v3033_v47 = vrot.slane %v3031_v32, 7  ;;  %v8444_v14 = vld [vmem:[%s8098_s18 + $0x90] sm:$0xf] }
  0x6a   : >> { %v485_v3 = vrot.slane %v483_v41, 4  ;;  %v488_v46 = vrot.slane %v486_v42, 5  ;;  %v8432_v55 = vshll.u32 %v8422_v57, 16  ;;  %v3026_v15 = vrot.slane %v3024_v29, 4 }
  0x6b   : >> { %v481_v40 = vsel %vm8149_vm6, %v476_v45, %v480_v59  ;;  %v3021_v9 = vrot.slane %v3020_v24, 4  ;;  %v8440_v13 = vshrl.u32 %v8422_v57, 16  ;;  %v3034_v0 = vor.u32 %v3033_v47, %v3030_v31  ;;  %v8462_v24 = vld [vmem:[%s8098_s18 + $0x94] sm:$0xf] }
  0x6c   : >> { %10755 = vst [vmem:[#allocation24_spill] sm:$0xff] %v8432_v55  ;;  %v6378_v8 = vcombine.low %v471_v21, %v481_v40  ;;  %v489_v4 = vor.u32 %v488_v46, %v485_v3  ;;  %v494_v36 = vrot.slane %v8432_v55, 5  ;;  %v502_v41 = vshll.u32 %v279_v35, 16  ;;  %v280_v40 = vld [vmem:[%s8098_s18 + $0x98] sm:$0x1] }
  0x6d   : >> { %10756 = vst [vmem:[#allocation25_spill] sm:$0xff] %v8440_v13  ;;  %v3025_v32 = vsel %vm8166_vm7, %v3021_v9, %v3024_v29  ;;  %v498_v59 = vrot.slane %v8440_v13, 4  ;;  %v6603_v3 = vrot.slane %v8435_v62, 11  ;;  %v3035_v47 = vsel %vm8166_vm7, %v3026_v15, %v3034_v0  ;;  %v8467_v55 = vld [vmem:[%s8098_s18 + $0x10] sm:$0x8] }
  0x6e   : >> { %7031 = vmatmul.mubr.msk.bf16.gmra.mrb[12].mxu1 %vm726_vm5, %v6378_v8  ;;  %v490_v46 = vrot.slane %v489_v4, 4  ;;  %v3569_v21 = vrot.slane %v8109_v2, 7  ;;  %v3572_v45 = vrot.slane %v8140_v20, 7  ;;  %v6578_v29 = vcombine.low %v3025_v32, %v3035_v47  ;;  %v8492_v13 = vld [vmem:[%s8098_s18 + $0xa4] sm:$0xf] }
  0x6f   : >> { %v499_v31 = vor.u32 %v498_v59, %v494_v36  ;;  %v504_v35 = vrot.slane %v502_v41, 5  ;;  %v507_v9 = vshrl.u32 %v8444_v14, 16  ;;  %v510_v20 = vshll.u32 %v8444_v14, 16 }
  0x70   : >> { %v495_v8 = vsel %vm8149_vm6, %v490_v46, %v494_v36  ;;  %v3570_v15 = vsel %vm8451_vm10, %v6603_v3, %v3569_v21  ;;  %v3571_v0 = vrot.slane %v3569_v21, 4  ;;  %7201 = vmatmul.mubr.msk.bf16.gmra.mrb[12].mxu0 %vm726_vm5, %v6578_v29  ;;  %v8476_v59 = vshll.u32 %v8462_v24, 16  ;;  %v8485_v21 = vld [vmem:[%s8098_s18 + $0xa0] sm:$0xf] }
  0x71   : >> { %v500_v4 = vrot.slane %v499_v31, 4  ;;  %v509_v32 = vrot.slane %v507_v9, 4  ;;  %v8479_v41 = vshrl.u32 %v8462_v24, 16  ;;  %v512_v47 = vrot.slane %v510_v20, 5 }
  0x72   : >> { %10759 = vst [vmem:[#allocation26_spill] sm:$0xff] %v8476_v59  ;;  %v3573_v36 = vsel %vm8451_vm10, %v3571_v0, %v3572_v45  ;;  %v526_v3 = vshll.u32 %v280_v40, 16  ;;  %v6604_v46 = vrot.slane %v8467_v55, 11  ;;  %v518_v9 = vrot.slane %v8476_v59, 5 }
  0x73   : >> { %10760 = vst [vmem:[#allocation27_spill] sm:$0xff] %v8479_v41  ;;  %v505_v29 = vsel %vm8149_vm6, %v500_v4, %v504_v35  ;;  %v6621_v31 = vcombine.low %v3570_v15, %v3573_v36  ;;  %v522_v44 = vrot.slane %v8479_v41, 4  ;;  %v513_v53 = vor.u32 %v512_v47, %v509_v32  ;;  %v281_v35 = vld [vmem:[%s8098_s18 + $0xa8] sm:$0x1] }
  0x74   : >> { %v6379_v50 = vcombine.low %v495_v8, %v505_v29  ;;  %v528_v45 = vrot.slane %v526_v3, 5  ;;  %v3576_v0 = vrot.slane %v8160_v38, 7  ;;  %v4367_v20 = vsel %vm775_vm0, %v8285_v39, 0  ;;  %v8511_v29 = vld [vmem:[%s8098_s18 + $0x20] sm:$0x8] }
  0x75   : >> { %7222 = vmatprep.mubr.msk.bf16.mxu0 %vm726_vm5, %v6621_v31  ;;  %v523_v40 = vor.u32 %v522_v44, %v518_v9  ;;  %v531_v15 = vshrl.u32 %v8485_v21, 16  ;;  %v534_v4 = vshll.u32 %v8485_v21, 16  ;;  %v514_v8 = vrot.slane %v513_v53, 4 }
  0x76   : >> { %7034 = vmatprep.mubr.msk.bf16.mxu1 %vm726_vm5, %v6379_v50  ;;  %v3577_v32 = vsel %vm8451_vm10, %v6604_v46, %v3576_v0  ;;  %v3578_v38 = vrot.slane %v3576_v0, 4  ;;  %v8505_v36 = vshll.u32 %v8492_v13, 16  ;;  %v8508_v3 = vshrl.u32 %v8492_v13, 16 }
  0x77   : >> { %v524_v44 = vrot.slane %v523_v40, 4  ;;  %v533_v47 = vrot.slane %v531_v15, 4  ;;  %v536_v39 = vrot.slane %v534_v4, 5  ;;  %v519_v53 = vsel %vm8149_vm6, %v514_v8, %v518_v9  ;;  %v8521_v40 = vld [vmem:[%s8098_s18 + $0xb0] sm:$0xf] }
  0x78   : >> { %10761 = vst [vmem:[#allocation28_spill] sm:$0xff] %v8505_v36  ;;  %10762 = vst [vmem:[#allocation29_spill] sm:$0xff] %v8508_v3  ;;  %v10763_v50 = vrot.slane %v8195_v5, 7  ;;  %v542_v31 = vrot.slane %v8505_v36, 5  ;;  %v550_v0 = vshll.u32 %v281_v35, 16  ;;  %v546_v41 = vrot.slane %v8508_v3, 4 }
  0x79   : >> { %v529_v15 = vsel %vm8149_vm6, %v524_v44, %v528_v45  ;;  %v537_v59 = vor.u32 %v536_v39, %v533_v47  ;;  %v6605_v8 = vrot.slane %v8511_v29, 11  ;;  %v8532_v35 = vld [vmem:[%s8103_s23 + $0x10] sm:$0x3]  ;;  %v3586_v45 = vrot.slane %v8232_v63, 7 }
  0x7a   : >> { %v3580_v46 = vsel %vm8451_vm10, %v3578_v38, %v10763_v50  ;;  %v6380_v9 = vcombine.low %v519_v53, %v529_v15  ;;  %v552_v5 = vrot.slane %v550_v0, 5  ;;  %v3583_v38 = vrot.slane %v8210_v30, 7 }
  0x7b   : >> { %v6622_v4 = vcombine.low %v3577_v32, %v3580_v46  ;;  %v538_v50 = vrot.slane %v537_v59, 4  ;;  %v547_v36 = vor.u32 %v546_v41, %v542_v31  ;;  %v282_v32 = vld [vmem:[%s8098_s18 + $0xb8] sm:$0x1]  ;;  %v555_v44 = vshrl.u32 %v8521_v40, 16  ;;  %v8546_v59 = vld [vmem:[%s8098_s18 + $0x30] sm:$0x8] }
  0x7c   : >> { %7035 = vmatmul.mubr.msk.bf16.gmra.mrb[16].mxu1 %vm726_vm5, %v6380_v9  ;;  %v3584_v47 = vsel %vm8451_vm10, %v6605_v8, %v3583_v38  ;;  %v3585_v39 = vrot.slane %v3583_v38, 4  ;;  %v558_v30 = vshll.u32 %v8521_v40, 16  ;;  %v8543_v53 = vshll.u32 %v8527_v16, 16  ;;  %v8559_v8 = vld [vmem:[%s8098_s18 + $0xc0] sm:$0xf] }
  0x7d   : >> { %7223 = vmatmul.mubr.msk.bf16.vlgmr.msra.gmra.mrb[0].mxu0 %vm726_vm5, %v6622_v4  ;;  %v543_v63 = vsel %vm8149_vm6, %v538_v50, %v542_v31  ;;  %v548_v41 = vrot.slane %v547_v36, 4  ;;  %v557_v46 = vrot.slane %v555_v44, 4  ;;  %v8551_v0 = vshrl.u32 %v8527_v16, 16  ;;  %10766 = vst [vmem:[#allocation32_spill] sm:$0xff] %v8559_v8  ;;  %v8566_v44 = vld [vmem:[%s8098_s18 + $0xc4] sm:$0xf] }
  0x7e   : >> { %7255 = vmatpush3.bf16.msra.mxu0 %v4367_v20  ;;  %10764 = vst [vmem:[#allocation30_spill] sm:$0xff] %v8543_v53  ;;  %v3587_v20 = vsel %vm8451_vm10, %v3585_v39, %v3586_v45  ;;  %v560_v15 = vrot.slane %v558_v30, 5  ;;  %v566_v4 = vrot.slane %v8543_v53, 5  ;;  %v574_v9 = vshll.u32 %v282_v32, 16  ;;  %v283_v53 = vld [vmem:[%s8098_s18 + $0xc8] sm:$0x1] }
  0x7f   : >> { %10765 = vst [vmem:[#allocation31_spill] sm:$0xff] %v8551_v0  ;;  %7721 = vmatprep.subr.msk.bf16.mxu0 %vm775_vm0, %v8532_v35  ;;  %v553_v36 = vsel %vm8149_vm6, %v548_v41, %v552_v5  ;;  %v6623_v31 = vcombine.low %v3584_v47, %v3587_v20  ;;  %v570_v38 = vrot.slane %v8551_v0, 4  ;;  %v6606_v50 = vrot.slane %v8546_v59, 11 }
  0x80   : >> { %v6381_v3 = vcombine.low %v543_v63, %v553_v36  ;;  %v561_v37 = vor.u32 %v560_v15, %v557_v46  ;;  %v576_v45 = vrot.slane %v574_v9, 5  ;;  %v3590_v39 = vrot.slane %v8241_v22, 7 }
  0x81   : >> { %7226 = vmatprep.mubr.msk.bf16.mxu0 %vm726_vm5, %v6623_v31  ;;  %v571_v32 = vor.u32 %v570_v38, %v566_v4  ;;  %v3593_v30 = vrot.slane %v8259_v58, 7  ;;  %v579_v5 = vshrl.u32 %v8559_v8, 16  ;;  %v582_v47 = vshll.u32 %v8559_v8, 16  ;;  %v8584_v31 = vld [vmem:[%s8098_s18 + $0x40] sm:$0x8] }
  0x82   : >> { %7038 = vmatprep.mubr.msk.bf16.mxu1 %vm726_vm5, %v6381_v3  ;;  %v562_v41 = vrot.slane %v561_v37, 4  ;;  %v3591_v63 = vsel %vm8451_vm10, %v6606_v50, %v3590_v39  ;;  %v3592_v46 = vrot.slane %v3590_v39, 4  ;;  %v8578_v20 = vshll.u32 %v8566_v44, 16  ;;  %10769 = vst [vmem:[#allocation35_spill] sm:$0xff] %v8584_v31  ;;  %v8592_v39 = vld [vmem:[%s8098_s18 + $0xd0] sm:$0xf] }
  0x83   : >> { %v572_v15 = vrot.slane %v571_v32, 4  ;;  %v581_v9 = vrot.slane %v579_v5, 4  ;;  %v584_v58 = vrot.slane %v582_v47, 5  ;;  %v8581_v36 = vshrl.u32 %v8566_v44, 16  ;;  %10770 = vst [vmem:[#allocation36_spill] sm:$0xff] %v8592_v39 }
  0x84   : >> { %10767 = vst [vmem:[#allocation33_spill] sm:$0xff] %v8578_v20  ;;  %v567_v3 = vsel %vm8149_vm6, %v562_v41, %v566_v4  ;;  %v3594_v37 = vsel %vm8451_vm10, %v3592_v46, %v3593_v30  ;;  %v590_v38 = vrot.slane %v8578_v20, 5  ;;  %v598_v50 = vshll.u32 %v283_v53, 16 }
  0x85   : >> { %10768 = vst [vmem:[#allocation34_spill] sm:$0xff] %v8581_v36  ;;  %v577_v32 = vsel %vm8149_vm6, %v572_v15, %v576_v45  ;;  %v6624_v5 = vcombine.low %v3591_v63, %v3594_v37  ;;  %v585_v47 = vor.u32 %v584_v58, %v581_v9  ;;  %v594_v0 = vrot.slane %v8581_v36, 4  ;;  %v284_v45 = vld [vmem:[%s8098_s18 + $0xd8] sm:$0x1]  ;;  %v8614_v37 = vld [vmem:[%s8098_s18 + $0x50] sm:$0x8] }
  0x86   : >> { %v6382_v4 = vcombine.low %v567_v3, %v577_v32  ;;  %v600_v41 = vrot.slane %v598_v50, 5  ;;  %v6607_v30 = vrot.slane %v8584_v31, 11  ;;  %v3597_v46 = vrot.slane %v8270_v18, 7  ;;  %10772 = vst [vmem:[#allocation38_spill] sm:$0xff] %v8614_v37 }
  0x87   : >> { %7227 = vmatmul.mubr.msk.bf16.gmra.mrb[4].mxu0 %vm726_vm5, %v6624_v5  ;;  %v586_v53 = vrot.slane %v585_v47, 4  ;;  %v595_v20 = vor.u32 %v594_v0, %v590_v38  ;;  %v3600_v8 = vrot.slane %v8299_v6, 7  ;;  %v603_v63 = vshrl.u32 %v8592_v39, 16 }
  0x88   : >> { %7039 = vmatmul.mubr.msk.bf16.gmra.mrb[20].mxu1 %vm726_vm5, %v6382_v4  ;;  %v3598_v15 = vsel %vm8451_vm10, %v6607_v30, %v3597_v46  ;;  %v3599_v9 = vrot.slane %v3597_v46, 4  ;;  %v606_v58 = vshll.u32 %v8592_v39, 16  ;;  %v8611_v3 = vshll.u32 %v8598_v60, 16  ;;  %v8625_v46 = vld [vmem:[%s8098_s18 + $0xe0] sm:$0xf] }
  0x89   : >> { %v591_v6 = vsel %vm8149_vm6, %v586_v53, %v590_v38  ;;  %v596_v0 = vrot.slane %v595_v20, 4  ;;  %v605_v50 = vrot.slane %v603_v63, 4  ;;  %v8619_v32 = vshrl.u32 %v8598_v60, 16  ;;  %10774 = vst [vmem:[#allocation40_spill] sm:$0xff] %v8625_v46  ;;  %v8632_v53 = vld [vmem:[%s8098_s18 + $0xe4] sm:$0xf] }
  0x8a   : >> { %10771 = vst [vmem:[#allocation37_spill] sm:$0xff] %v8611_v3  ;;  %v3601_v5 = vsel %vm8451_vm10, %v3599_v9, %v3600_v8  ;;  %v608_v47 = vrot.slane %v606_v58, 5  ;;  %v614_v4 = vrot.slane %v8611_v3, 5  ;;  %v622_v30 = vshll.u32 %v284_v45, 16  ;;  %v285_v3 = vld [vmem:[%s8098_s18 + $0xe8] sm:$0x1] }
  0x8b   : >> { %10773 = vst [vmem:[#allocation39_spill] sm:$0xff] %v8619_v32  ;;  %v601_v36 = vsel %vm8149_vm6, %v596_v0, %v600_v41  ;;  %v6625_v39 = vcombine.low %v3598_v15, %v3601_v5  ;;  %v618_v20 = vrot.slane %v8619_v32, 4  ;;  %v6608_v38 = vrot.slane %v8614_v37, 11 }
  0x8c   : >> { %v6383_v63 = vcombine.low %v591_v6, %v601_v36  ;;  %v609_v31 = vor.u32 %v608_v47, %v605_v50  ;;  %v624_v8 = vrot.slane %v622_v30, 5  ;;  %v3604_v9 = vrot.slane %v8310_v26, 7  ;;  %v8650_v30 = vld [vmem:[%s8098_s18 + $0x60] sm:$0x8] }
  0x8d   : >> { %7230 = vmatprep.mubr.msk.bf16.mxu0 %vm726_vm5, %v6625_v39  ;;  %v619_v45 = vor.u32 %v618_v20, %v614_v4  ;;  %v3607_v58 = vrot.slane %v8335_v33, 7  ;;  %v627_v41 = vshrl.u32 %v8625_v46, 16  ;;  %v630_v15 = vshll.u32 %v8625_v46, 16  ;;  %10777 = vst [vmem:[#allocation43_spill] sm:$0xff] %v8650_v30  ;;  %v8664_v46 = vld [vmem:[%s8098_s18 + $0xf4] sm:$0xf] }
  0x8e   : >> { %7042 = vmatprep.mubr.msk.bf16.mxu1 %vm726_vm5, %v6383_v63  ;;  %v610_v0 = vrot.slane %v609_v31, 4  ;;  %v3605_v36 = vsel %vm8451_vm10, %v6608_v38, %v3604_v9  ;;  %v3606_v6 = vrot.slane %v3604_v9, 4  ;;  %v8644_v50 = vshll.u32 %v8632_v53, 16  ;;  %v8658_v9 = vld [vmem:[%s8098_s18 + $0xf0] sm:$0xf] }
  0x8f   : >> { %v620_v39 = vrot.slane %v619_v45, 4  ;;  %v629_v5 = vrot.slane %v627_v41, 4  ;;  %v632_v33 = vrot.slane %v630_v15, 5  ;;  %v8647_v47 = vshrl.u32 %v8632_v53, 16  ;;  %10778 = vst [vmem:[#allocation44_spill] sm:$0xff] %v8658_v9 }
  0x90   : >> { %10775 = vst [vmem:[#allocation41_spill] sm:$0xff] %v8644_v50  ;;  %v615_v20 = vsel %vm8149_vm6, %v610_v0, %v614_v4  ;;  %v3608_v31 = vsel %vm8451_vm10, %v3606_v6, %v3607_v58  ;;  %v638_v38 = vrot.slane %v8644_v50, 5  ;;  %v646_v63 = vshll.u32 %v285_v3, 16 }
  0x91   : >> { %10776 = vst [vmem:[#allocation42_spill] sm:$0xff] %v8647_v47  ;;  %v625_v45 = vsel %vm8149_vm6, %v620_v39, %v624_v8  ;;  %v6626_v41 = vcombine.low %v3605_v36, %v3608_v31  ;;  %v633_v15 = vor.u32 %v632_v33, %v629_v5  ;;  %v642_v32 = vrot.slane %v8647_v47, 4  ;;  %v286_v8 = vld [vmem:[%s8098_s18 + $0xf8] sm:$0x1]  ;;  %v8680_v31 = vld [vmem:[%s8098_s18 + $0x70] sm:$0x8] }
  0x92   : >> { %v6384_v4 = vcombine.low %v615_v20, %v625_v45  ;;  %v648_v0 = vrot.slane %v646_v63, 5  ;;  %v6609_v58 = vrot.slane %v8650_v30, 11  ;;  %v3611_v6 = vrot.slane %v8346_v54, 7 }
  0x93   : >> { %7231 = vmatmul.mubr.msk.bf16.gmra.mrb[8].mxu0 %vm726_vm5, %v6626_v41  ;;  %v634_v3 = vrot.slane %v633_v15, 4  ;;  %v643_v50 = vor.u32 %v642_v32, %v638_v38  ;;  %v3614_v37 = vrot.slane %v8367_v61, 7  ;;  %v651_v36 = vshrl.u32 %v8658_v9, 16 }
  0x94   : >> { %7043 = vmatmul.mubr.msk.bf16.gmra.mrb[24].mxu1 %vm726_vm5, %v6384_v4  ;;  %v3612_v39 = vsel %vm8451_vm10, %v6609_v58, %v3611_v6  ;;  %v3613_v5 = vrot.slane %v3611_v6, 4  ;;  %v654_v33 = vshll.u32 %v8658_v9, 16  ;;  %v8677_v20 = vshll.u32 %v8664_v46, 16  ;;  %v8691_v6 = vld [vmem:[%s8098_s18 + $0x80] sm:$0x8] }
  0x95   : >> { %v639_v61 = vsel %vm8149_vm6, %v634_v3, %v638_v38  ;;  %v644_v32 = vrot.slane %v643_v50, 4  ;;  %v653_v63 = vrot.slane %v651_v36, 4  ;;  %v8685_v45 = vshrl.u32 %v8664_v46, 16  ;;  %v2841_v3 = vld [vmem:[%s8098_s18 + $0x88] sm:$0x7] }
  0x96   : >> { %10779 = vst [vmem:[#allocation45_spill] sm:$0xff] %v8677_v20  ;;  %v3615_v41 = vsel %vm8451_vm10, %v3613_v5, %v3614_v37  ;;  %v656_v15 = vrot.slane %v654_v33, 5  ;;  %v662_v4 = vrot.slane %v8677_v20, 5  ;;  %v670_v58 = vshll.u32 %v286_v8, 16 }
  0x97   : >> { %10780 = vst [vmem:[#allocation46_spill] sm:$0xff] %v8685_v45  ;;  %v649_v47 = vsel %vm8149_vm6, %v644_v32, %v648_v0  ;;  %v6627_v9 = vcombine.low %v3612_v39, %v3615_v41  ;;  %v666_v38 = vrot.slane %v8685_v45, 4  ;;  %v6610_v50 = vrot.slane %v8680_v31, 11 }
  0x98   : >> { %v6385_v36 = vcombine.low %v639_v61, %v649_v47  ;;  %v657_v30 = vor.u32 %v656_v15, %v653_v63  ;;  %v672_v34 = vrot.slane %v670_v58, 5  ;;  %v3618_v37 = vrot.slane %v8386_v23, 7  ;;  %v8712_v15 = vld [vmem:[%s8098_s18 + $0x14] sm:$0xf] }
  0x99   : >> { %7234 = vmatprep.mubr.msk.bf16.mxu0 %vm726_vm5, %v6627_v9  ;;  %v667_v8 = vor.u32 %v666_v38, %v662_v4  ;;  %v3621_v0 = vrot.slane %v8409_v25, 7  ;;  %v6611_v39 = vrot.slane %v8691_v6, 11  ;;  %v3625_v5 = vrot.slane %v8422_v57, 7  ;;  %v8709_v25 = vld [vmem:[%s8098_s18 + $0x10] sm:$0xf] }
  0x9a   : >> { %7046 = vmatprep.mubr.msk.bf16.mxu1 %vm726_vm5, %v6385_v36  ;;  %v658_v47 = vrot.slane %v657_v30, 4  ;;  %v3619_v33 = vsel %vm8451_vm10, %v6610_v50, %v3618_v37  ;;  %v3620_v61 = vrot.slane %v3618_v37, 4  ;;  %v3628_v32 = vrot.slane %v2841_v3, 7  ;;  %v2842_v30 = vld [vmem:[%s8098_s18 + $0x98] sm:$0x7] }
  0x9b   : >> { %v668_v63 = vrot.slane %v667_v8, 4  ;;  %v3626_v9 = vsel %vm8451_vm10, %v6611_v39, %v3625_v5  ;;  %v3627_v41 = vrot.slane %v3625_v5, 4  ;;  %v8718_v38 = vld [vmem:[%s8098_s18 + $0x90] sm:$0x8]  ;;  %v8726_v36 = vsel %vm775_vm0, %v8370_v17, 0 }
  0x9c   : >> { %v663_v50 = vsel %vm8149_vm6, %v658_v47, %v662_v4  ;;  %v3622_v3 = vsel %vm8451_vm10, %v3620_v61, %v3621_v0  ;;  %v3074_v37 = vshrl.u32 %v2842_v30, 16  ;;  %v3077_v58 = vshll.u32 %v2842_v30, 16  ;;  %v2843_v4 = vld [vmem:[%s8098_s18 + $0xa8] sm:$0x7]  ;;  %v8734_v47 = vld [vmem:[%s8098_s18 + $0xa0] sm:$0x8] }
  0x9d   : >> { %v673_v8 = vsel %vm8149_vm6, %v668_v63, %v672_v34  ;;  %v6628_v39 = vcombine.low %v3619_v33, %v3622_v3  ;;  %v3629_v5 = vsel %vm8451_vm10, %v3627_v41, %v3628_v32  ;;  %10781 = vst [vmem:[#allocation47_spill] sm:$0xff] %v8734_v47  ;;  %v6612_v17 = vrot.slane %v8718_v38, 11  ;;  %v7824_v63 = vld [vmem:[%s8098_s18 + $0x20] sm:$0xf]  ;;  %v8748_v41 = vld [vmem:[%s8098_s18 + $0x24] sm:$0xf] }
  0x9e   : >> { %v6386_v0 = vcombine.low %v663_v50, %v673_v8  ;;  %v6629_v61 = vcombine.low %v3626_v9, %v3629_v5  ;;  %v8736_v20 = vrot.slane %v3074_v37, 6  ;;  %v8743_v34 = vrot.slane %v3077_v58, 7  ;;  %10785 = vst [vmem:[#allocation51_spill] sm:$0xff] %v8748_v41  ;;  %v2844_v50 = vld [vmem:[%s8098_s18 + $0xb8] sm:$0x7] }
  0x9f   : >> { %7235 = vmatmul.mubr.msk.bf16.gmra.mrb[12].mxu0 %vm726_vm5, %v6628_v39  ;;  %v3632_v33 = vrot.slane %v8462_v24, 7  ;;  %v3635_v32 = vrot.slane %v2842_v30, 7  ;;  %v6405_v9 = vcombine.low %v7824_v63, %v8748_v41  ;;  %v6613_v3 = vrot.slane %v8734_v47, 11  ;;  %v8757_v8 = vld [vmem:[%s8098_s18 + $0x30] sm:$0xf] }
  0xa0   : >> { %10782 = vst [vmem:[#allocation48_spill] sm:$0xff] %v8736_v20  ;;  %10784 = vst [vmem:[#allocation50_spill] sm:$0xff] %v8743_v34  ;;  %7047 = vmatmul.mubr.msk.bf16.gmra.mrb[28].mxu1 %vm726_vm5, %v6386_v0  ;;  %7238 = vmatprep.mubr.msk.bf16.mxu0 %vm726_vm5, %v6629_v61  ;;  %v3639_v37 = vrot.slane %v8492_v13, 7  ;;  %v3642_v58 = vrot.slane %v2843_v4, 7  ;;  %v8762_v39 = vld [vmem:[%s8098_s18 + $0xc0] sm:$0x8]  ;;  %v10787_v5 = vcombine.low %v8106_v1, %v8109_v2 }
  0xa1   : >> { %10786 = vst [vmem:[#allocation52_spill] sm:$0xff] %v8762_v39  ;;  %v3633_v61 = vsel %vm8451_vm10, %v6612_v17, %v3632_v33  ;;  %v3634_v4 = vrot.slane %v3632_v33, 4  ;;  %v6614_v63 = vrot.slane %v8740_v28, 11  ;;  %v3646_v47 = vrot.slane %v8527_v16, 7  ;;  %v2845_v1 = vld [vmem:[%s8098_s18 + $0xc8] sm:$0x7] }
  0xa2   : >> { %7052 = vmatprep.mubr.msk.bf16.mxu1 %vm726_vm5, %v10787_v5  ;;  %v3640_v30 = vsel %vm8451_vm10, %v6613_v3, %v3639_v37  ;;  %v3641_v45 = vrot.slane %v3639_v37, 4  ;;  %v3649_v41 = vrot.slane %v2844_v50, 7  ;;  %v6615_v17 = vrot.slane %v8762_v39, 11  ;;  %v8784_v0 = vld [vmem:[%s8098_s18 + $0xd0] sm:$0x8] }
  0xa3   : >> { %v3636_v2 = vsel %vm8451_vm10, %v3634_v4, %v3635_v32  ;;  %v3653_v33 = vrot.slane %v8566_v44, 7  ;;  %v3647_v37 = vsel %vm8451_vm10, %v6614_v63, %v3646_v47  ;;  %v3648_v20 = vrot.slane %v3646_v47, 4  ;;  %v2846_v32 = vld [vmem:[%s8098_s18 + $0xd8] sm:$0x7]  ;;  %v8794_v28 = vld [vmem:[%s8098_s18 + $0xe0] sm:$0x8] }
  0xa4   : >> { %v6630_v3 = vcombine.low %v3633_v61, %v3636_v2  ;;  %v3643_v50 = vsel %vm8451_vm10, %v3641_v45, %v3642_v58  ;;  %v3656_v39 = vrot.slane %v2845_v1, 7  ;;  %v6616_v58 = vrot.slane %v8784_v0, 11  ;;  %v8804_v63 = vld [vmem:[%s8098_s18 + $0xf0] sm:$0x8] }
  0xa5   : >> { %v6631_v4 = vcombine.low %v3640_v30, %v3643_v50  ;;  %v3654_v5 = vsel %vm8451_vm10, %v6615_v17, %v3653_v33  ;;  %v3655_v34 = vrot.slane %v3653_v33, 4  ;;  %v3650_v61 = vsel %vm8451_vm10, %v3648_v20, %v3649_v41  ;;  %v2847_v30 = vld [vmem:[%s8098_s18 + $0xe8] sm:$0x7]  ;;  %v2848_v41 = vld [vmem:[%s8098_s18 + $0xf8] sm:$0x7] }
  0xa6   : >> { %v3660_v47 = vrot.slane %v8598_v60, 7  ;;  %v6632_v2 = vcombine.low %v3647_v37, %v3650_v61  ;;  %v3663_v17 = vrot.slane %v2846_v32, 7  ;;  %v8813_v33 = vld [vmem:[%s8103_s23 + $0x6] sm:$0x3]  ;;  %v10788_v50 = vcombine.low %v8709_v25, %v8712_v15 }
  0xa7   : >> { %7239 = vmatmul.mubr.msk.bf16.gmra.mrb[16].mxu0 %vm726_vm5, %v6630_v3  ;;  %v3657_v1 = vsel %vm8451_vm10, %v3655_v34, %v3656_v39  ;;  %v6617_v39 = vrot.slane %v8794_v28, 11  ;;  %v3667_v32 = vrot.slane %v8632_v53, 7  ;;  %v3670_v25 = vrot.slane %v2847_v30, 7 }
  0xa8   : >> { %7053 = vmatmul.mubr.msk.bf16.vlgmr.msra.gmra.mrb[0].mxu1 %vm726_vm5, %v10788_v50  ;;  %7242 = vmatprep.mubr.msk.bf16.mxu0 %vm726_vm5, %v6631_v4  ;;  %v6633_v3 = vcombine.low %v3654_v5, %v3657_v1  ;;  %v8822_v37 = vsel %vm8451_vm10, %v6616_v58, %v3660_v47  ;;  %v3662_v34 = vrot.slane %v3660_v47, 4  ;;  %v6618_v4 = vrot.slane %v8804_v63, 11 }
  0xa9   : >> { %7085 = vmatpush3.bf16.msra.mxu1 %v8726_v36  ;;  %7056 = vmatprep.mubr.msk.bf16.mxu1 %vm726_vm5, %v6405_v9  ;;  %v3674_v58 = vrot.slane %v8664_v46, 7  ;;  %v3677_v47 = vrot.slane %v2848_v41, 7  ;;  %v8839_v9 = vld [vmem:[%s8098_s18 + $0x8] sm:$0xf]  ;;  %v8847_v1 = vsel %vm8451_vm10, %v6617_v39, %v3667_v32  ;;  %vm3991_vm11 = vsmask.f32 256 }
  0xaa   : >> { %v8833_v5 = vsel %vm8451_vm10, %v3662_v34, %v3663_v17  ;;  %7715 = vmatprep.subr.msk.bf16.mxu1 %vm775_vm0, %v8813_v33  ;;  %v3669_v17 = vrot.slane %v3667_v32, 4  ;;  %vm3992_vm12 = vsmask.f32 4368  ;;  %v3995_v34 = vshrl.u32 %v8435_v62, 16 }
  0xab   : >> { %v6634_v30 = vcombine.low %v8822_v37, %v8833_v5  ;;  %v8851_v41 = vsel %vm8451_vm10, %v6618_v4, %v3674_v58  ;;  %v3676_v50 = vrot.slane %v3674_v58, 4  ;;  %v3999_v61 = vrot.slane %v8128_v11, 7  ;;  %v8860_v5 = vld [vmem:[%s8098_s18 + $0x18] sm:$0xf]  ;;  %vm8867_vm13 = vmor %vm3991_vm11, %vm3992_vm12 }
  0xac   : >> { %v3671_v36 = vsel %vm8451_vm10, %v3669_v17, %v3670_v25  ;;  %v4004_v37 = vshrl.u32 %v8839_v9, 16  ;;  %v4007_v39 = vshll.u32 %v8839_v9, 16  ;;  %v6653_v25 = vrot.slane %v3995_v34, 11  ;;  %v8887_v17 = vld [vmem:[%s8098_s18 + $0x28] sm:$0xf] }
  0xad   : >> { %v6635_v32 = vcombine.low %v8847_v1, %v3671_v36  ;;  %v8865_v4 = vsel %vm8451_vm10, %v3676_v50, %v3677_v47  ;;  %v4000_v36 = vor.u32 %v3999_v61, %v8125_v10  ;;  %v4002_v1 = vrot.slane %v3999_v61, 4 }
  0xae   : >> { %v4006_v42 = vrot.slane %v4004_v37, 7  ;;  %v10791_v47 = vcombine.low %v8757_v8, %v8241_v22  ;;  %v4012_v50 = vshrl.u32 %v8467_v55, 16  ;;  %v4016_v34 = vrot.slane %v8179_v56, 7 }
  0xaf   : >> { %7243 = vmatmul.mubr.msk.bf16.gmra.mrb[20].mxu0 %vm726_vm5, %v6632_v2  ;;  %v4021_v2 = vshrl.u32 %v8860_v5, 16  ;;  %v4024_v58 = vshll.u32 %v8860_v5, 16  ;;  %v10792_v61 = vcombine.low %v8266_v7, %v8270_v18  ;;  %v4001_v22 = vsel %vm8867_vm13, %v6653_v25, %v4000_v36 }
  0xb0   : >> { %7057 = vmatmul.mubr.msk.bf16.gmra.mrb[4].mxu1 %vm726_vm5, %v10791_v47  ;;  %7246 = vmatprep.mubr.msk.bf16.mxu0 %vm726_vm5, %v6633_v3  ;;  %v4009_v8 = vor.u32 %v4007_v39, %v4006_v42  ;;  %v8897_v55 = vsel %vm775_vm0, %v8532_v35, 0  ;;  %v6654_v37 = vrot.slane %v4012_v50, 11  ;;  %v4017_v47 = vor.u32 %v4016_v34, %v8176_v52  ;;  %v10801_v3 = vld [vmem:[#allocation38_spill] sm:$0xff] }
  0xb1   : >> { %7060 = vmatprep.mubr.msk.bf16.mxu1 %vm726_vm5, %v10792_v61  ;;  %v4019_v20 = vrot.slane %v4016_v34, 4  ;;  %v4023_v45 = vrot.slane %v4021_v2, 7  ;;  %v4029_v18 = vshrl.u32 %v8511_v29, 16  ;;  %v4033_v25 = vrot.slane %v8222_v27, 7  ;;  %v8911_v61 = vld [vmem:[%s8098_s18 + $0x38] sm:$0xf] }
  0xb2   : >> { %v4010_v7 = vsel %vm8867_vm13, %v4002_v1, %v4009_v8  ;;  %v4038_v39 = vshrl.u32 %v8887_v17, 16  ;;  %v4018_v35 = vsel %vm8867_vm13, %v6654_v37, %v4017_v47  ;;  %v4041_v50 = vshll.u32 %v8887_v17, 16 }
  0xb3   : >> { %v6671_v36 = vcombine.low %v4001_v22, %v4010_v7  ;;  %v4026_v42 = vor.u32 %v4024_v58, %v4023_v45  ;;  %v6655_v34 = vrot.slane %v4029_v18, 11  ;;  %v4034_v2 = vor.u32 %v4033_v25, %v8219_v48  ;;  %v10805_v48 = vld [vmem:[#allocation40_spill] sm:$0xff] }
  0xb4   : >> { %v4036_v1 = vrot.slane %v4033_v25, 4  ;;  %v4040_v8 = vrot.slane %v4038_v39, 7  ;;  %v4046_v7 = vshrl.u32 %v8546_v59, 16  ;;  %v4050_v45 = vrot.slane %v8253_v51, 7  ;;  %v8927_v25 = vld [vmem:[%s8098_s18 + $0x48] sm:$0xf] }
  0xb5   : >> { %v4027_v29 = vsel %vm8867_vm13, %v4019_v20, %v4026_v42  ;;  %v4035_v37 = vsel %vm8867_vm13, %v6655_v34, %v4034_v2  ;;  %v4055_v18 = vshrl.u32 %v8911_v61, 16  ;;  %v10793_v20 = vcombine.low %v8307_v12, %v8310_v26  ;;  %v10796_v26 = vld [vmem:[#allocation32_spill] sm:$0xff] }
  0xb6   : >> { %v8921_v58 = vcombine.low %v4018_v35, %v4027_v29  ;;  %v4043_v47 = vor.u32 %v4041_v50, %v4040_v8  ;;  %v6656_v59 = vrot.slane %v4046_v7, 11  ;;  %v4053_v35 = vrot.slane %v4050_v45, 4  ;;  %v10797_v8 = vld [vmem:[#allocation35_spill] sm:$0xff] }
  0xb7   : >> { %7247 = vmatmul.mubr.msk.bf16.gmra.mrb[24].mxu0 %vm726_vm5, %v6634_v30  ;;  %v10794_v30 = vld [vmem:[#allocation14_spill] sm:$0xff]  ;;  %v4058_v42 = vshll.u32 %v8911_v61, 16  ;;  %v10795_v50 = vcombine.low %v8343_v43, %v8346_v54  ;;  %v4057_v12 = vrot.slane %v4055_v18, 7  ;;  %v4072_v43 = vshrl.u32 %v8927_v25, 16  ;;  %v10799_v18 = vld [vmem:[#allocation36_spill] sm:$0xff] }
  0xb8   : >> { %7061 = vmatmul.mubr.msk.bf16.gmra.mrb[8].mxu1 %vm726_vm5, %v10793_v20  ;;  %7250 = vmatprep.mubr.msk.bf16.mxu0 %vm726_vm5, %v6635_v32  ;;  %v4051_v39 = vor.u32 %v4050_v45, %v10794_v30  ;;  %v4044_v34 = vsel %vm8867_vm13, %v4036_v1, %v4043_v47  ;;  %v4063_v32 = vshrl.u32 %v10797_v8, 16  ;;  %v10798_v45 = vld [vmem:[#allocation17_spill] sm:$0xff]  ;;  %v8952_v54 = vld [vmem:[%s8098_s18 + $0x58] sm:$0xf]  ;;  %v4075_v47 = vshll.u32 %v8927_v25, 16  ;;  %v10800_v8 = vld [vmem:[#allocation16_spill] sm:$0xff] }
  0xb9   : >> { %7064 = vmatprep.mubr.msk.bf16.mxu1 %vm726_vm5, %v10795_v50  ;;  %v8945_v29 = vcombine.low %v4035_v37, %v4044_v34  ;;  %v4067_v20 = vrot.slane %v10798_v45, 7  ;;  %v4060_v50 = vor.u32 %v4058_v42, %v4057_v12  ;;  %v4074_v22 = vrot.slane %v4072_v43, 7  ;;  %v10802_v45 = vld [vmem:[#allocation19_spill] sm:$0xff]  ;;  %v8965_v12 = vld [vmem:[%s8098_s18 + $0x68] sm:$0xf] }
  0xba   : >> { %v4052_v7 = vsel %vm8867_vm13, %v6656_v59, %v4051_v39  ;;  %v6657_v1 = vrot.slane %v4063_v32, 11  ;;  %v4080_v59 = vshrl.u32 %v10801_v3, 16  ;;  %v4084_v30 = vrot.slane %v10802_v45, 7 }
  0xbb   : >> { %v4068_v37 = vor.u32 %v4067_v20, %v10800_v8  ;;  %v4070_v34 = vrot.slane %v4067_v20, 4  ;;  %v4061_v39 = vsel %vm8867_vm13, %v4053_v35, %v4060_v50  ;;  %v4089_v51 = vshrl.u32 %v8952_v54, 16  ;;  %v10804_v35 = vld [vmem:[#allocation18_spill] sm:$0xff] }
  0xbc   : >> { %v4092_v42 = vshll.u32 %v8952_v54, 16  ;;  %v8967_v32 = vcombine.low %v4052_v7, %v4061_v39  ;;  %v4077_v20 = vor.u32 %v4075_v47, %v4074_v22  ;;  %v6658_v43 = vrot.slane %v4080_v59, 11  ;;  %v10810_v39 = vld [vmem:[#allocation20_spill] sm:$0xff] }
  0xbd   : >> { %v4069_v2 = vsel %vm8867_vm13, %v6657_v1, %v4068_v37  ;;  %v10803_v3 = vcombine.low %v8851_v41, %v8865_v4  ;;  %v4085_v50 = vor.u32 %v4084_v30, %v10804_v35  ;;  %v4087_v45 = vrot.slane %v4084_v30, 4  ;;  %v10807_v4 = vld [vmem:[#allocation43_spill] sm:$0xff]  ;;  %v10808_v1 = vld [vmem:[#allocation21_spill] sm:$0xff] }
  0xbe   : >> { %v4091_v8 = vrot.slane %v4089_v51, 7  ;;  %v10806_v7 = vcombine.low %v8378_v19, %v8386_v23  ;;  %v4078_v41 = vsel %vm8867_vm13, %v4070_v34, %v4077_v20  ;;  %v4097_v22 = vshrl.u32 %v10807_v4, 16  ;;  %v8998_v34 = vld [vmem:[%s8098_s18 + $0x78] sm:$0xf] }
  0xbf   : >> { %7251 = vmatmul.mubr.msk.bf16.gmra.mrb[28].mxu0 %vm726_vm5, %v10803_v3  ;;  %v4101_v47 = vrot.slane %v10808_v1, 7  ;;  %v4106_v30 = vshrl.u32 %v8965_v12, 16  ;;  %v10809_v51 = vcombine.low %v8417_v49, %v8422_v57  ;;  %v8992_v37 = vcombine.low %v4069_v2, %v4078_v41  ;;  %v10811_v57 = vld [vmem:[#allocation44_spill] sm:$0xff] }
  0xc0   : >> { %7065 = vmatmul.mubr.msk.bf16.gmra.mrb[12].mxu1 %vm726_vm5, %v10806_v7  ;;  %7256 = vmatprep.mubr.msk.bf16.mxu0 %vm726_vm5, %v6671_v36  ;;  %v4086_v19 = vsel %vm8867_vm13, %v6658_v43, %v4085_v50  ;;  %v4094_v23 = vor.u32 %v4092_v42, %v4091_v8  ;;  %v4109_v36 = vshll.u32 %v8965_v12, 16  ;;  %v6659_v59 = vrot.slane %v4097_v22, 11  ;;  %v10812_v50 = vld [vmem:[#allocation23_spill] sm:$0xff]  ;;  %v9018_v2 = vld [vmem:[%s8098_s18 + $0x88] sm:$0xf] }
  0xc1   : >> { %7068 = vmatprep.mubr.msk.bf16.mxu1 %vm726_vm5, %v10809_v51  ;;  %v4102_v20 = vor.u32 %v4101_v47, %v10810_v39  ;;  %v4104_v3 = vrot.slane %v4101_v47, 4  ;;  %v4108_v7 = vrot.slane %v4106_v30, 7  ;;  %v4114_v43 = vshrl.u32 %v8680_v31, 16  ;;  %v9013_v47 = vld [vmem:[%s8098_s18] sm:$0xe]  ;;  %v10813_v30 = vld [vmem:[#allocation22_spill] sm:$0xff] }
  0xc2   : >> { %v4095_v49 = vsel %vm8867_vm13, %v4087_v45, %v4094_v23  ;;  %v4118_v8 = vrot.slane %v10812_v50, 7  ;;  %v4123_v22 = vshrl.u32 %v8998_v34, 16  ;;  %v4126_v31 = vshll.u32 %v8998_v34, 16  ;;  %v9078_v50 = vld [vmem:[%s8098_s18 + $0x98] sm:$0xf] }
  0xc3   : >> { %v9007_v42 = vcombine.low %v4086_v19, %v4095_v49  ;;  %v4103_v41 = vsel %vm8867_vm13, %v6659_v59, %v4102_v20  ;;  %v4111_v4 = vor.u32 %v4109_v36, %v4108_v7  ;;  %v6660_v45 = vrot.slane %v4114_v43, 11  ;;  %v9023_v36 = vld [vmem:[%s8098_s18 + $0x10] sm:$0xe]  ;;  %10823 = vst [vmem:[#allocation35_spill] sm:$0xff] %v9078_v50 }
  0xc4   : >> { %v4119_v51 = vor.u32 %v4118_v8, %v10813_v30  ;;  %v4121_v23 = vrot.slane %v4118_v8, 4  ;;  %v4125_v49 = vrot.slane %v4123_v22, 7  ;;  %vm1280_vm14 = vcmask 1042432  }
  0xc5   : >> { %v4112_v19 = vsel %vm8867_vm13, %v4104_v3, %v4111_v4  ;;  %vm1281_vm15 = vcmask 1046532   ;;  %v10814_v7 = vmov 0  ;;  %v6435_v43 = vrot.slane %v9013_v47, 9  ;;  %v9037_v3 = vld [vmem:[%s8098_s18 + $0x4] sm:$0xf] }
  0xc6   : >> { %v9027_v59 = vcombine.low %v4103_v41, %v4112_v19  ;;  %v4120_v20 = vsel %vm8867_vm13, %v6660_v45, %v4119_v51  ;;  %vm9031_vm1 = vmor %vm1280_vm14, %vm1281_vm15  ;;  %v1285_v8 = vrot.slane %v9037_v3, 5  ;;  %v9041_v4 = vld [vmem:[%s8103_s23 + $0x12] sm:$0x3]  ;;  %v4128_v41 = vor.u32 %v4126_v31, %v4125_v49 }
  0xc7   : >> { %7257 = vmatmul.mubr.msk.bf16.vlgmr.msra.gmra.mrb[0].mxu0 %vm726_vm5, %v8921_v58  ;;  %v10815_v7 = vsel %vm9031_vm1, 4294967295, %v10814_v7  ;;  %v10817_v58 = vcombine.low %v8444_v14, %v8462_v24  ;;  %v4131_v22 = vshrl.u32 %v8691_v6, 16  ;;  %v10818_v45 = vld [vmem:[#allocation25_spill] sm:$0xff]  ;;  %v4140_v19 = vshrl.u32 %v9018_v2, 16 }
  0xc8   : >> { %10816 = vst [vmem:[#allocation32_spill] sm:$0xff] %v10815_v7  ;;  %7289 = vmatpush3.bf16.msra.mxu0 %v8897_v55  ;;  %v4135_v51 = vrot.slane %v10818_v45, 7  ;;  %v10819_v27 = vcombine.low %v8485_v21, %v8492_v13  ;;  %7260 = vmatprep.mubr.msk.bf16.mxu0 %vm726_vm5, %v8945_v29  ;;  %v9059_v14 = vsel %vm9031_vm1, %v6435_v43, %v1285_v8  ;;  %v1287_v24 = vrot.slane %v1285_v8, 4  ;;  %v10820_v21 = vld [vmem:[#allocation24_spill] sm:$0xff] }
  0xc9   : >> { %7069 = vmatmul.mubr.msk.bf16.gmra.mrb[16].mxu1 %vm726_vm5, %v10817_v58  ;;  %v4143_v6 = vshll.u32 %v9018_v2, 16  ;;  %v6436_v55 = vrot.slane %v9023_v36, 9  ;;  %v4129_v31 = vsel %vm8867_vm13, %v4121_v23, %v4128_v41  ;;  %v6661_v13 = vrot.slane %v4131_v22, 11  ;;  %7722 = vmatprep.subr.msk.bf16.mxu0 %vm775_vm0, %v9041_v4  ;;  %v10821_v58 = vld [vmem:[#allocation6_spill] sm:$0xff]  ;;  %v9081_v23 = vld [vmem:[%s8098_s18 + $0x20] sm:$0xe] }
  0xca   : >> { %7072 = vmatprep.mubr.msk.bf16.mxu1 %vm726_vm5, %v10819_v27  ;;  %v4136_v49 = vor.u32 %v4135_v51, %v10820_v21  ;;  %v4138_v27 = vrot.slane %v4135_v51, 4  ;;  %v9068_v29 = vcombine.low %v4120_v20, %v4129_v31  ;;  %v10822_v43 = vrot.slane %v10821_v58, 5  ;;  %10824 = vst [vmem:[#allocation36_spill] sm:$0xff] %v9081_v23  ;;  %v10825_v58 = vld [vmem:[#allocation27_spill] sm:$0xff] }
  0xcb   : >> { %v4142_v45 = vrot.slane %v4140_v19, 7  ;;  %v1292_v30 = vrot.slane %v8712_v15, 5  ;;  %v9089_v22 = vsel %vm775_vm0, %v8813_v33, 0  ;;  %v4148_v51 = vshrl.u32 %v8718_v38, 16  ;;  %v10826_v33 = vld [vmem:[#allocation10_spill] sm:$0xff] }
  0xcc   : >> { %v9074_v8 = vsel %vm9031_vm1, %v1287_v24, %v10822_v43  ;;  %v4137_v20 = vsel %vm8867_vm13, %v6661_v13, %v4136_v49  ;;  %v4152_v43 = vrot.slane %v10825_v58, 7  ;;  %v4157_v41 = vshrl.u32 %v9078_v50, 16  ;;  %v9112_v58 = vld [vmem:[%s8098_s18 + $0xa8] sm:$0xf] }
  0xcd   : >> { %v4145_v19 = vor.u32 %v4143_v6, %v4142_v45  ;;  %v9094_v24 = vsel %vm9031_vm1, %v6436_v55, %v1292_v30  ;;  %v1294_v31 = vrot.slane %v1292_v30, 4  ;;  %v6662_v21 = vrot.slane %v4148_v51, 11  ;;  %v10828_v6 = vld [vmem:[#allocation26_spill] sm:$0xff]  ;;  %10829 = vst [vmem:[#allocation38_spill] sm:$0xff] %v9112_v58 }
  0xce   : >> { %v4160_v13 = vshll.u32 %v9078_v50, 16  ;;  %v6437_v49 = vrot.slane %v9081_v23, 9  ;;  %v10827_v45 = vrot.slane %v10826_v33, 5  ;;  %v4153_v55 = vor.u32 %v4152_v43, %v10828_v6  ;;  %v9135_v6 = vld [vmem:[%s8098_s18 + $0x30] sm:$0xe] }
  0xcf   : >> { %7261 = vmatmul.mubr.msk.bf16.gmra.mrb[4].mxu0 %vm726_vm5, %v8967_v32  ;;  %v4146_v38 = vsel %vm8867_vm13, %v4138_v27, %v4145_v19  ;;  %v4155_v51 = vrot.slane %v4152_v43, 4  ;;  %v10830_v39 = vcombine.low %v8521_v40, %v8527_v16  ;;  %v4159_v19 = vrot.slane %v4157_v41, 7  ;;  %v7828_v40 = vld [vmem:[%s8098_s18 + $0x28] sm:$0x1]  ;;  %10835 = vst [vmem:[#allocation40_spill] sm:$0xff] %v9135_v6 }
  0xd0   : >> { %v9108_v30 = vsel %vm9031_vm1, %v1294_v31, %v10827_v45  ;;  %7264 = vmatprep.mubr.msk.bf16.mxu0 %vm726_vm5, %v8992_v37  ;;  %v9120_v32 = vcombine.low %v4137_v20, %v4146_v38  ;;  %v10831_v31 = vld [vmem:[#allocation51_spill] sm:$0xff]  ;;  %v10832_v43 = vcombine.low %v10796_v26, %v8566_v44  ;;  %v4154_v16 = vsel %vm8867_vm13, %v6662_v21, %v4153_v55  ;;  %v10834_v20 = vld [vmem:[#allocation29_spill] sm:$0xff]  ;;  %v10836_v55 = vld [vmem:[#allocation28_spill] sm:$0xff] }
  0xd1   : >> { %7073 = vmatmul.mubr.msk.bf16.gmra.mrb[20].mxu1 %vm726_vm5, %v10830_v39  ;;  %v1299_v33 = vrot.slane %v10831_v31, 5  ;;  %v1302_v39 = vrot.slane %v7828_v40, 5  ;;  %v10833_v45 = vld [vmem:[#allocation47_spill] sm:$0xff]  ;;  %v4169_v38 = vrot.slane %v10834_v20, 7  ;;  %v4162_v41 = vor.u32 %v4160_v13, %v4159_v19  ;;  %v9236_v50 = vld [vmem:[%s8098_s18 + $0xd8] sm:$0xf] }
  0xd2   : >> { %7076 = vmatprep.mubr.msk.bf16.mxu1 %vm726_vm5, %v10832_v43  ;;  %v4165_v37 = vshrl.u32 %v10833_v45, 16  ;;  %v4174_v26 = vshrl.u32 %v9112_v58, 16  ;;  %v4177_v45 = vshll.u32 %v9112_v58, 16  ;;  %v6438_v19 = vrot.slane %v9135_v6, 9  ;;  %v10839_v6 = vld [vmem:[#allocation31_spill] sm:$0xff] }
  0xd3   : >> { %v9139_v27 = vsel %vm9031_vm1, %v6437_v49, %v1299_v33  ;;  %v1301_v44 = vrot.slane %v1299_v33, 4  ;;  %v4170_v43 = vor.u32 %v4169_v38, %v10836_v55  ;;  %v4172_v40 = vrot.slane %v4169_v38, 4  ;;  %v9152_v33 = vld [vmem:[%s8098_s18 + $0xb8] sm:$0xf]  ;;  %v9161_v55 = vld [vmem:[%s8098_s18 + $0x34] sm:$0xf] }
  0xd4   : >> { %v6663_v21 = vrot.slane %v4165_v37, 11  ;;  %v4163_v20 = vsel %vm8867_vm13, %v4155_v51, %v4162_v41  ;;  %v4176_v49 = vrot.slane %v4174_v26, 7  ;;  %10837 = vst [vmem:[#allocation43_spill] sm:$0xff] %v9152_v33  ;;  %v1306_v51 = vrot.slane %v9161_v55, 5  ;;  %v10838_v26 = vld [vmem:[#allocation49_spill] sm:$0xff] }
  0xd5   : >> { %v9148_v13 = vsel %vm9031_vm1, %v1301_v44, %v1302_v39  ;;  %v9154_v1 = vcombine.low %v4154_v16, %v4163_v20  ;;  %v7830_v39 = vld [vmem:[%s8098_s18 + $0x38] sm:$0x1]  ;;  %v4182_v35 = vshrl.u32 %v10838_v26, 16  ;;  %v4186_v58 = vrot.slane %v10839_v6, 7  ;;  %v9168_v16 = vld [vmem:[%s8098_s18 + $0x40] sm:$0xe] }
  0xd6   : >> { %v4171_v38 = vsel %vm8867_vm13, %v6663_v21, %v4170_v43  ;;  %v4179_v41 = vor.u32 %v4177_v45, %v4176_v49  ;;  %v1309_v44 = vrot.slane %v7830_v39, 5  ;;  %10840 = vst [vmem:[#allocation44_spill] sm:$0xff] %v9168_v16  ;;  %v9174_v20 = vsel %vm9031_vm1, %v6438_v19, %v1306_v51  ;;  %v10842_v39 = vld [vmem:[#allocation30_spill] sm:$0xff]  ;;  %v9188_v37 = vld [vmem:[%s8098_s18 + $0xc8] sm:$0xf] }
  0xd7   : >> { %7265 = vmatmul.mubr.msk.bf16.gmra.mrb[8].mxu0 %vm726_vm5, %v9007_v42  ;;  %v1308_v21 = vrot.slane %v1306_v51, 4  ;;  %v4191_v43 = vshrl.u32 %v9152_v33, 16  ;;  %v4194_v45 = vshll.u32 %v9152_v33, 16  ;;  %v10841_v49 = vcombine.low %v10799_v18, %v8598_v60  ;;  %10843 = vst [vmem:[#allocation6_spill] sm:$0xff] %v9188_v37 }
  0xd8   : >> { %7268 = vmatprep.mubr.msk.bf16.mxu0 %vm726_vm5, %v9027_v59  ;;  %v4180_v42 = vsel %vm8867_vm13, %v4172_v40, %v4179_v41  ;;  %v6664_v19 = vrot.slane %v4182_v35, 11  ;;  %v4187_v51 = vor.u32 %v4186_v58, %v10842_v39  ;;  %v4189_v26 = vrot.slane %v4186_v58, 4  ;;  %v9202_v35 = vld [vmem:[%s8098_s18 + $0x50] sm:$0xe] }
  0xd9   : >> { %7077 = vmatmul.mubr.msk.bf16.gmra.mrb[24].mxu1 %vm726_vm5, %v10841_v49  ;;  %v10844_v6 = vcombine.low %v10805_v48, %v8632_v53  ;;  %v9194_v60 = vcombine.low %v4171_v38, %v4180_v42  ;;  %v9198_v18 = vsel %vm9031_vm1, %v1308_v21, %v1309_v44  ;;  %v4193_v59 = vrot.slane %v4191_v43, 7  ;;  %10845 = vst [vmem:[#allocation10_spill] sm:$0xff] %v9202_v35  ;;  %v9209_v48 = vld [vmem:[%s8098_s18 + $0x44] sm:$0xf]  ;;  %v10846_v21 = vld [vmem:[#allocation52_spill] sm:$0xff]  ;;  %v10847_v49 = vld [vmem:[#allocation34_spill] sm:$0xff] }
  0xda   : >> { %v6439_v40 = vrot.slane %v9168_v16, 9  ;;  %v4188_v41 = vsel %vm8867_vm13, %v6664_v19, %v4187_v51  ;;  %v1313_v53 = vrot.slane %v9209_v48, 5  ;;  %v4199_v43 = vshrl.u32 %v10846_v21, 16  ;;  %v10848_v21 = vld [vmem:[#allocation33_spill] sm:$0xff] }
  0xdb   : >> { %7080 = vmatprep.mubr.msk.bf16.mxu1 %vm726_vm5, %v10844_v6  ;;  %v7832_v6 = vld [vmem:[%s8098_s18 + $0x48] sm:$0x1]  ;;  %v4196_v44 = vor.u32 %v4194_v45, %v4193_v59  ;;  %v4203_v42 = vrot.slane %v10847_v49, 7  ;;  %v4208_v39 = vshrl.u32 %v9188_v37, 16  ;;  %v4211_v51 = vshll.u32 %v9188_v37, 16 }
  0xdc   : >> { %v1316_v38 = vrot.slane %v7832_v6, 5  ;;  %v9218_v58 = vsel %vm9031_vm1, %v6439_v40, %v1313_v53  ;;  %v1315_v19 = vrot.slane %v1313_v53, 4  ;;  %v6440_v6 = vrot.slane %v9202_v35, 9  ;;  %v9232_v53 = vld [vmem:[%s8098_s18 + $0x54] sm:$0xf] }
  0xdd   : >> { %v4197_v45 = vsel %vm8867_vm13, %v4189_v26, %v4196_v44  ;;  %v6665_v59 = vrot.slane %v4199_v43, 11  ;;  %v4204_v16 = vor.u32 %v4203_v42, %v10848_v21  ;;  %v4206_v49 = vrot.slane %v4203_v42, 4  ;;  %v9239_v35 = vld [vmem:[%s8098_s18 + $0x60] sm:$0xe] }
  0xde   : >> { %v9225_v33 = vcombine.low %v4188_v41, %v4197_v45  ;;  %v9229_v23 = vsel %vm9031_vm1, %v1315_v19, %v1316_v38  ;;  %v4210_v40 = vrot.slane %v4208_v39, 7  ;;  %v1320_v37 = vrot.slane %v9232_v53, 5  ;;  %10849 = vst [vmem:[#allocation51_spill] sm:$0xff] %v9239_v35  ;;  %v7834_v38 = vld [vmem:[%s8098_s18 + $0x58] sm:$0x1]  ;;  %v10851_v19 = vld [vmem:[#allocation39_spill] sm:$0xff] }
  0xdf   : >> { %7269 = vmatmul.mubr.msk.bf16.gmra.mrb[12].mxu0 %vm726_vm5, %v9068_v29  ;;  %v4205_v41 = vsel %vm8867_vm13, %v6665_v59, %v4204_v16  ;;  %v1323_v44 = vrot.slane %v7834_v38, 5  ;;  %v4216_v39 = vshrl.u32 %v8784_v0, 16  ;;  %v10850_v43 = vcombine.low %v10811_v57, %v8664_v46  ;;  %v10853_v59 = vld [vmem:[#allocation37_spill] sm:$0xff] }
  0xe0   : >> { %7272 = vmatprep.mubr.msk.bf16.mxu0 %vm726_vm5, %v9120_v32  ;;  %v4213_v29 = vor.u32 %v4211_v51, %v4210_v40  ;;  %v9257_v42 = vsel %vm9031_vm1, %v6440_v6, %v1320_v37  ;;  %v1322_v16 = vrot.slane %v1320_v37, 4  ;;  %v4220_v45 = vrot.slane %v10851_v19, 7  ;;  %v9275_v40 = vld [vmem:[%s8098_s18 + $0xe8] sm:$0xf] }
  0xe1   : >> { %7081 = vmatmul.mubr.msk.bf16.gmra.mrb[28].mxu1 %vm726_vm5, %v10850_v43  ;;  %v10852_v0 = vcombine.low %v9059_v14, %v9074_v8  ;;  %v6666_v46 = vrot.slane %v4216_v39, 11  ;;  %v4225_v57 = vshrl.u32 %v9236_v50, 16  ;;  %v4228_v32 = vshll.u32 %v9236_v50, 16  ;;  %10854 = vst [vmem:[#allocation47_spill] sm:$0xff] %v9275_v40 }
  0xe2   : >> { %v6441_v51 = vrot.slane %v9239_v35, 9  ;;  %v4214_v6 = vsel %vm8867_vm13, %v4206_v49, %v4213_v29  ;;  %v9271_v37 = vsel %vm9031_vm1, %v1322_v16, %v1323_v44  ;;  %v4221_v14 = vor.u32 %v4220_v45, %v10853_v59  ;;  %v7836_v44 = vld [vmem:[%s8098_s18 + $0x68] sm:$0x1] }
  0xe3   : >> { %7086 = vmatprep.mubr.msk.bf16.mxu1 %vm726_vm5, %v10852_v0  ;;  %v4223_v8 = vrot.slane %v4220_v45, 4  ;;  %v9277_v38 = vcombine.low %v4205_v41, %v4214_v6  ;;  %v4227_v43 = vrot.slane %v4225_v57, 7  ;;  %v9282_v0 = vld [vmem:[%s8098_s18 + $0x64] sm:$0xf]  ;;  %v1330_v29 = vrot.slane %v7836_v44, 5  ;;  %v10855_v45 = vld [vmem:[#allocation42_spill] sm:$0xff] }
  0xe4   : >> { %v1327_v26 = vrot.slane %v9282_v0, 5  ;;  %v4222_v49 = vsel %vm8867_vm13, %v6666_v46, %v4221_v14  ;;  %v4233_v16 = vshrl.u32 %v8794_v28, 16  ;;  %v4237_v59 = vrot.slane %v10855_v45, 7  ;;  %v9291_v41 = vld [vmem:[%s8098_s18 + $0x70] sm:$0xe] }
  0xe5   : >> { %10856 = vst [vmem:[#allocation49_spill] sm:$0xff] %v9291_v41  ;;  %v4230_v6 = vor.u32 %v4228_v32, %v4227_v43  ;;  %v4242_v19 = vshrl.u32 %v9275_v40, 16  ;;  %v10857_v46 = vld [vmem:[#allocation41_spill] sm:$0xff]  ;;  %v4245_v28 = vshll.u32 %v9275_v40, 16  ;;  %v6442_v43 = vrot.slane %v9291_v41, 9 }
  0xe6   : >> { %v9295_v57 = vsel %vm9031_vm1, %v6441_v51, %v1327_v26  ;;  %v1329_v39 = vrot.slane %v1327_v26, 4  ;;  %v6667_v21 = vrot.slane %v4233_v16, 11  ;;  %v4238_v14 = vor.u32 %v4237_v59, %v10857_v46  ;;  %v9310_v16 = vld [vmem:[%s8098_s18 + $0xf8] sm:$0xf]  ;;  %v9483_v41 = vld [vmem:[%s8098_s18 + $0xd4] sm:$0xf] }
  0xe7   : >> { %v4240_v44 = vrot.slane %v4237_v59, 4  ;;  %7273 = vmatmul.mubr.msk.bf16.gmra.mrb[16].mxu0 %vm726_vm5, %v9154_v1  ;;  %v4231_v32 = vsel %vm8867_vm13, %v4223_v8, %v4230_v6  ;;  %v4244_v26 = vrot.slane %v4242_v19, 7  ;;  %10858 = vst [vmem:[#allocation52_spill] sm:$0xff] %v9310_v16  ;;  %v9313_v59 = vld [vmem:[%s8103_s23 + $0x8] sm:$0x3]  ;;  %v10859_v46 = vcombine.low %v9094_v24, %v9108_v30 }
  0xe8   : >> { %v9306_v51 = vsel %vm9031_vm1, %v1329_v39, %v1330_v29  ;;  %7276 = vmatprep.mubr.msk.bf16.mxu0 %vm726_vm5, %v9194_v60  ;;  %v9321_v1 = vcombine.low %v4222_v49, %v4231_v32  ;;  %v4239_v8 = vsel %vm8867_vm13, %v6667_v21, %v4238_v14  ;;  %v9328_v39 = vld [vmem:[%s8098_s18 + $0x74] sm:$0xf]  ;;  %v10860_v24 = vcombine.low %v9139_v27, %v9148_v13  ;;  %v7838_v60 = vld [vmem:[%s8098_s18 + $0x78] sm:$0x1]  ;;  %v9340_v21 = vld [vmem:[%s8098_s18 + $0x80] sm:$0xe] }
  0xe9   : >> { %7087 = vmatmul.mubr.msk.bf16.vlgmr.msra.gmra.mrb[0].mxu1 %vm726_vm5, %v10859_v46  ;;  %v1334_v29 = vrot.slane %v9328_v39, 5  ;;  %v4247_v30 = vor.u32 %v4245_v28, %v4244_v26  ;;  %v1337_v49 = vrot.slane %v7838_v60, 5  ;;  %v4250_v6 = vshrl.u32 %v8804_v63, 16  ;;  %v10861_v46 = vld [vmem:[#allocation46_spill] sm:$0xff]  ;;  %10862 = vst [vmem:[#allocation53_spill] sm:$0xff] %v9340_v21  ;;  %v10863_v26 = vld [vmem:[#allocation45_spill] sm:$0xff] }
  0xea   : >> { %7119 = vmatpush3.bf16.msra.mxu1 %v9089_v22  ;;  %7090 = vmatprep.mubr.msk.bf16.mxu1 %vm726_vm5, %v10860_v24  ;;  %v4254_v32 = vrot.slane %v10861_v46, 7  ;;  %v4259_v27 = vshrl.u32 %v9310_v16, 16  ;;  %v4262_v13 = vshll.u32 %v9310_v16, 16  ;;  %v6443_v45 = vrot.slane %v9340_v21, 9  ;;  %v9380_v21 = vld [vmem:[%s8098_s18 + $0xa0] sm:$0xe] }
  0xeb   : >> { %v9344_v14 = vsel %vm9031_vm1, %v6442_v43, %v1334_v29  ;;  %v1336_v22 = vrot.slane %v1334_v29, 4  ;;  %7716 = vmatprep.subr.msk.bf16.mxu1 %vm775_vm0, %v9313_v59  ;;  %v4248_v63 = vsel %vm8867_vm13, %v4240_v44, %v4247_v30  ;;  %v6668_v28 = vrot.slane %v4250_v6, 11  ;;  %v9354_v43 = vld [vmem:[%s8098_s18 + $0x90] sm:$0xe]  ;;  %v9368_v6 = vld [vmem:[%s8098_s18 + $0x84] sm:$0xf] }
  0xec   : >> { %v4255_v24 = vor.u32 %v4254_v32, %v10863_v26  ;;  %v4257_v60 = vrot.slane %v4254_v32, 4  ;;  %10864 = vst [vmem:[#allocation54_spill] sm:$0xff] %v9354_v43  ;;  %v9356_v29 = vcombine.low %v4239_v8, %v4248_v63  ;;  %v4261_v46 = vrot.slane %v4259_v27, 7  ;;  %v7840_v8 = vld [vmem:[%s8098_s18 + $0x88] sm:$0x1]  ;;  %10865 = vst [vmem:[#allocation55_spill] sm:$0xff] %v9380_v21 }
  0xed   : >> { %v9360_v19 = vsel %vm9031_vm1, %v1336_v22, %v1337_v49  ;;  %v1341_v32 = vrot.slane %v9368_v6, 5  ;;  %v1344_v63 = vrot.slane %v7840_v8, 5  ;;  %v6444_v22 = vrot.slane %v9354_v43, 9  ;;  %v9376_v27 = vld [vmem:[%s8098_s18 + $0x94] sm:$0xf] }
  0xee   : >> { %v4256_v30 = vsel %vm8867_vm13, %v6668_v28, %v4255_v24  ;;  %v4264_v26 = vor.u32 %v4262_v13, %v4261_v46  ;;  %v1348_v44 = vrot.slane %v9376_v27, 5  ;;  %v7842_v13 = vld [vmem:[%s8098_s18 + $0x98] sm:$0x1]  ;;  %v10866_v49 = vcombine.low %v9174_v20, %v9198_v18  ;;  %v9408_v8 = vld [vmem:[%s8098_s18 + $0xb0] sm:$0xe] }
  0xef   : >> { %7277 = vmatmul.mubr.msk.bf16.gmra.mrb[20].mxu0 %vm726_vm5, %v9225_v33  ;;  %v9386_v28 = vsel %vm9031_vm1, %v6443_v45, %v1341_v32  ;;  %v1343_v46 = vrot.slane %v1341_v32, 4  ;;  %v1351_v24 = vrot.slane %v7842_v13, 5  ;;  %v9405_v13 = vsel %vm775_vm0, %v9041_v4, 0  ;;  %10867 = vst [vmem:[#allocation56_spill] sm:$0xff] %v9408_v8  ;;  %v9422_v4 = vld [vmem:[%s8098_s18 + $0xa4] sm:$0xf] }
  0xf0   : >> { %7280 = vmatprep.mubr.msk.bf16.mxu0 %vm726_vm5, %v9277_v38  ;;  %v4265_v33 = vsel %vm8867_vm13, %v4257_v60, %v4264_v26  ;;  %v9401_v45 = vsel %vm9031_vm1, %v6444_v22, %v1348_v44  ;;  %v1350_v32 = vrot.slane %v1348_v44, 4  ;;  %v10868_v20 = vcombine.low %v9218_v58, %v9229_v23  ;;  %v9426_v60 = vld [vmem:[%s8098_s18 + $0xc0] sm:$0xe]  ;;  %v7844_v44 = vld [vmem:[%s8098_s18 + $0xa8] sm:$0x1] }
  0xf1   : >> { %7091 = vmatmul.mubr.msk.bf16.gmra.mrb[4].mxu1 %vm726_vm5, %v10866_v49  ;;  %v9414_v18 = vcombine.low %v4256_v30, %v4265_v33  ;;  %v9418_v62 = vsel %vm9031_vm1, %v1343_v46, %v1344_v63  ;;  %v6445_v38 = vrot.slane %v9380_v21, 9  ;;  %v1355_v26 = vrot.slane %v9422_v4, 5  ;;  %10869 = vst [vmem:[#allocation57_spill] sm:$0xff] %v9426_v60  ;;  %v7848_v21 = vld [vmem:[%s8098_s18 + $0xc8] sm:$0x1] }
  0xf2   : >> { %7094 = vmatprep.mubr.msk.bf16.mxu1 %vm726_vm5, %v10868_v20  ;;  %v9432_v58 = vsel %vm9031_vm1, %v1350_v32, %v1351_v24  ;;  %v1358_v30 = vrot.slane %v7844_v44, 5  ;;  %v6446_v33 = vrot.slane %v9408_v8, 9  ;;  %v9445_v24 = vld [vmem:[%s8098_s18 + $0xd0] sm:$0xe]  ;;  %v9448_v32 = vld [vmem:[%s8098_s18 + $0xb4] sm:$0xf] }
  0xf3   : >> { %v9441_v22 = vsel %vm9031_vm1, %v6445_v38, %v1355_v26  ;;  %v1357_v46 = vrot.slane %v1355_v26, 4  ;;  %10870 = vst [vmem:[#allocation58_spill] sm:$0xff] %v9445_v24  ;;  %v1362_v20 = vrot.slane %v9448_v32, 5  ;;  %v7846_v44 = vld [vmem:[%s8098_s18 + $0xb8] sm:$0x1]  ;;  %v6447_v49 = vrot.slane %v9426_v60, 9 }
  0xf4   : >> { %v1365_v23 = vrot.slane %v7846_v44, 5  ;;  %v9460_v26 = vld [vmem:[%s8098_s18 + $0xc4] sm:$0xf]  ;;  %v1372_v43 = vrot.slane %v7848_v21, 5  ;;  %v9467_v16 = vld [vmem:[%s8098_s18 + $0xe0] sm:$0xe] }
  0xf5   : >> { %v9457_v38 = vsel %vm9031_vm1, %v1357_v46, %v1358_v30  ;;  %v1369_v8 = vrot.slane %v9460_v26, 5  ;;  %10871 = vst [vmem:[#allocation59_spill] sm:$0xff] %v9467_v16  ;;  %v9473_v30 = vsel %vm9031_vm1, %v6446_v33, %v1362_v20  ;;  %v1364_v46 = vrot.slane %v1362_v20, 4  ;;  %v7850_v40 = vld [vmem:[%s8098_s18 + $0xd8] sm:$0x1] }
  0xf6   : >> { %v6448_v60 = vrot.slane %v9445_v24, 9  ;;  %v1376_v63 = vrot.slane %v9483_v41, 5  ;;  %v1379_v35 = vrot.slane %v7850_v40, 5  ;;  %v10872_v33 = vcombine.low %v9257_v42, %v9271_v37  ;;  %v9501_v20 = vld [vmem:[%s8098_s18 + $0xe4] sm:$0xf] }
  0xf7   : >> { %7281 = vmatmul.mubr.msk.bf16.gmra.mrb[24].mxu0 %vm726_vm5, %v9321_v1  ;;  %v9480_v21 = vsel %vm9031_vm1, %v6447_v49, %v1369_v8  ;;  %v1371_v44 = vrot.slane %v1369_v8, 4  ;;  %v9495_v1 = vsel %vm9031_vm1, %v1364_v46, %v1365_v23  ;;  %v6449_v49 = vrot.slane %v9467_v16, 9  ;;  %v9505_v37 = vld [vmem:[%s8098_s18 + $0xf0] sm:$0xe] }
  0xf8   : >> { %7284 = vmatprep.mubr.msk.bf16.mxu0 %vm726_vm5, %v9356_v29  ;;  %v1383_v42 = vrot.slane %v9501_v20, 5  ;;  %10873 = vst [vmem:[#allocation60_spill] sm:$0xff] %v9505_v37  ;;  %v10874_v40 = vcombine.low %v9295_v57, %v9306_v51  ;;  %v9519_v46 = vsel %vm9031_vm1, %v6448_v60, %v1376_v63  ;;  %vm1707_vm2 = vsmask.f32 2304 }
  0xf9   : >> { %7095 = vmatmul.mubr.msk.bf16.gmra.mrb[8].mxu1 %vm726_vm5, %v10872_v33  ;;  %v9515_v23 = vsel %vm9031_vm1, %v1371_v44, %v1372_v43  ;;  %v1378_v33 = vrot.slane %v1376_v63, 4  ;;  %v6450_v63 = vrot.slane %v9505_v37, 9  ;;  %v9536_v44 = vld [vmem:[%s8098_s18 + $0xf4] sm:$0xf]  ;;  %vm1708_vm3 = vsmask.f32 6416 }
  0xfa   : >> { %7098 = vmatprep.mubr.msk.bf16.mxu1 %vm726_vm5, %v10874_v40  ;;  %v9525_v57 = vsel %vm9031_vm1, %v6449_v49, %v1383_v42  ;;  %v1385_v51 = vrot.slane %v1383_v42, 4  ;;  %v7852_v40 = vld [vmem:[%s8098_s18 + $0xe8] sm:$0x1]  ;;  %v1390_v8 = vrot.slane %v9536_v44, 5  ;;  %v10875_v49 = vcombine.low %v9344_v14, %v9360_v19  ;;  %vm9585_vm4 = vmor %vm1707_vm2, %vm1708_vm3 }
  0xfb   : >> { %v1386_v29 = vrot.slane %v7852_v40, 5  ;;  %v9530_v43 = vsel %vm9031_vm1, %v1378_v33, %v1379_v35  ;;  %v7854_v40 = vld [vmem:[%s8098_s18 + $0xf8] sm:$0x1]  ;;  %v1691_v33 = vld [vmem:[%s8098_s18 + $0x8] sm:$0x3]  ;;  %vm2423_vm8 = vcmask 1045508  }
  0xfc   : >> { %v1393_v16 = vrot.slane %v7854_v40, 5  ;;  %v9553_v37 = vsel %vm9031_vm1, %v6450_v63, %v1390_v8  ;;  %v1392_v24 = vrot.slane %v1390_v8, 4  ;;  %v1719_v40 = vrot.slane %v8128_v11, 5  ;;  %vm10006_vm9 = vmor %vm775_vm0, %vm2423_vm8 }
  0xfd   : >> { %v9543_v42 = vsel %vm9031_vm1, %v1385_v51, %v1386_v29  ;;  %v1711_v29 = vshrl.u32 %v9013_v47, 16  ;;  %v1714_v51 = vshll.u32 %v9013_v47, 16  ;;  %v1720_v63 = vrot.slane %v8125_v10, 6 }
  0xfe   : >> { %v9562_v35 = vsel %vm9031_vm1, %v1392_v24, %v1393_v16  ;;  %v1725_v60 = vshrl.u32 %v1691_v33, 16  ;;  %v1728_v8 = vshll.u32 %v1691_v33, 16  ;;  %v10876_v47 = vcombine.low %v9037_v3, %v8839_v9  ;;  %v1692_v24 = vld [vmem:[%s8098_s18 + $0x18] sm:$0x3]  ;;  %v10017_v3 = vld [vmem:[%s8098_s18 + $0x8c] sm:$0x1] }
  0xff   : >> { %7285 = vmatmul.mubr.msk.bf16.gmra.mrb[28].mxu0 %vm726_vm5, %v9414_v18  ;;  %v1713_v18 = vrot.slane %v1711_v29, 5  ;;  %v1716_v16 = vrot.slane %v1714_v51, 6  ;;  %v10877_v33 = vcombine.low %v9386_v28, %v9418_v62  ;;  %v1721_v19 = vor.u32 %v1720_v63, %v1719_v40 }
 0x100   : >> { %7290 = vmatprep.mubr.msk.bf16.mxu0 %vm726_vm5, %v10876_v47  ;;  %v1727_v14 = vrot.slane %v1725_v60, 5  ;;  %v1734_v9 = vshrl.u32 %v9023_v36, 16  ;;  %v1737_v51 = vshll.u32 %v9023_v36, 16  ;;  %v1742_v47 = vrot.slane %v8179_v56, 5  ;;  %v10880_v56 = vld [vmem:[#allocation35_spill] sm:$0xff] }
 0x101   : >> { %7099 = vmatmul.mubr.msk.bf16.gmra.mrb[12].mxu1 %vm726_vm5, %v10875_v49  ;;  %v1730_v49 = vrot.slane %v1728_v8, 6  ;;  %v1717_v29 = vor.u32 %v1716_v16, %v1713_v18  ;;  %v1743_v28 = vrot.slane %v8176_v52, 6  ;;  %v1723_v62 = vrot.slane %v1721_v19, 4  ;;  %v1693_v16 = vld [vmem:[%s8098_s18 + $0x28] sm:$0x3] }
 0x102   : >> { %7102 = vmatprep.mubr.msk.bf16.mxu1 %vm726_vm5, %v10877_v33  ;;  %v1736_v60 = vrot.slane %v1734_v9, 5  ;;  %v1748_v63 = vshrl.u32 %v1692_v24, 16  ;;  %v1739_v33 = vrot.slane %v1737_v51, 6  ;;  %v1751_v11 = vshll.u32 %v1692_v24, 16 }
 0x103   : >> { %v1731_v40 = vor.u32 %v1730_v49, %v1727_v14  ;;  %v1718_v8 = vrot.slane %v1717_v29, 4  ;;  %v1744_v10 = vor.u32 %v1743_v28, %v1742_v47  ;;  %v9596_v36 = vsel %vm775_vm0, %v9313_v59, 0  ;;  %v10882_v47 = vld [vmem:[#allocation36_spill] sm:$0xff] }
 0x104   : >> { %v1750_v18 = vrot.slane %v1748_v63, 5  ;;  %v6714_v52 = vcombine.low %v9376_v27, %v10880_v56  ;;  %v1740_v49 = vor.u32 %v1739_v33, %v1736_v60  ;;  %v1753_v29 = vrot.slane %v1751_v11, 6  ;;  %v9613_v63 = vld [vmem:[%s8103_s23 + $0x14] sm:$0x3] }
 0x105   : >> { %v1732_v7 = vsel %vm9585_vm4, %v1723_v62, %v1731_v40  ;;  %v1722_v14 = vsel %vm9585_vm4, %v1718_v8, %v1721_v19  ;;  %v1746_v9 = vrot.slane %v1744_v10, 4  ;;  %v10881_v24 = vcombine.low %v8712_v15, %v8860_v5  ;;  %v10883_v62 = vld [vmem:[#allocation13_spill] sm:$0xff] }
 0x106   : >> { %v9607_v51 = vcombine.low %v1722_v14, %v1732_v7  ;;  %v1757_v59 = vshrl.u32 %v10882_v47, 16  ;;  %v1760_v28 = vshll.u32 %v10882_v47, 16  ;;  %v1765_v40 = vrot.slane %v10883_v62, 5  ;;  %v10885_v7 = vld [vmem:[#allocation12_spill] sm:$0xff] }
 0x107   : >> { %7291 = vmatmul.mubr.msk.bf16.vlgmr.msra.gmra.mrb[0].mxu0 %vm726_vm5, %v10881_v24  ;;  %v10884_v19 = vcombine.low %v9401_v45, %v9432_v58  ;;  %v1741_v15 = vrot.slane %v1740_v49, 4  ;;  %v1754_v5 = vor.u32 %v1753_v29, %v1750_v18  ;;  %v1766_v11 = vrot.slane %v10885_v7, 6  ;;  %v10888_v24 = vld [vmem:[#allocation38_spill] sm:$0xff] }
 0x108   : >> { %7323 = vmatpush3.bf16.msra.mxu0 %v9405_v13  ;;  %v1771_v60 = vshrl.u32 %v1693_v16, 16  ;;  %v10886_v8 = vcombine.low %v9441_v22, %v9457_v38  ;;  %v10887_v33 = vcombine.low %v10831_v31, %v8887_v17  ;;  %v1759_v45 = vrot.slane %v1757_v59, 5  ;;  %v1694_v29 = vld [vmem:[%s8098_s18 + $0x38] sm:$0x3] }
 0x109   : >> { %7103 = vmatmul.mubr.msk.bf16.gmra.mrb[16].mxu1 %vm726_vm5, %v10884_v19  ;;  %v1762_v58 = vrot.slane %v1760_v28, 6  ;;  %v1774_v14 = vshll.u32 %v1693_v16, 16  ;;  %v6715_v13 = vcombine.low %v9422_v4, %v10888_v24  ;;  %v1745_v18 = vsel %vm9585_vm4, %v1741_v15, %v1744_v10  ;;  %7723 = vmatprep.subr.msk.bf16.mxu0 %vm775_vm0, %v9613_v63  ;;  %v10889_v16 = vld [vmem:[#allocation40_spill] sm:$0xff]  ;;  %v10890_v10 = vld [vmem:[#allocation15_spill] sm:$0xff]  ;;  %v10891_v15 = vld [vmem:[#allocation14_spill] sm:$0xff] }
 0x10a   : >> { %7106 = vmatprep.mubr.msk.bf16.mxu1 %vm726_vm5, %v10886_v8  ;;  %7294 = vmatprep.mubr.msk.bf16.mxu0 %vm726_vm5, %v10887_v33  ;;  %v1755_v49 = vsel %vm9585_vm4, %v1746_v9, %v1754_v5  ;;  %v1767_v22 = vor.u32 %v1766_v11, %v1765_v40  ;;  %v1773_v38 = vrot.slane %v1771_v60, 5  ;;  %v1780_v59 = vshrl.u32 %v10889_v16, 16 }
 0x10b   : >> { %v9638_v17 = vcombine.low %v1745_v18, %v1755_v49  ;;  %v1763_v31 = vor.u32 %v1762_v58, %v1759_v45  ;;  %v1776_v47 = vrot.slane %v1774_v14, 6  ;;  %v1783_v62 = vshll.u32 %v10889_v16, 16  ;;  %v10892_v18 = vld [vmem:[#allocation43_spill] sm:$0xff] }
 0x10c   : >> { %v1769_v28 = vrot.slane %v1767_v22, 4  ;;  %v1788_v19 = vrot.slane %v10890_v10, 5  ;;  %v1789_v9 = vrot.slane %v10891_v15, 6  ;;  %v1782_v7 = vrot.slane %v1780_v59, 5  ;;  %v10899_v15 = vld [vmem:[#allocation16_spill] sm:$0xff] }
 0x10d   : >> { %v1764_v40 = vrot.slane %v1763_v31, 4  ;;  %v1777_v5 = vor.u32 %v1776_v47, %v1773_v38  ;;  %v1794_v11 = vshrl.u32 %v1694_v29, 16  ;;  %v1785_v60 = vrot.slane %v1783_v62, 6  ;;  %v1695_v31 = vld [vmem:[%s8098_s18 + $0x48] sm:$0x3] }
 0x10e   : >> { %v1790_v8 = vor.u32 %v1789_v9, %v1788_v19  ;;  %v1797_v33 = vshll.u32 %v1694_v29, 16  ;;  %v6716_v45 = vcombine.low %v9448_v32, %v10892_v18  ;;  %v10893_v58 = vcombine.low %v9161_v55, %v8911_v61  ;;  %v10894_v47 = vld [vmem:[#allocation44_spill] sm:$0xff] }
 0x10f   : >> { %v1768_v14 = vsel %vm9585_vm4, %v1764_v40, %v1767_v22  ;;  %v1778_v49 = vsel %vm9585_vm4, %v1769_v28, %v1777_v5  ;;  %v1796_v38 = vrot.slane %v1794_v11, 5  ;;  %v1803_v16 = vshrl.u32 %v10894_v47, 16 }
 0x110   : >> { %7295 = vmatmul.mubr.msk.bf16.gmra.mrb[4].mxu0 %vm726_vm5, %v10893_v58  ;;  %v10895_v29 = vcombine.low %v9473_v30, %v9495_v1  ;;  %v10896_v61 = vcombine.low %v9209_v48, %v8927_v25  ;;  %v9664_v55 = vcombine.low %v1768_v14, %v1778_v49  ;;  %v1786_v22 = vor.u32 %v1785_v60, %v1782_v7  ;;  %v10898_v1 = vld [vmem:[#allocation17_spill] sm:$0xff]  ;;  %v10900_v60 = vld [vmem:[#allocation6_spill] sm:$0xff] }
 0x111   : >> { %v1792_v59 = vrot.slane %v1790_v8, 4  ;;  %v1799_v62 = vrot.slane %v1797_v33, 6  ;;  %v10897_v28 = vcombine.low %v9480_v21, %v9515_v23  ;;  %v1805_v10 = vrot.slane %v1803_v16, 5  ;;  %v10901_v21 = vld [vmem:[#allocation10_spill] sm:$0xff] }
 0x112   : >> { %7107 = vmatmul.mubr.msk.bf16.gmra.mrb[20].mxu1 %vm726_vm5, %v10895_v29  ;;  %7298 = vmatprep.mubr.msk.bf16.mxu0 %vm726_vm5, %v10896_v61  ;;  %v1806_v30 = vshll.u32 %v10894_v47, 16  ;;  %v1811_v19 = vrot.slane %v10898_v1, 5  ;;  %v1812_v25 = vrot.slane %v10899_v15, 6  ;;  %v1787_v48 = vrot.slane %v1786_v22, 4  ;;  %v1696_v16 = vld [vmem:[%s8098_s18 + $0x58] sm:$0x3] }
 0x113   : >> { %7110 = vmatprep.mubr.msk.bf16.mxu1 %vm726_vm5, %v10897_v28  ;;  %v1800_v9 = vor.u32 %v1799_v62, %v1796_v38  ;;  %v1817_v40 = vshrl.u32 %v1695_v31, 16  ;;  %v1820_v5 = vshll.u32 %v1695_v31, 16  ;;  %v6717_v33 = vcombine.low %v9460_v26, %v10900_v60  ;;  %v10902_v28 = vld [vmem:[#allocation19_spill] sm:$0xff]  ;;  %v10903_v1 = vld [vmem:[#allocation18_spill] sm:$0xff] }
 0x114   : >> { %v1808_v7 = vrot.slane %v1806_v30, 6  ;;  %v1813_v11 = vor.u32 %v1812_v25, %v1811_v19  ;;  %v1826_v23 = vshrl.u32 %v10901_v21, 16  ;;  %v1791_v58 = vsel %vm9585_vm4, %v1787_v48, %v1790_v8 }
 0x115   : >> { %v1801_v14 = vsel %vm9585_vm4, %v1792_v59, %v1800_v9  ;;  %v1819_v49 = vrot.slane %v1817_v40, 5  ;;  %v1822_v47 = vrot.slane %v1820_v5, 6  ;;  %v1829_v62 = vshll.u32 %v10901_v21, 16  ;;  %v10907_v5 = vld [vmem:[#allocation51_spill] sm:$0xff] }
 0x116   : >> { %v9681_v29 = vcombine.low %v1791_v58, %v1801_v14  ;;  %v1809_v38 = vor.u32 %v1808_v7, %v1805_v10  ;;  %v1815_v31 = vrot.slane %v1813_v11, 4  ;;  %v1828_v61 = vrot.slane %v1826_v23, 5 }
 0x117   : >> { %v1823_v22 = vor.u32 %v1822_v47, %v1819_v49  ;;  %v1834_v30 = vrot.slane %v10902_v28, 5  ;;  %v1835_v19 = vrot.slane %v10903_v1, 6  ;;  %v10904_v8 = vcombine.low %v9232_v53, %v8952_v54 }
 0x118   : >> { %v1810_v59 = vrot.slane %v1809_v38, 4  ;;  %v1840_v15 = vshrl.u32 %v1696_v16, 16  ;;  %v1843_v25 = vshll.u32 %v1696_v16, 16  ;;  %v6718_v10 = vcombine.low %v9483_v41, %v9236_v50 }
 0x119   : >> { %7299 = vmatmul.mubr.msk.bf16.gmra.mrb[8].mxu0 %vm726_vm5, %v10904_v8  ;;  %v10905_v48 = vcombine.low %v9519_v46, %v9530_v43  ;;  %v10906_v9 = vcombine.low %v9282_v0, %v8965_v12  ;;  %v1824_v54 = vsel %vm9585_vm4, %v1815_v31, %v1823_v22  ;;  %v1831_v53 = vrot.slane %v1829_v62, 6  ;;  %v1697_v12 = vld [vmem:[%s8098_s18 + $0x68] sm:$0x3]  ;;  %v10909_v31 = vld [vmem:[#allocation21_spill] sm:$0xff] }
 0x11a   : >> { %v1836_v40 = vor.u32 %v1835_v19, %v1834_v30  ;;  %v1849_v7 = vshrl.u32 %v10907_v5, 16  ;;  %v10908_v21 = vcombine.low %v9525_v57, %v9543_v42  ;;  %v1814_v46 = vsel %vm9585_vm4, %v1810_v59, %v1813_v11  ;;  %v10910_v42 = vld [vmem:[#allocation20_spill] sm:$0xff]  ;;  %v10911_v30 = vld [vmem:[#allocation47_spill] sm:$0xff]  ;;  %v10912_v59 = vld [vmem:[#allocation49_spill] sm:$0xff] }
 0x11b   : >> { %7111 = vmatmul.mubr.msk.bf16.gmra.mrb[24].mxu1 %vm726_vm5, %v10905_v48  ;;  %7302 = vmatprep.mubr.msk.bf16.mxu0 %vm726_vm5, %v10906_v9  ;;  %v1842_v43 = vrot.slane %v1840_v15, 5  ;;  %v1845_v23 = vrot.slane %v1843_v25, 6  ;;  %v1852_v0 = vshll.u32 %v10907_v5, 16  ;;  %v9711_v58 = vcombine.low %v1814_v46, %v1824_v54  ;;  %v1698_v54 = vld [vmem:[%s8098_s18 + $0x78] sm:$0x3] }
 0x11c   : >> { %7114 = vmatprep.mubr.msk.bf16.mxu1 %vm726_vm5, %v10908_v21  ;;  %v1832_v14 = vor.u32 %v1831_v53, %v1828_v61  ;;  %v1838_v49 = vrot.slane %v1836_v40, 4  ;;  %v1851_v47 = vrot.slane %v1849_v7, 5  ;;  %v1857_v57 = vrot.slane %v10909_v31, 5 }
 0x11d   : >> { %v1846_v16 = vor.u32 %v1845_v23, %v1842_v43  ;;  %v1854_v38 = vrot.slane %v1852_v0, 6  ;;  %v1858_v22 = vrot.slane %v10910_v42, 6  ;;  %v1863_v28 = vshrl.u32 %v1697_v12, 16  ;;  %v10919_v42 = vld [vmem:[#allocation53_spill] sm:$0xff] }
 0x11e   : >> { %v1833_v62 = vrot.slane %v1832_v14, 4  ;;  %v1866_v11 = vshll.u32 %v1697_v12, 16  ;;  %v6719_v1 = vcombine.low %v9501_v20, %v10911_v30  ;;  %v1872_v15 = vshrl.u32 %v10912_v59, 16  ;;  %v10917_v14 = vld [vmem:[#allocation22_spill] sm:$0xff] }
 0x11f   : >> { %v1847_v19 = vsel %vm9585_vm4, %v1838_v49, %v1846_v16  ;;  %v1855_v8 = vor.u32 %v1854_v38, %v1851_v47  ;;  %v1859_v61 = vor.u32 %v1858_v22, %v1857_v57  ;;  %v1865_v48 = vrot.slane %v1863_v28, 5  ;;  %v10918_v16 = vld [vmem:[#allocation52_spill] sm:$0xff] }
 0x120   : >> { %v1837_v25 = vsel %vm9585_vm4, %v1833_v62, %v1836_v40  ;;  %v1868_v9 = vrot.slane %v1866_v11, 6  ;;  %v1875_v53 = vshll.u32 %v10912_v59, 16  ;;  %v10913_v5 = vcombine.low %v9328_v39, %v8998_v34  ;;  %v10916_v39 = vld [vmem:[#allocation23_spill] sm:$0xff]  ;;  %v1699_v57 = vld [vmem:[%s8098_s18 + $0x88] sm:$0x3] }
 0x121   : >> { %v9728_v7 = vcombine.low %v1837_v25, %v1847_v19  ;;  %v1856_v21 = vrot.slane %v1855_v8, 4  ;;  %v1861_v46 = vrot.slane %v1859_v61, 4  ;;  %v1874_v43 = vrot.slane %v1872_v15, 5  ;;  %v4858_v19 = vld [vmem:[%s8098_s18 + $0x4] sm:$0xf]  ;;  %v10920_v15 = vld [vmem:[#allocation25_spill] sm:$0xff] }
 0x122   : >> { %7303 = vmatmul.mubr.msk.bf16.gmra.mrb[12].mxu0 %vm726_vm5, %v10913_v5  ;;  %v10914_v23 = vcombine.low %v9553_v37, %v9562_v35  ;;  %v10915_v40 = vcombine.low %v9368_v6, %v9018_v2  ;;  %v1869_v12 = vor.u32 %v1868_v9, %v1865_v48  ;;  %v1877_v34 = vrot.slane %v1875_v53, 6 }
 0x123   : >> { %v1880_v0 = vrot.slane %v10916_v39, 5  ;;  %v1881_v49 = vrot.slane %v10917_v14, 6  ;;  %v1860_v37 = vsel %vm9585_vm4, %v1856_v21, %v1859_v61  ;;  %v1886_v35 = vshrl.u32 %v1698_v54, 16  ;;  %v4860_v14 = vld [vmem:[%s8098_s18 + $0xc] sm:$0x1] }
 0x124   : >> { %7115 = vmatmul.mubr.msk.bf16.gmra.mrb[28].mxu1 %vm726_vm5, %v10914_v23  ;;  %7306 = vmatprep.mubr.msk.bf16.mxu0 %vm726_vm5, %v10915_v40  ;;  %v1889_v47 = vshll.u32 %v1698_v54, 16  ;;  %v6720_v2 = vcombine.low %v9536_v44, %v10918_v16  ;;  %v1870_v6 = vsel %vm9585_vm4, %v1861_v46, %v1869_v12  ;;  %v1878_v38 = vor.u32 %v1877_v34, %v1874_v43  ;;  %v10921_v54 = vld [vmem:[#allocation24_spill] sm:$0xff] }
 0x125   : >> { %7120 = vmatprep.mubr.msk.bf16.mxu1 %vm726_vm5, %v9607_v51  ;;  %v1882_v31 = vor.u32 %v1881_v49, %v1880_v0  ;;  %v1895_v22 = vshrl.u32 %v10919_v42, 16  ;;  %v9750_v62 = vcombine.low %v1860_v37, %v1870_v6  ;;  %v1888_v51 = vrot.slane %v1886_v35, 5  ;;  %v4859_v43 = vld [vmem:[%s8098_s18 + $0x8] sm:$0xf] }
 0x126   : >> { %v1891_v28 = vrot.slane %v1889_v47, 6  ;;  %v1898_v11 = vshll.u32 %v10919_v42, 16  ;;  %v1879_v8 = vrot.slane %v1878_v38, 4  ;;  %v1903_v25 = vrot.slane %v10920_v15, 5 }
 0x127   : >> { %v1884_v61 = vrot.slane %v1882_v31, 4  ;;  %v1897_v59 = vrot.slane %v1895_v22, 5  ;;  %v1904_v53 = vrot.slane %v10921_v54, 6  ;;  %v1909_v5 = vshrl.u32 %v1699_v57, 16 }
 0x128   : >> { %v1892_v48 = vor.u32 %v1891_v28, %v1888_v51  ;;  %v1900_v9 = vrot.slane %v1898_v11, 6  ;;  %v1883_v21 = vsel %vm9585_vm4, %v1879_v8, %v1882_v31  ;;  %v1912_v46 = vshll.u32 %v1699_v57, 16  ;;  %v7855_v31 = vld [vmem:[%s8103_s23 + $0xa] sm:$0x3]  ;;  %v4861_v8 = vld [vmem:[%s8098_s18 + $0x14] sm:$0xf] }
 0x129   : >> { %v4907_v23 = vshrl.u32 %v4858_v19, 16  ;;  %v4910_v40 = vshll.u32 %v4858_v19, 16  ;;  %v1905_v39 = vor.u32 %v1904_v53, %v1903_v25  ;;  %v1911_v0 = vrot.slane %v1909_v5, 5  ;;  %v4862_v53 = vld [vmem:[%s8098_s18 + $0x18] sm:$0xf] }
 0x12a   : >> { %7307 = vmatmul.mubr.msk.bf16.gmra.mrb[16].mxu0 %vm726_vm5, %v6714_v52  ;;  %v1893_v12 = vsel %vm9585_vm4, %v1884_v61, %v1892_v48  ;;  %v1901_v34 = vor.u32 %v1900_v9, %v1897_v59  ;;  %v1914_v27 = vrot.slane %v1912_v46, 6  ;;  %v4920_v47 = vshrl.u32 %v4859_v43, 16  ;;  %v10923_v48 = vld [vmem:[#allocation27_spill] sm:$0xff]  ;;  %v10925_v46 = vld [vmem:[#allocation26_spill] sm:$0xff] }
 0x12b   : >> { %7310 = vmatprep.mubr.msk.bf16.mxu0 %vm726_vm5, %v6715_v13  ;;  %v9772_v49 = vcombine.low %v1883_v21, %v1893_v12  ;;  %v4909_v56 = vrot.slane %v4907_v23, 4  ;;  %v4912_v52 = vrot.slane %v4910_v40, 5  ;;  %v1907_v35 = vrot.slane %v1905_v39, 4  ;;  %v10922_v13 = vld [vmem:[#allocation54_spill] sm:$0xff] }
 0x12c   : >> { %7121 = vmatmul.mubr.msk.bf16.vlgmr.msra.gmra.mrb[0].mxu1 %vm726_vm5, %v9638_v17  ;;  %v1902_v37 = vrot.slane %v1901_v34, 4  ;;  %v4916_v17 = vshll.u32 %v4859_v43, 16  ;;  %v1915_v4 = vor.u32 %v1914_v27, %v1911_v0  ;;  %v4926_v6 = vshll.u32 %v4860_v14, 16 }
 0x12d   : >> { %7153 = vmatpush3.bf16.msra.mxu1 %v9596_v36  ;;  %7124 = vmatprep.mubr.msk.bf16.mxu1 %vm726_vm5, %v9664_v55  ;;  %v4913_v24 = vor.u32 %v4912_v52, %v4909_v56  ;;  %v1918_v38 = vshrl.u32 %v10922_v13, 16  ;;  %v4922_v42 = vrot.slane %v4920_v47, 4  ;;  %v1700_v55 = vld [vmem:[%s8098_s18 + $0x98] sm:$0x3]  ;;  %v1921_v22 = vshll.u32 %v10922_v13, 16 }
 0x12e   : >> { %7718 = vmatprep.subr.msk.bf16.mxu1 %vm775_vm0, %v7855_v31  ;;  %v1906_v36 = vsel %vm9585_vm4, %v1902_v37, %v1905_v39  ;;  %v4918_v57 = vrot.slane %v4916_v17, 5  ;;  %v1916_v51 = vsel %vm9585_vm4, %v1907_v35, %v1915_v4  ;;  %v4928_v11 = vrot.slane %v4926_v6, 5  ;;  %v4863_v52 = vld [vmem:[%s8098_s18 + $0x1c] sm:$0x1]  ;;  %v1701_v13 = vld [vmem:[%s8098_s18 + $0xa8] sm:$0x3] }
 0x12f   : >> { %v4914_v28 = vrot.slane %v4913_v24, 4  ;;  %v1920_v19 = vrot.slane %v1918_v38, 5  ;;  %v9787_v61 = vcombine.low %v1906_v36, %v1916_v51  ;;  %v1923_v25 = vrot.slane %v1921_v22, 6  ;;  %v10926_v38 = vld [vmem:[#allocation55_spill] sm:$0xff] }
 0x130   : >> { %v4923_v59 = vor.u32 %v4922_v42, %v4918_v57  ;;  %v1926_v9 = vrot.slane %v10923_v48, 5  ;;  %v1927_v43 = vrot.slane %v10925_v46, 6  ;;  %v1932_v23 = vshrl.u32 %v1700_v55, 16  ;;  %v4864_v51 = vld [vmem:[%s8098_s18 + $0x24] sm:$0xf] }
 0x131   : >> { %v4919_v21 = vsel %vm8149_vm6, %v4914_v28, %v4918_v57  ;;  %v1935_v40 = vshll.u32 %v1700_v55, 16  ;;  %v1924_v34 = vor.u32 %v1923_v25, %v1920_v19  ;;  %v4931_v39 = vshrl.u32 %v4861_v8, 16  ;;  %v10927_v19 = vld [vmem:[#allocation29_spill] sm:$0xff] }
 0x132   : >> { %7311 = vmatmul.mubr.msk.bf16.gmra.mrb[20].mxu0 %vm726_vm5, %v6716_v45  ;;  %v4924_v12 = vrot.slane %v4923_v59, 4  ;;  %v4934_v0 = vshll.u32 %v4861_v8, 16  ;;  %v1928_v14 = vor.u32 %v1927_v43, %v1926_v9  ;;  %v1934_v27 = vrot.slane %v1932_v23, 5  ;;  %v10928_v59 = vld [vmem:[#allocation28_spill] sm:$0xff] }
 0x133   : >> { %7314 = vmatprep.mubr.msk.bf16.mxu0 %vm726_vm5, %v6717_v33  ;;  %v1937_v56 = vrot.slane %v1935_v40, 6  ;;  %v4940_v37 = vshll.u32 %v4862_v53, 16  ;;  %v1925_v18 = vrot.slane %v1924_v34, 4  ;;  %v4933_v45 = vrot.slane %v4931_v39, 4  ;;  %v4865_v9 = vld [vmem:[%s8098_s18 + $0x28] sm:$0xf] }
 0x134   : >> { %7125 = vmatmul.mubr.msk.bf16.gmra.mrb[4].mxu1 %vm726_vm5, %v9681_v29  ;;  %v4929_v32 = vsel %vm8149_vm6, %v4924_v12, %v4928_v11  ;;  %v4936_v29 = vrot.slane %v4934_v0, 5  ;;  %v1930_v26 = vrot.slane %v1928_v14, 4  ;;  %v4944_v4 = vshrl.u32 %v4862_v53, 16  ;;  %v4866_v39 = vld [vmem:[%s8098_s18 + $0x2c] sm:$0x1] }
 0x135   : >> { %7128 = vmatprep.mubr.msk.bf16.mxu1 %vm726_vm5, %v9711_v58  ;;  %v9809_v35 = vcombine.low %v4919_v21, %v4929_v32  ;;  %v1938_v60 = vor.u32 %v1937_v56, %v1934_v27  ;;  %v4942_v33 = vrot.slane %v4940_v37, 5  ;;  %v1929_v17 = vsel %vm9585_vm4, %v1925_v18, %v1928_v14 }
 0x136   : >> { %v4937_v47 = vor.u32 %v4936_v29, %v4933_v45  ;;  %v4950_v24 = vshll.u32 %v4863_v52, 16  ;;  %v9817_v6 = vsel %vm775_vm0, %v9613_v63, 0  ;;  %v1941_v31 = vshrl.u32 %v10926_v38, 16  ;;  %v4867_v45 = vld [vmem:[%s8098_s18 + $0x34] sm:$0xf] }
 0x137   : >> { %v1939_v58 = vsel %vm9585_vm4, %v1930_v26, %v1938_v60  ;;  %v1944_v36 = vshll.u32 %v10926_v38, 16  ;;  %v4946_v55 = vrot.slane %v4944_v4, 4  ;;  %v1949_v8 = vrot.slane %v10927_v19, 5  ;;  %v1702_v60 = vld [vmem:[%s8098_s18 + $0xb8] sm:$0x3] }
 0x138   : >> { %v9822_v57 = vcombine.low %v1929_v17, %v1939_v58  ;;  %v4938_v42 = vrot.slane %v4937_v47, 4  ;;  %v4952_v22 = vrot.slane %v4950_v24, 5  ;;  %v1943_v28 = vrot.slane %v1941_v31, 5 }
 0x139   : >> { %v1946_v11 = vrot.slane %v1944_v36, 6  ;;  %v1950_v25 = vrot.slane %v10928_v59, 6  ;;  %v4947_v53 = vor.u32 %v4946_v55, %v4942_v33  ;;  %v1955_v21 = vshrl.u32 %v1701_v13, 16  ;;  %v10931_v55 = vld [vmem:[#allocation30_spill] sm:$0xff] }
 0x13a   : >> { %7315 = vmatmul.mubr.msk.bf16.gmra.mrb[24].mxu0 %vm726_vm5, %v6718_v10  ;;  %v4943_v63 = vsel %vm8149_vm6, %v4938_v42, %v4942_v33  ;;  %v1958_v43 = vshll.u32 %v1701_v13, 16  ;;  %v4955_v50 = vshrl.u32 %v4864_v51, 16  ;;  %v4958_v41 = vshll.u32 %v4864_v51, 16  ;;  %v10929_v33 = vld [vmem:[#allocation56_spill] sm:$0xff]  ;;  %v10930_v13 = vld [vmem:[#allocation31_spill] sm:$0xff] }
 0x13b   : >> { %7318 = vmatprep.mubr.msk.bf16.mxu0 %vm726_vm5, %v6719_v1  ;;  %v1947_v23 = vor.u32 %v1946_v11, %v1943_v28  ;;  %v1951_v40 = vor.u32 %v1950_v25, %v1949_v8  ;;  %v4948_v10 = vrot.slane %v4947_v53, 4  ;;  %v1957_v12 = vrot.slane %v1955_v21, 5  ;;  %v9860_v51 = vld [vmem:[%s8098_s18 + $0x38] sm:$0xf] }
 0x13c   : >> { %7129 = vmatmul.mubr.msk.bf16.gmra.mrb[8].mxu1 %vm726_vm5, %v9728_v7  ;;  %v1960_v34 = vrot.slane %v1958_v43, 6  ;;  %v4964_v0 = vshll.u32 %v4865_v9, 16  ;;  %v4957_v27 = vrot.slane %v4955_v50, 4  ;;  %v4960_v20 = vrot.slane %v4958_v41, 5 }
 0x13d   : >> { %7132 = vmatprep.mubr.msk.bf16.mxu1 %vm726_vm5, %v9750_v62  ;;  %v1948_v7 = vrot.slane %v1947_v23, 4  ;;  %v1953_v14 = vrot.slane %v1951_v40, 4  ;;  %v4953_v30 = vsel %vm8149_vm6, %v4948_v10, %v4952_v22  ;;  %v4968_v52 = vshrl.u32 %v4865_v9, 16 }
 0x13e   : >> { %v1961_v1 = vor.u32 %v1960_v34, %v1957_v12  ;;  %v4966_v56 = vrot.slane %v4964_v0, 5  ;;  %v6740_v37 = vcombine.low %v4943_v63, %v4953_v30  ;;  %v4961_v32 = vor.u32 %v4960_v20, %v4957_v27 }
 0x13f   : >> { %v1952_v62 = vsel %vm9585_vm4, %v1948_v7, %v1951_v40  ;;  %v4974_v18 = vshll.u32 %v4866_v39, 16  ;;  %v4970_v26 = vrot.slane %v4968_v52, 4  ;;  %v1964_v17 = vshrl.u32 %v10929_v33, 16  ;;  %v9881_v7 = vld [vmem:[%s8098_s18 + $0xc8] sm:$0x3] }
 0x140   : >> { %v1962_v29 = vsel %vm9585_vm4, %v1953_v14, %v1961_v1  ;;  %v1967_v47 = vshll.u32 %v10929_v33, 16  ;;  %v4962_v24 = vrot.slane %v4961_v32, 4  ;;  %v1972_v38 = vrot.slane %v10930_v13, 5  ;;  %v10932_v14 = vld [vmem:[#allocation57_spill] sm:$0xff] }
 0x141   : >> { %v6497_v4 = vcombine.low %v1952_v62, %v1962_v29  ;;  %v4976_v58 = vrot.slane %v4974_v18, 5  ;;  %v4971_v31 = vor.u32 %v4970_v26, %v4966_v56  ;;  %v1966_v36 = vrot.slane %v1964_v17, 5  ;;  %v4870_v62 = vld [vmem:[%s8098_s18 + $0x44] sm:$0xf]  ;;  %v10934_v33 = vld [vmem:[#allocation33_spill] sm:$0xff] }
 0x142   : >> { %7319 = vmatmul.mubr.msk.bf16.gmra.mrb[28].mxu0 %vm726_vm5, %v6720_v2  ;;  %v1969_v42 = vrot.slane %v1967_v47, 6  ;;  %v1973_v22 = vrot.slane %v10931_v55, 6  ;;  %v4967_v28 = vsel %vm8149_vm6, %v4962_v24, %v4966_v56  ;;  %v1978_v44 = vshrl.u32 %v1702_v60, 16  ;;  %v10933_v56 = vld [vmem:[#allocation34_spill] sm:$0xff]  ;;  %v9896_v24 = vld [vmem:[%s8098_s18 + $0x48] sm:$0xf] }
 0x143   : >> { %7324 = vmatprep.mubr.msk.bf16.mxu0 %vm726_vm5, %v9809_v35  ;;  %v1981_v16 = vshll.u32 %v1702_v60, 16  ;;  %v4979_v2 = vshrl.u32 %v4867_v45, 16  ;;  %v4972_v11 = vrot.slane %v4971_v31, 4  ;;  %v4982_v9 = vshll.u32 %v4867_v45, 16 }
 0x144   : >> { %7133 = vmatmul.mubr.msk.bf16.gmra.mrb[12].mxu1 %vm726_vm5, %v9772_v49  ;;  %v1970_v8 = vor.u32 %v1969_v42, %v1966_v36  ;;  %v1974_v25 = vor.u32 %v1973_v22, %v1972_v38  ;;  %v1980_v63 = vrot.slane %v1978_v44, 5  ;;  %v9871_v49 = vld [vmem:[%s8098_s18 + $0x3c] sm:$0x1]  ;;  %v4988_v35 = vshll.u32 %v9860_v51, 16 }
 0x145   : >> { %7136 = vmatprep.mubr.msk.bf16.mxu1 %vm726_vm5, %v9787_v61  ;;  %v1983_v53 = vrot.slane %v1981_v16, 6  ;;  %v4981_v21 = vrot.slane %v4979_v2, 4  ;;  %v4977_v43 = vsel %vm8149_vm6, %v4972_v11, %v4976_v58  ;;  %v4984_v50 = vrot.slane %v4982_v9, 5 }
 0x146   : >> { %v1971_v23 = vrot.slane %v1970_v8, 4  ;;  %v1976_v40 = vrot.slane %v1974_v25, 4  ;;  %v6741_v61 = vcombine.low %v4967_v28, %v4977_v43  ;;  %v4990_v10 = vrot.slane %v4988_v35, 5  ;;  %v9904_v28 = vld [vmem:[%s8098_s18 + $0x4c] sm:$0x1] }
 0x147   : >> { %v1984_v41 = vor.u32 %v1983_v53, %v1980_v63  ;;  %v4992_v12 = vshrl.u32 %v9860_v51, 16  ;;  %v4985_v39 = vor.u32 %v4984_v50, %v4981_v21  ;;  %v4998_v0 = vshll.u32 %v9871_v49, 16  ;;  %v10935_v50 = vld [vmem:[#allocation58_spill] sm:$0xff] }
 0x148   : >> { %v1975_v34 = vsel %vm9585_vm4, %v1971_v23, %v1974_v25  ;;  %v1987_v27 = vshrl.u32 %v10932_v14, 16  ;;  %v1990_v1 = vshll.u32 %v10932_v14, 16  ;;  %v1995_v52 = vrot.slane %v10933_v56, 5 }
 0x149   : >> { %v1985_v20 = vsel %vm9585_vm4, %v1976_v40, %v1984_v41  ;;  %v4994_v30 = vrot.slane %v4992_v12, 4  ;;  %v4986_v18 = vrot.slane %v4985_v39, 4  ;;  %v5000_v45 = vrot.slane %v4998_v0, 5  ;;  %v9914_v40 = vld [vmem:[%s8098_s18 + $0xd8] sm:$0x3] }
 0x14a   : >> { %7325 = vmatmul.mubr.msk.bf16.vlgmr.msra.gmra.mrb[0].mxu0 %vm726_vm5, %v6740_v37  ;;  %v6498_v32 = vcombine.low %v1975_v34, %v1985_v20  ;;  %v1989_v29 = vrot.slane %v1987_v27, 5  ;;  %v1992_v60 = vrot.slane %v1990_v1, 6  ;;  %v1996_v17 = vrot.slane %v10934_v33, 6  ;;  %v10936_v34 = vld [vmem:[#allocation39_spill] sm:$0xff]  ;;  %v4873_v0 = vld [vmem:[%s8098_s18 + $0x54] sm:$0xf] }
 0x14b   : >> { %7357 = vmatpush3.bf16.msra.mxu0 %v9817_v6  ;;  %v4995_v26 = vor.u32 %v4994_v30, %v4990_v10  ;;  %v2001_v47 = vshrl.u32 %v9881_v7, 16  ;;  %7328 = vmatprep.mubr.msk.bf16.mxu0 %vm726_vm5, %v6741_v61  ;;  %v4991_v37 = vsel %vm8149_vm6, %v4986_v18, %v4990_v10  ;;  %v5003_v58 = vshrl.u32 %v4870_v62, 16  ;;  %v9925_v1 = vld [vmem:[%s8098_s18 + $0x58] sm:$0xf]  ;;  %v10937_v18 = vld [vmem:[#allocation37_spill] sm:$0xff] }
 0x14c   : >> { %7137 = vmatmul.mubr.msk.bf16.gmra.mrb[16].mxu1 %vm726_vm5, %v9822_v57  ;;  %v2004_v57 = vshll.u32 %v9881_v7, 16  ;;  %v5006_v6 = vshll.u32 %v4870_v62, 16  ;;  %v1993_v31 = vor.u32 %v1992_v60, %v1989_v29  ;;  %v1997_v36 = vor.u32 %v1996_v17, %v1995_v52 }
 0x14d   : >> { %7140 = vmatprep.mubr.msk.bf16.mxu1 %vm726_vm5, %v6497_v4  ;;  %v4996_v38 = vrot.slane %v4995_v26, 4  ;;  %v2003_v42 = vrot.slane %v2001_v47, 5  ;;  %v5005_v44 = vrot.slane %v5003_v58, 4  ;;  %v5012_v4 = vshll.u32 %v9896_v24, 16  ;;  %v9934_v58 = vld [vmem:[%s8098_s18 + $0x5c] sm:$0x1] }
 0x14e   : >> { %v2006_v22 = vrot.slane %v2004_v57, 6  ;;  %v5008_v16 = vrot.slane %v5006_v6, 5  ;;  %v1994_v11 = vrot.slane %v1993_v31, 4  ;;  %v1999_v8 = vrot.slane %v1997_v36, 4 }
 0x14f   : >> { %v5001_v2 = vsel %vm8149_vm6, %v4996_v38, %v5000_v45  ;;  %v5016_v25 = vshrl.u32 %v9896_v24, 16  ;;  %v5014_v21 = vrot.slane %v5012_v4, 5  ;;  %v5022_v23 = vshll.u32 %v9904_v28, 16 }
 0x150   : >> { %v6742_v9 = vcombine.low %v4991_v37, %v5001_v2  ;;  %v2007_v63 = vor.u32 %v2006_v22, %v2003_v42  ;;  %v5009_v53 = vor.u32 %v5008_v16, %v5005_v44  ;;  %v1998_v35 = vsel %vm9585_vm4, %v1994_v11, %v1997_v36 }
 0x151   : >> { %v5018_v43 = vrot.slane %v5016_v25, 4  ;;  %v2010_v61 = vshrl.u32 %v10935_v50, 16  ;;  %v2013_v12 = vshll.u32 %v10935_v50, 16  ;;  %v2018_v39 = vrot.slane %v10936_v34, 5 }
 0x152   : >> { %7329 = vmatmul.mubr.msk.bf16.gmra.mrb[4].mxu0 %vm726_vm5, %v6742_v9  ;;  %v2008_v41 = vsel %vm9585_vm4, %v1999_v8, %v2007_v63  ;;  %v5010_v10 = vrot.slane %v5009_v53, 4  ;;  %v5024_v20 = vrot.slane %v5022_v23, 5  ;;  %v2019_v45 = vrot.slane %v10937_v18, 6  ;;  %v9945_v63 = vld [vmem:[%s8098_s18 + $0xe8] sm:$0x3]  ;;  %v10938_v53 = vld [vmem:[#allocation59_spill] sm:$0xff] }
 0x153   : >> { %v6499_v14 = vcombine.low %v1998_v35, %v2008_v41  ;;  %v5019_v27 = vor.u32 %v5018_v43, %v5014_v21  ;;  %v2012_v30 = vrot.slane %v2010_v61, 5  ;;  %v2015_v62 = vrot.slane %v2013_v12, 6  ;;  %v10939_v43 = vld [vmem:[#allocation42_spill] sm:$0xff]  ;;  %v4876_v12 = vld [vmem:[%s8098_s18 + $0x64] sm:$0xf] }
 0x154   : >> { %7141 = vmatmul.mubr.msk.bf16.gmra.mrb[20].mxu1 %vm726_vm5, %v6498_v32  ;;  %v5015_v52 = vsel %vm8149_vm6, %v5010_v10, %v5014_v21  ;;  %v2024_v29 = vshrl.u32 %v9914_v40, 16  ;;  %v2027_v32 = vshll.u32 %v9914_v40, 16  ;;  %v5027_v60 = vshrl.u32 %v4873_v0, 16 }
 0x155   : >> { %7144 = vmatprep.mubr.msk.bf16.mxu1 %vm726_vm5, %v6499_v14  ;;  %v5020_v26 = vrot.slane %v5019_v27, 4  ;;  %v5030_v17 = vshll.u32 %v4873_v0, 16  ;;  %v2016_v47 = vor.u32 %v2015_v62, %v2012_v30  ;;  %v2020_v37 = vor.u32 %v2019_v45, %v2018_v39  ;;  %v10940_v27 = vld [vmem:[#allocation41_spill] sm:$0xff]  ;;  %v9955_v30 = vld [vmem:[%s8098_s18 + $0x68] sm:$0xf] }
 0x156   : >> { %v2026_v57 = vrot.slane %v2024_v29, 5  ;;  %v5036_v6 = vshll.u32 %v9925_v1, 16  ;;  %v2029_v31 = vrot.slane %v2027_v32, 6  ;;  %v5029_v36 = vrot.slane %v5027_v60, 4 }
 0x157   : >> { %v5025_v38 = vsel %vm8149_vm6, %v5020_v26, %v5024_v20  ;;  %v5032_v42 = vrot.slane %v5030_v17, 5  ;;  %v2017_v44 = vrot.slane %v2016_v47, 4  ;;  %v2022_v16 = vrot.slane %v2020_v37, 4 }
 0x158   : >> { %v6743_v22 = vcombine.low %v5015_v52, %v5025_v38  ;;  %v5038_v4 = vrot.slane %v5036_v6, 5  ;;  %v2030_v2 = vor.u32 %v2029_v31, %v2026_v57  ;;  %v5040_v8 = vshrl.u32 %v9925_v1, 16  ;;  %v9963_v6 = vld [vmem:[%s8098_s18 + $0x6c] sm:$0x1] }
 0x159   : >> { %v5033_v11 = vor.u32 %v5032_v42, %v5029_v36  ;;  %v5046_v25 = vshll.u32 %v9934_v58, 16  ;;  %v2021_v9 = vsel %vm9585_vm4, %v2017_v44, %v2020_v37  ;;  %v2033_v21 = vshrl.u32 %v10938_v53, 16 }
 0x15a   : >> { %7332 = vmatprep.mubr.msk.bf16.mxu0 %vm726_vm5, %v6743_v22  ;;  %v2036_v35 = vshll.u32 %v10938_v53, 16  ;;  %v2041_v23 = vrot.slane %v10939_v43, 5  ;;  %v2031_v50 = vsel %vm9585_vm4, %v2022_v16, %v2030_v2  ;;  %v5042_v41 = vrot.slane %v5040_v8, 4  ;;  %v9973_v53 = vld [vmem:[%s8098_s18 + $0xf8] sm:$0x3] }
 0x15b   : >> { %v5034_v61 = vrot.slane %v5033_v11, 4  ;;  %v5048_v10 = vrot.slane %v5046_v25, 5  ;;  %v6500_v39 = vcombine.low %v2021_v9, %v2031_v50  ;;  %v2035_v0 = vrot.slane %v2033_v21, 5 }
 0x15c   : >> { %v2038_v14 = vrot.slane %v2036_v35, 6  ;;  %v2042_v20 = vrot.slane %v10940_v27, 6  ;;  %v5043_v62 = vor.u32 %v5042_v41, %v5038_v4  ;;  %v2047_v45 = vshrl.u32 %v9945_v63, 16  ;;  %v4879_v41 = vld [vmem:[%s8098_s18 + $0x74] sm:$0xf] }
 0x15d   : >> { %v5039_v52 = vsel %vm8149_vm6, %v5034_v61, %v5038_v4  ;;  %v2050_v29 = vshll.u32 %v9945_v63, 16  ;;  %7145 = vmatmul.mubr.msk.bf16.gmra.mrb[24].mxu1 %vm726_vm5, %v6500_v39  ;;  %v5051_v60 = vshrl.u32 %v4876_v12, 16  ;;  %v5054_v17 = vshll.u32 %v4876_v12, 16  ;;  %v7872_v27 = vld [vmem:[%s8098_s18 + $0x58] sm:$0x3] }
 0x15e   : >> { %v2039_v26 = vor.u32 %v2038_v14, %v2035_v0  ;;  %v2043_v32 = vor.u32 %v2042_v20, %v2041_v23  ;;  %v5044_v47 = vrot.slane %v5043_v62, 4  ;;  %v2049_v37 = vrot.slane %v2047_v45, 5  ;;  %v10941_v23 = vld [vmem:[#allocation60_spill] sm:$0xff]  ;;  %v10942_v0 = vld [vmem:[#allocation46_spill] sm:$0xff]  ;;  %v10943_v45 = vld [vmem:[#allocation45_spill] sm:$0xff] }
 0x15f   : >> { %v2052_v57 = vrot.slane %v2050_v29, 6  ;;  %v5060_v38 = vshll.u32 %v9955_v30, 16  ;;  %v5053_v42 = vrot.slane %v5051_v60, 4  ;;  %v5056_v22 = vrot.slane %v5054_v17, 5 }
 0x160   : >> { %v2040_v31 = vrot.slane %v2039_v26, 4  ;;  %v2045_v36 = vrot.slane %v2043_v32, 4  ;;  %v5049_v44 = vsel %vm8149_vm6, %v5044_v47, %v5048_v10  ;;  %v5064_v2 = vshrl.u32 %v9955_v30, 16  ;;  %v9984_v26 = vld [vmem:[%s8098_s18 + $0x78] sm:$0xf] }
 0x161   : >> { %v2053_v16 = vor.u32 %v2052_v57, %v2049_v37  ;;  %v5062_v4 = vrot.slane %v5060_v38, 5  ;;  %v6744_v11 = vcombine.low %v5039_v52, %v5049_v44  ;;  %v5057_v25 = vor.u32 %v5056_v22, %v5053_v42  ;;  %v9992_v22 = vld [vmem:[%s8098_s18 + $0x7c] sm:$0x1] }
 0x162   : >> { %v2044_v8 = vsel %vm9585_vm4, %v2040_v31, %v2043_v32  ;;  %v5070_v9 = vshll.u32 %v9963_v6, 16  ;;  %v5066_v35 = vrot.slane %v5064_v2, 4  ;;  %v2056_v50 = vshrl.u32 %v10941_v23, 16 }
 0x163   : >> { %v2054_v21 = vsel %vm9585_vm4, %v2045_v36, %v2053_v16  ;;  %v2059_v61 = vshll.u32 %v10941_v23, 16  ;;  %7333 = vmatmul.mubr.msk.bf16.gmra.mrb[8].mxu0 %vm726_vm5, %v6744_v11  ;;  %v5058_v12 = vrot.slane %v5057_v25, 4  ;;  %v2064_v14 = vrot.slane %v10942_v0, 5 }
 0x164   : >> { %v6501_v10 = vcombine.low %v2044_v8, %v2054_v21  ;;  %v5072_v39 = vrot.slane %v5070_v9, 5  ;;  %v5067_v20 = vor.u32 %v5066_v35, %v5062_v4  ;;  %v2058_v52 = vrot.slane %v2056_v50, 5 }
 0x165   : >> { %v2061_v62 = vrot.slane %v2059_v61, 6  ;;  %v2065_v29 = vrot.slane %v10943_v45, 6  ;;  %v5063_v32 = vsel %vm8149_vm6, %v5058_v12, %v5062_v4  ;;  %v2070_v60 = vshrl.u32 %v9973_v53, 16  ;;  %v10106_v45 = vld [vmem:[%s8098_s18 + $0xc8] sm:$0xf] }
 0x166   : >> { %7148 = vmatprep.mubr.msk.bf16.mxu1 %vm726_vm5, %v6501_v10  ;;  %v2073_v17 = vshll.u32 %v9973_v53, 16  ;;  %v5075_v47 = vshrl.u32 %v4879_v41, 16  ;;  %v5068_v37 = vrot.slane %v5067_v20, 4  ;;  %v5078_v31 = vshll.u32 %v4879_v41, 16  ;;  %v4882_v41 = vld [vmem:[%s8098_s18 + $0x84] sm:$0xf] }
 0x167   : >> { %v2062_v57 = vor.u32 %v2061_v62, %v2058_v52  ;;  %v2066_v38 = vor.u32 %v2065_v29, %v2064_v14  ;;  %v2072_v36 = vrot.slane %v2070_v60, 5  ;;  %v5084_v16 = vshll.u32 %v9984_v26, 16  ;;  %v7856_v14 = vld [vmem:[%s8098_s18] sm:$0xc]  ;;  %v7857_v52 = vld [vmem:[%s8098_s18 + $0x4] sm:$0xf] }
 0x168   : >> { %v2075_v42 = vrot.slane %v2073_v17, 6  ;;  %v5077_v44 = vrot.slane %v5075_v47, 4  ;;  %v5073_v4 = vsel %vm8149_vm6, %v5068_v37, %v5072_v39  ;;  %v5080_v8 = vrot.slane %v5078_v31, 5  ;;  %v10013_v29 = vld [vmem:[%s8098_s18 + $0x88] sm:$0xf] }
 0x169   : >> { %v2063_v2 = vrot.slane %v2062_v57, 4  ;;  %v2068_v11 = vrot.slane %v2066_v38, 4  ;;  %v6745_v25 = vcombine.low %v5063_v32, %v5073_v4  ;;  %v5086_v21 = vrot.slane %v5084_v16, 5  ;;  %v7858_v47 = vld [vmem:[%s8098_s18 + $0x8] sm:$0x3] }
 0x16a   : >> { %v2076_v9 = vor.u32 %v2075_v42, %v2072_v36  ;;  %v5088_v35 = vshrl.u32 %v9984_v26, 16  ;;  %v5081_v50 = vor.u32 %v5080_v8, %v5077_v44  ;;  %v5094_v61 = vshll.u32 %v9992_v22, 16 }
 0x16b   : >> { %v2067_v23 = vsel %vm9585_vm4, %v2063_v2, %v2066_v38  ;;  %7336 = vmatprep.mubr.msk.bf16.mxu0 %vm726_vm5, %v6745_v25  ;;  %v6519_v20 = vrot.slane %v7856_v14, 10  ;;  %v2427_v62 = vrot.slane %v7857_v52, 6  ;;  %v2430_v37 = vrot.slane %v7858_v47, 6  ;;  %v10039_v47 = vld [vmem:[%s8098_s18 + $0x9c] sm:$0x1] }
 0x16c   : >> { %v2077_v10 = vsel %vm9585_vm4, %v2068_v11, %v2076_v9  ;;  %v5090_v12 = vrot.slane %v5088_v35, 4  ;;  %v5082_v60 = vrot.slane %v5081_v50, 4  ;;  %v5096_v17 = vrot.slane %v5094_v61, 5  ;;  %v4885_v9 = vld [vmem:[%s8098_s18 + $0x94] sm:$0xf] }
 0x16d   : >> { %v6502_v32 = vcombine.low %v2067_v23, %v2077_v10  ;;  %v2428_v38 = vsel %vm10006_vm9, %v6519_v20, %v2427_v62  ;;  %v2429_v31 = vrot.slane %v2427_v62, 4  ;;  %v5099_v36 = vshrl.u32 %v4882_v41, 16  ;;  %v10031_v61 = vld [vmem:[%s8098_s18 + $0x98] sm:$0xf] }
 0x16e   : >> { %v5091_v57 = vor.u32 %v5090_v12, %v5086_v21  ;;  %v5087_v42 = vsel %vm8149_vm6, %v5082_v60, %v5086_v21  ;;  %v5102_v44 = vshll.u32 %v4882_v41, 16  ;;  %v5108_v16 = vshll.u32 %v10013_v29, 16  ;;  %v7859_v12 = vld [vmem:[%s8098_s18 + $0x14] sm:$0xf]  ;;  %v7860_v20 = vld [vmem:[%s8098_s18 + $0x18] sm:$0x3] }
 0x16f   : >> { %7149 = vmatmul.mubr.msk.bf16.gmra.mrb[28].mxu1 %vm726_vm5, %v6502_v32  ;;  %v5112_v4 = vshrl.u32 %v10013_v29, 16  ;;  %v2431_v11 = vsel %vm10006_vm9, %v2429_v31, %v2430_v37  ;;  %v5101_v8 = vrot.slane %v5099_v36, 4  ;;  %v5118_v25 = vshll.u32 %v10017_v3, 16 }
 0x170   : >> { %v5092_v2 = vrot.slane %v5091_v57, 4  ;;  %v6537_v35 = vcombine.low %v2428_v38, %v2431_v11  ;;  %v5104_v23 = vrot.slane %v5102_v44, 5  ;;  %v5110_v50 = vrot.slane %v5108_v16, 5  ;;  %v10946_v57 = vld [vmem:[#allocation11_spill] sm:$0xff] }
 0x171   : >> { %v5114_v21 = vrot.slane %v5112_v4, 4  ;;  %v5120_v10 = vrot.slane %v5118_v25, 5  ;;  %v2434_v14 = vrot.slane %v7859_v12, 6  ;;  %v2437_v52 = vrot.slane %v7860_v20, 6 }
 0x172   : >> { %v5097_v41 = vsel %vm8149_vm6, %v5092_v2, %v5096_v17  ;;  %7154 = vmatprep.mubr.msk.bf16.mxu1 %vm726_vm5, %v6537_v35  ;;  %v5105_v32 = vor.u32 %v5104_v23, %v5101_v8  ;;  %v5123_v37 = vshrl.u32 %v4885_v9, 16  ;;  %v10947_v38 = vrot.slane %v10946_v57, 10  ;;  %v7862_v57 = vld [vmem:[%s8098_s18 + $0x24] sm:$0xf] }
 0x173   : >> { %v6746_v62 = vcombine.low %v5087_v42, %v5097_v41  ;;  %v5115_v60 = vor.u32 %v5114_v21, %v5110_v50  ;;  %v2436_v17 = vrot.slane %v2434_v14, 4  ;;  %v5126_v36 = vshll.u32 %v4885_v9, 16  ;;  %v4888_v9 = vld [vmem:[%s8098_s18 + $0xa4] sm:$0xf] }
 0x174   : >> { %v2435_v31 = vsel %vm10006_vm9, %v10947_v38, %v2434_v14  ;;  %v5132_v44 = vshll.u32 %v10031_v61, 16  ;;  %v5106_v42 = vrot.slane %v5105_v32, 4  ;;  %v5125_v4 = vrot.slane %v5123_v37, 4  ;;  %v10057_v14 = vld [vmem:[%s8098_s18 + $0xa8] sm:$0xf] }
 0x175   : >> { %7337 = vmatmul.mubr.msk.bf16.gmra.mrb[12].mxu0 %vm726_vm5, %v6746_v62  ;;  %v5116_v16 = vrot.slane %v5115_v60, 4  ;;  %v5136_v2 = vshrl.u32 %v10031_v61, 16  ;;  %v2438_v11 = vsel %vm10006_vm9, %v2436_v17, %v2437_v52  ;;  %v5128_v8 = vrot.slane %v5126_v36, 5  ;;  %v7861_v32 = vld [vmem:[%s8098_s18 + $0x20] sm:$0xc] }
 0x176   : >> { %v5134_v25 = vrot.slane %v5132_v44, 5  ;;  %v5142_v35 = vshll.u32 %v10039_v47, 16  ;;  %v5111_v23 = vsel %vm8149_vm6, %v5106_v42, %v5110_v50  ;;  %v6538_v41 = vcombine.low %v2435_v31, %v2438_v11  ;;  %v7863_v17 = vld [vmem:[%s8098_s18 + $0x28] sm:$0x3]  ;;  %v10066_v44 = vld [vmem:[%s8098_s18 + $0xac] sm:$0x1] }
 0x177   : >> { %v5121_v21 = vsel %vm8149_vm6, %v5116_v16, %v5120_v10  ;;  %v5138_v12 = vrot.slane %v5136_v2, 4  ;;  %v5129_v52 = vor.u32 %v5128_v8, %v5125_v4  ;;  %v6521_v60 = vrot.slane %v7861_v32, 10  ;;  %v10948_v10 = vld [vmem:[#allocation7_spill] sm:$0xff] }
 0x178   : >> { %v6747_v20 = vcombine.low %v5111_v23, %v5121_v21  ;;  %v5144_v62 = vrot.slane %v5142_v35, 5  ;;  %7155 = vmatmul.mubr.msk.bf16.vlgmr.msra.gmra.mrb[0].mxu1 %vm726_vm5, %v6538_v41  ;;  %v2441_v38 = vrot.slane %v7862_v57, 6  ;;  %v2444_v50 = vrot.slane %v7863_v17, 6  ;;  %v10082_v57 = vld [vmem:[%s8098_s18 + $0xb8] sm:$0xf] }
 0x179   : >> { %v5139_v37 = vor.u32 %v5138_v12, %v5134_v25  ;;  %v5147_v36 = vshrl.u32 %v4888_v9, 16  ;;  %7391 = vmatpush3.bf16.msra.mxu1 %v10948_v10  ;;  %v5130_v31 = vrot.slane %v5129_v52, 4  ;;  %v5150_v42 = vshll.u32 %v4888_v9, 16  ;;  %v4891_v9 = vld [vmem:[%s8098_s18 + $0xb4] sm:$0xf] }
 0x17a   : >> { %7340 = vmatprep.mubr.msk.bf16.mxu0 %vm726_vm5, %v6747_v20  ;;  %v5156_v16 = vshll.u32 %v10057_v14, 16  ;;  %v5160_v4 = vshrl.u32 %v10057_v14, 16  ;;  %v2442_v11 = vsel %vm10006_vm9, %v6521_v60, %v2441_v38  ;;  %v2443_v8 = vrot.slane %v2441_v38, 4  ;;  %v7864_v60 = vld [vmem:[%s8098_s18 + $0x30] sm:$0xc] }
 0x17b   : >> { %v5140_v2 = vrot.slane %v5139_v37, 4  ;;  %v5149_v35 = vrot.slane %v5147_v36, 4  ;;  %v5135_v23 = vsel %vm8149_vm6, %v5130_v31, %v5134_v25  ;;  %v5152_v21 = vrot.slane %v5150_v42, 5  ;;  %v7865_v31 = vld [vmem:[%s8098_s18 + $0x34] sm:$0xf] }
 0x17c   : >> { %v5158_v41 = vrot.slane %v5156_v16, 5  ;;  %v5162_v12 = vrot.slane %v5160_v4, 4  ;;  %v2445_v52 = vsel %vm10006_vm9, %v2443_v8, %v2444_v50  ;;  %v5166_v32 = vshll.u32 %v10066_v44, 16  ;;  %v7866_v16 = vld [vmem:[%s8098_s18 + $0x38] sm:$0x3] }
 0x17d   : >> { %v5145_v20 = vsel %vm8149_vm6, %v5140_v2, %v5144_v62  ;;  %v6522_v37 = vrot.slane %v7864_v60, 10  ;;  %v6539_v38 = vcombine.low %v2442_v11, %v2445_v52  ;;  %v5153_v17 = vor.u32 %v5152_v21, %v5149_v35  ;;  %v10089_v8 = vld [vmem:[%s8098_s18 + $0xbc] sm:$0x1] }
 0x17e   : >> { %v6748_v25 = vcombine.low %v5135_v23, %v5145_v20  ;;  %v5163_v36 = vor.u32 %v5162_v12, %v5158_v41  ;;  %v5168_v10 = vrot.slane %v5166_v32, 5  ;;  %v2448_v42 = vrot.slane %v7865_v31, 6 }
 0x17f   : >> { %v2451_v4 = vrot.slane %v7866_v16, 6  ;;  %v5171_v62 = vshrl.u32 %v4891_v9, 16  ;;  %7158 = vmatprep.mubr.msk.bf16.mxu1 %vm726_vm5, %v6539_v38  ;;  %v5154_v50 = vrot.slane %v5153_v17, 4  ;;  %v5174_v60 = vshll.u32 %v4891_v9, 16  ;;  %v7867_v16 = vld [vmem:[%s8098_s18 + $0x40] sm:$0xc] }
 0x180   : >> { %7341 = vmatmul.mubr.msk.bf16.gmra.mrb[16].mxu0 %vm726_vm5, %v6748_v25  ;;  %v5164_v2 = vrot.slane %v5163_v36, 4  ;;  %v5180_v11 = vshll.u32 %v10082_v57, 16  ;;  %v2449_v35 = vsel %vm10006_vm9, %v6522_v37, %v2448_v42  ;;  %v2450_v23 = vrot.slane %v2448_v42, 4  ;;  %v4894_v25 = vld [vmem:[%s8098_s18 + $0xc4] sm:$0xf] }
 0x181   : >> { %v5173_v21 = vrot.slane %v5171_v62, 4  ;;  %v5184_v12 = vshrl.u32 %v10082_v57, 16  ;;  %v5159_v20 = vsel %vm8149_vm6, %v5154_v50, %v5158_v41  ;;  %v5176_v32 = vrot.slane %v5174_v60, 5  ;;  %v7868_v41 = vld [vmem:[%s8098_s18 + $0x44] sm:$0xf] }
 0x182   : >> { %v5169_v52 = vsel %vm8149_vm6, %v5164_v2, %v5168_v10  ;;  %v5182_v9 = vrot.slane %v5180_v11, 5  ;;  %v2452_v37 = vsel %vm10006_vm9, %v2450_v23, %v2451_v4  ;;  %v5190_v36 = vshll.u32 %v10089_v8, 16  ;;  %v7869_v60 = vld [vmem:[%s8098_s18 + $0x48] sm:$0x3] }
 0x183   : >> { %v6749_v38 = vcombine.low %v5159_v20, %v5169_v52  ;;  %v5186_v17 = vrot.slane %v5184_v12, 4  ;;  %v6540_v31 = vcombine.low %v2449_v35, %v2452_v37  ;;  %v5177_v42 = vor.u32 %v5176_v32, %v5173_v21  ;;  %v10111_v20 = vld [vmem:[%s8098_s18 + $0xcc] sm:$0x1] }
 0x184   : >> { %v6523_v62 = vrot.slane %v7867_v16, 10  ;;  %v2455_v50 = vrot.slane %v7868_v41, 6  ;;  %v5192_v2 = vrot.slane %v5190_v36, 5  ;;  %v2458_v11 = vrot.slane %v7869_v60, 6  ;;  %v4897_v16 = vld [vmem:[%s8098_s18 + $0xd4] sm:$0xf] }
 0x185   : >> { %7344 = vmatprep.mubr.msk.bf16.mxu0 %vm726_vm5, %v6749_v38  ;;  %v5187_v10 = vor.u32 %v5186_v17, %v5182_v9  ;;  %v5195_v4 = vshrl.u32 %v4894_v25, 16  ;;  %7159 = vmatmul.mubr.msk.bf16.gmra.mrb[4].mxu1 %vm726_vm5, %v6540_v31  ;;  %v5178_v35 = vrot.slane %v5177_v42, 4  ;;  %v5198_v12 = vshll.u32 %v4894_v25, 16 }
 0x186   : >> { %v2456_v23 = vsel %vm10006_vm9, %v6523_v62, %v2455_v50  ;;  %v2457_v21 = vrot.slane %v2455_v50, 4  ;;  %v5204_v38 = vshll.u32 %v10106_v45, 16  ;;  %v5208_v37 = vshrl.u32 %v10106_v45, 16 }
 0x187   : >> { %v5188_v52 = vrot.slane %v5187_v10, 4  ;;  %v5197_v32 = vrot.slane %v5195_v4, 4  ;;  %v5183_v17 = vsel %vm8149_vm6, %v5178_v35, %v5182_v9  ;;  %v5200_v31 = vrot.slane %v5198_v12, 5  ;;  %v10127_v10 = vld [vmem:[%s8098_s18 + $0xd8] sm:$0xf] }
 0x188   : >> { %v2459_v36 = vsel %vm10006_vm9, %v2457_v21, %v2458_v11  ;;  %v5214_v42 = vshll.u32 %v10111_v20, 16  ;;  %v5206_v41 = vrot.slane %v5204_v38, 5  ;;  %v5210_v50 = vrot.slane %v5208_v37, 4  ;;  %10949 = vst [vmem:[#allocation35_spill] sm:$0xff] %v10127_v10  ;;  %v7870_v35 = vld [vmem:[%s8098_s18 + $0x50] sm:$0xc] }
 0x189   : >> { %v5193_v25 = vsel %vm8149_vm6, %v5188_v52, %v5192_v2  ;;  %v6541_v62 = vcombine.low %v2456_v23, %v2459_v36  ;;  %v5201_v9 = vor.u32 %v5200_v31, %v5197_v32  ;;  %v6524_v11 = vrot.slane %v7870_v35, 10  ;;  %v7871_v12 = vld [vmem:[%s8098_s18 + $0x54] sm:$0xf]  ;;  %v10135_v52 = vld [vmem:[%s8098_s18 + $0xdc] sm:$0x1] }
 0x18a   : >> { %v6750_v60 = vcombine.low %v5183_v17, %v5193_v25  ;;  %v5216_v4 = vrot.slane %v5214_v42, 5  ;;  %v5211_v21 = vor.u32 %v5210_v50, %v5206_v41  ;;  %v2462_v0 = vrot.slane %v7871_v12, 6 }
 0x18b   : >> { %7162 = vmatprep.mubr.msk.bf16.mxu1 %vm726_vm5, %v6541_v62  ;;  %v2465_v43 = vrot.slane %v7872_v27, 6  ;;  %v5219_v2 = vshrl.u32 %v4897_v16, 16  ;;  %v5202_v23 = vrot.slane %v5201_v9, 4  ;;  %v5222_v38 = vshll.u32 %v4897_v16, 16  ;;  %v4900_v16 = vld [vmem:[%s8098_s18 + $0xe4] sm:$0xf] }
 0x18c   : >> { %7345 = vmatmul.mubr.msk.bf16.gmra.mrb[20].mxu0 %vm726_vm5, %v6750_v60  ;;  %v5228_v32 = vshll.u32 %v10127_v10, 16  ;;  %v5232_v37 = vshrl.u32 %v10127_v10, 16  ;;  %v5212_v17 = vrot.slane %v5211_v21, 4  ;;  %v2463_v36 = vsel %vm10006_vm9, %v6524_v11, %v2462_v0  ;;  %v7873_v11 = vld [vmem:[%s8098_s18 + $0x60] sm:$0xc] }
 0x18d   : >> { %v2464_v31 = vrot.slane %v2462_v0, 4  ;;  %v5221_v27 = vrot.slane %v5219_v2, 4  ;;  %v5207_v42 = vsel %vm8149_vm6, %v5202_v23, %v5206_v41  ;;  %v5224_v25 = vrot.slane %v5222_v38, 5  ;;  %v10151_v21 = vld [vmem:[%s8098_s18 + $0xe8] sm:$0xf] }
 0x18e   : >> { %v5230_v62 = vrot.slane %v5228_v32, 5  ;;  %v5234_v50 = vrot.slane %v5232_v37, 4  ;;  %v5217_v60 = vsel %vm8149_vm6, %v5212_v17, %v5216_v4  ;;  %v5238_v35 = vshll.u32 %v10135_v52, 16  ;;  %10950 = vst [vmem:[#allocation36_spill] sm:$0xff] %v10151_v21  ;;  %v7874_v32 = vld [vmem:[%s8098_s18 + $0x64] sm:$0xf] }
 0x18f   : >> { %v2466_v9 = vsel %vm10006_vm9, %v2464_v31, %v2465_v43  ;;  %v6525_v0 = vrot.slane %v7873_v11, 10  ;;  %v6751_v41 = vcombine.low %v5207_v42, %v5217_v60  ;;  %v5225_v2 = vor.u32 %v5224_v25, %v5221_v27  ;;  %v7875_v10 = vld [vmem:[%s8098_s18 + $0x68] sm:$0x3]  ;;  %v10158_v31 = vld [vmem:[%s8098_s18 + $0xec] sm:$0x1] }
 0x190   : >> { %v6542_v12 = vcombine.low %v2463_v36, %v2466_v9  ;;  %v5235_v23 = vor.u32 %v5234_v50, %v5230_v62  ;;  %v5240_v38 = vrot.slane %v5238_v35, 5  ;;  %v2469_v37 = vrot.slane %v7874_v32, 6  ;;  %10951 = vst [vmem:[#allocation13_spill] sm:$0xff] %v10158_v31  ;;  %v4903_v35 = vld [vmem:[%s8098_s18 + $0xf4] sm:$0xf] }
 0x191   : >> { %v2472_v18 = vrot.slane %v7875_v10, 6  ;;  %v5243_v4 = vshrl.u32 %v4900_v16, 16  ;;  %7348 = vmatprep.mubr.msk.bf16.mxu0 %vm726_vm5, %v6751_v41  ;;  %v5226_v43 = vrot.slane %v5225_v2, 4  ;;  %v5246_v11 = vshll.u32 %v4900_v16, 16 }
 0x192   : >> { %7163 = vmatmul.mubr.msk.bf16.gmra.mrb[8].mxu1 %vm726_vm5, %v6542_v12  ;;  %v5236_v17 = vrot.slane %v5235_v23, 4  ;;  %v5252_v36 = vshll.u32 %v10151_v21, 16  ;;  %v2470_v27 = vsel %vm10006_vm9, %v6525_v0, %v2469_v37  ;;  %v2471_v42 = vrot.slane %v2469_v37, 4  ;;  %v7876_v37 = vld [vmem:[%s8098_s18 + $0x70] sm:$0xc] }
 0x193   : >> { %v5245_v10 = vrot.slane %v5243_v4, 4  ;;  %v5256_v25 = vshrl.u32 %v10151_v21, 16  ;;  %v5231_v50 = vsel %vm8149_vm6, %v5226_v43, %v5230_v62  ;;  %v5248_v9 = vrot.slane %v5246_v11, 5  ;;  %v7877_v62 = vld [vmem:[%s8098_s18 + $0x74] sm:$0xf] }
 0x194   : >> { %v5241_v60 = vsel %vm8149_vm6, %v5236_v17, %v5240_v38  ;;  %v5254_v16 = vrot.slane %v5252_v36, 5  ;;  %v2473_v0 = vsel %vm10006_vm9, %v2471_v42, %v2472_v18  ;;  %v5262_v2 = vshll.u32 %v10158_v31, 16  ;;  %v10175_v21 = vld [vmem:[%s8098_s18 + $0xf8] sm:$0xf] }
 0x195   : >> { %v6752_v41 = vcombine.low %v5231_v50, %v5241_v60  ;;  %v5258_v12 = vrot.slane %v5256_v25, 4  ;;  %v6543_v23 = vcombine.low %v2470_v27, %v2473_v0  ;;  %v5249_v32 = vor.u32 %v5248_v9, %v5245_v10  ;;  %10952 = vst [vmem:[#allocation12_spill] sm:$0xff] %v10175_v21  ;;  %v7878_v11 = vld [vmem:[%s8098_s18 + $0x78] sm:$0x3]  ;;  %v10180_v50 = vld [vmem:[%s8098_s18 + $0xfc] sm:$0x1] }
 0x196   : >> { %v6526_v4 = vrot.slane %v7876_v37, 10  ;;  %v2476_v43 = vrot.slane %v7877_v62, 6  ;;  %v5264_v17 = vrot.slane %v5262_v2, 5  ;;  %v2479_v36 = vrot.slane %v7878_v11, 6  ;;  %10953 = vst [vmem:[#allocation38_spill] sm:$0xff] %v10180_v50 }
 0x197   : >> { %7349 = vmatmul.mubr.msk.bf16.gmra.mrb[24].mxu0 %vm726_vm5, %v6752_v41  ;;  %v5259_v38 = vor.u32 %v5258_v12, %v5254_v16  ;;  %v5267_v18 = vshrl.u32 %v4903_v35, 16  ;;  %7166 = vmatprep.mubr.msk.bf16.mxu1 %vm726_vm5, %v6543_v23  ;;  %v5250_v27 = vrot.slane %v5249_v32, 4  ;;  %v5270_v25 = vshll.u32 %v4903_v35, 16  ;;  %v10188_v12 = vld [vmem:[%s8098_s18 + $0x80] sm:$0xc] }
 0x198   : >> { %v2477_v42 = vsel %vm10006_vm9, %v6526_v4, %v2476_v43  ;;  %v2478_v10 = vrot.slane %v2476_v43, 4  ;;  %v5276_v41 = vshll.u32 %v10175_v21, 16  ;;  %v5280_v0 = vshrl.u32 %v10175_v21, 16  ;;  %v5586_v35 = vld [vmem:[%s8098_s18 + $0x4] sm:$0xe] }
 0x199   : >> { %v5260_v60 = vrot.slane %v5259_v38, 4  ;;  %v5269_v9 = vrot.slane %v5267_v18, 4  ;;  %v5255_v2 = vsel %vm8149_vm6, %v5250_v27, %v5254_v16  ;;  %v5272_v32 = vrot.slane %v5270_v25, 5  ;;  %v2383_v11 = vld [vmem:[%s8098_s18 + $0x90] sm:$0xc] }
 0x19a   : >> { %v2480_v23 = vsel %vm10006_vm9, %v2478_v10, %v2479_v36  ;;  %v5286_v37 = vshll.u32 %v10180_v50, 16  ;;  %v5278_v43 = vrot.slane %v5276_v41, 5  ;;  %v5282_v38 = vrot.slane %v5280_v0, 4  ;;  %v7879_v10 = vld [vmem:[%s8098_s18 + $0x84] sm:$0xf] }
 0x19b   : >> { %v5265_v4 = vsel %vm8149_vm6, %v5260_v60, %v5264_v17  ;;  %v6544_v62 = vcombine.low %v2477_v42, %v2480_v23  ;;  %v5273_v16 = vor.u32 %v5272_v32, %v5269_v9  ;;  %v6527_v21 = vrot.slane %v10188_v12, 10  ;;  %v7880_v50 = vld [vmem:[%s8098_s18 + $0x88] sm:$0x3]  ;;  %v7882_v9 = vld [vmem:[%s8098_s18 + $0xc] sm:$0x1] }
 0x19c   : >> { %v6753_v18 = vcombine.low %v5255_v2, %v5265_v4  ;;  %v5288_v27 = vrot.slane %v5286_v37, 5  ;;  %v5283_v36 = vor.u32 %v5282_v38, %v5278_v43  ;;  %v2483_v25 = vrot.slane %v7879_v10, 6  ;;  %v7881_v60 = vld [vmem:[%s8098_s18 + $0x8] sm:$0xf]  ;;  %v7883_v4 = vld [vmem:[%s8098_s18 + $0x94] sm:$0xf] }
 0x19d   : >> { %7167 = vmatmul.mubr.msk.bf16.gmra.mrb[12].mxu1 %vm726_vm5, %v6544_v62  ;;  %v2486_v31 = vrot.slane %v7880_v50, 6  ;;  %v6771_v17 = vrot.slane %v5586_v35, 9  ;;  %v5274_v42 = vrot.slane %v5273_v16, 4  ;;  %v5652_v41 = vrot.slane %v7881_v60, 5  ;;  %v7884_v16 = vld [vmem:[%s8098_s18 + $0x98] sm:$0x3] }
 0x19e   : >> { %7352 = vmatprep.mubr.msk.bf16.mxu0 %vm726_vm5, %v6753_v18  ;;  %v5655_v0 = vrot.slane %v7882_v9, 5  ;;  %v6528_v2 = vrot.slane %v2383_v11, 10  ;;  %v5284_v23 = vrot.slane %v5283_v36, 4  ;;  %v2484_v32 = vsel %vm10006_vm9, %v6527_v21, %v2483_v25  ;;  %v5587_v60 = vld [vmem:[%s8098_s18 + $0x14] sm:$0xe] }
 0x19f   : >> { %v2485_v37 = vrot.slane %v2483_v25, 4  ;;  %v2490_v62 = vrot.slane %v7883_v4, 6  ;;  %v5279_v50 = vsel %vm8149_vm6, %v5274_v42, %v5278_v43  ;;  %v5653_v38 = vsel %vm9031_vm1, %v6771_v17, %v5652_v41  ;;  %v10224_v4 = vld [vmem:[%s8098_s18 + $0xa0] sm:$0xc] }
 0x1a0   : >> { %v5654_v18 = vrot.slane %v5652_v41, 4  ;;  %v2493_v10 = vrot.slane %v7884_v16, 6  ;;  %v5289_v36 = vsel %vm8149_vm6, %v5284_v23, %v5288_v27  ;;  %v3060_v41 = vshrl.u32 %v2383_v11, 16 }
 0x1a1   : >> { %v2487_v21 = vsel %vm10006_vm9, %v2485_v37, %v2486_v31  ;;  %v2491_v25 = vsel %vm10006_vm9, %v6528_v2, %v2490_v62  ;;  %v2492_v9 = vrot.slane %v2490_v62, 4  ;;  %v6754_v43 = vcombine.low %v5279_v50, %v5289_v36  ;;  %v5588_v2 = vld [vmem:[%s8098_s18 + $0x24] sm:$0xe]  ;;  %v7886_v62 = vld [vmem:[%s8098_s18 + $0x1c] sm:$0x1] }
 0x1a2   : >> { %v6545_v42 = vcombine.low %v2484_v32, %v2487_v21  ;;  %v5656_v17 = vsel %vm9031_vm1, %v5654_v18, %v5655_v0  ;;  %v3063_v31 = vshll.u32 %v2383_v11, 16  ;;  %v6772_v27 = vrot.slane %v5587_v60, 9  ;;  %v7885_v0 = vld [vmem:[%s8098_s18 + $0x18] sm:$0xf]  ;;  %v7887_v18 = vld [vmem:[%s8098_s18 + $0xa4] sm:$0xf] }
 0x1a3   : >> { %v6789_v16 = vcombine.low %v5653_v38, %v5656_v17  ;;  %v2494_v5 = vsel %vm10006_vm9, %v2492_v9, %v2493_v10  ;;  %7353 = vmatmul.mubr.msk.bf16.gmra.mrb[28].mxu0 %vm726_vm5, %v6754_v43  ;;  %v3062_v32 = vrot.slane %v3060_v41, 6  ;;  %v5659_v37 = vrot.slane %v7885_v0, 5  ;;  %v7888_v60 = vld [vmem:[%s8098_s18 + $0xa8] sm:$0x3]  ;;  %v10238_v21 = vld [vmem:[%s8098_s18 + $0xb0] sm:$0xc] }
 0x1a4   : >> { %7170 = vmatprep.mubr.msk.bf16.mxu1 %vm726_vm5, %v6545_v42  ;;  %v6546_v23 = vcombine.low %v2491_v25, %v2494_v5  ;;  %v5662_v50 = vrot.slane %v7886_v62, 5  ;;  %v3065_v38 = vrot.slane %v3063_v31, 7  ;;  %v6529_v11 = vrot.slane %v10224_v4, 10  ;;  %v7889_v42 = vld [vmem:[%s8098_s18 + $0x28] sm:$0xf] }
 0x1a5   : >> { %7358 = vmatprep.mubr.msk.bf16.mxu0 %vm726_vm5, %v6789_v16  ;;  %v2497_v10 = vrot.slane %v7887_v18, 6  ;;  %v2500_v36 = vrot.slane %v7888_v60, 6  ;;  %v5660_v25 = vsel %vm9031_vm1, %v6772_v27, %v5659_v37  ;;  %v5661_v9 = vrot.slane %v5659_v37, 4  ;;  %v7890_v31 = vld [vmem:[%s8098_s18 + $0x2c] sm:$0x1] }
 0x1a6   : >> { %7171 = vmatmul.mubr.msk.bf16.gmra.mrb[16].mxu1 %vm726_vm5, %v6546_v23  ;;  %v6773_v43 = vrot.slane %v5588_v2, 9  ;;  %v5666_v17 = vrot.slane %v7889_v42, 5  ;;  %v3066_v41 = vor.u32 %v3065_v38, %v3062_v32  ;;  %v5669_v0 = vrot.slane %v7890_v31, 5  ;;  %v5589_v62 = vld [vmem:[%s8098_s18 + $0x34] sm:$0xe] }
 0x1a7   : >> { %v2498_v16 = vsel %vm10006_vm9, %v6529_v11, %v2497_v10  ;;  %v2499_v5 = vrot.slane %v2497_v10, 4  ;;  %v5663_v23 = vsel %vm9031_vm1, %v5661_v9, %v5662_v50  ;;  %v6530_v37 = vrot.slane %v10238_v21, 10  ;;  %v7891_v11 = vld [vmem:[%s8098_s18 + $0xb4] sm:$0xf]  ;;  %v10259_v60 = vld [vmem:[%s8098_s18 + $0xc0] sm:$0xc] }
 0x1a8   : >> { %v5667_v27 = vsel %vm9031_vm1, %v6773_v43, %v5666_v17  ;;  %v5668_v2 = vrot.slane %v5666_v17, 4  ;;  %v10253_v18 = vrot.slane %v3066_v41, 4  ;;  %v6790_v32 = vcombine.low %v5660_v25, %v5663_v23  ;;  %v7892_v9 = vld [vmem:[%s8098_s18 + $0xb8] sm:$0x3]  ;;  %v5590_v31 = vld [vmem:[%s8098_s18 + $0x44] sm:$0xe] }
 0x1a9   : >> { %v2501_v38 = vsel %vm10006_vm9, %v2499_v5, %v2500_v36  ;;  %v2504_v10 = vrot.slane %v7891_v11, 6  ;;  %v2507_v43 = vrot.slane %v7892_v9, 6  ;;  %v6774_v17 = vrot.slane %v5589_v62, 9 }
 0x1aa   : >> { %v6547_v42 = vcombine.low %v2498_v16, %v2501_v38  ;;  %v5670_v50 = vsel %vm9031_vm1, %v5668_v2, %v5669_v0  ;;  %v5673_v36 = vrot.slane %v9860_v51, 5  ;;  %v5676_v16 = vrot.slane %v9871_v49, 5  ;;  %v7893_v0 = vld [vmem:[%s8098_s18 + $0xc4] sm:$0xf] }
 0x1ab   : >> { %v6791_v41 = vcombine.low %v5667_v27, %v5670_v50  ;;  %v2505_v25 = vsel %vm10006_vm9, %v6530_v37, %v2504_v10  ;;  %v2506_v23 = vrot.slane %v2504_v10, 4  ;;  %7359 = vmatmul.mubr.msk.bf16.vlgmr.msra.gmra.mrb[0].mxu0 %vm726_vm5, %v6790_v32  ;;  %v6531_v5 = vrot.slane %v10259_v60, 10  ;;  %v10275_v27 = vld [vmem:[%s8098_s18 + $0xd0] sm:$0xc] }
 0x1ac   : >> { %7174 = vmatprep.mubr.msk.bf16.mxu1 %vm726_vm5, %v6547_v42  ;;  %v2511_v2 = vrot.slane %v7893_v0, 6  ;;  %v2514_v62 = vrot.slane %v9881_v7, 6  ;;  %v5674_v37 = vsel %vm9031_vm1, %v6774_v17, %v5673_v36  ;;  %v5675_v32 = vrot.slane %v5673_v36, 4  ;;  %v5591_v17 = vld [vmem:[%s8098_s18 + $0x54] sm:$0xe] }
 0x1ad   : >> { %7362 = vmatprep.mubr.msk.bf16.mxu0 %vm726_vm5, %v6791_v41  ;;  %v2508_v51 = vsel %vm10006_vm9, %v2506_v23, %v2507_v43  ;;  %v6775_v49 = vrot.slane %v5590_v31, 9  ;;  %v5680_v7 = vrot.slane %v9896_v24, 5  ;;  %v5683_v50 = vrot.slane %v9904_v28, 5  ;;  %v7894_v43 = vld [vmem:[%s8098_s18 + $0xd4] sm:$0xf] }
 0x1ae   : >> { %v6548_v38 = vcombine.low %v2505_v25, %v2508_v51  ;;  %v2512_v11 = vsel %vm10006_vm9, %v6531_v5, %v2511_v2  ;;  %v2513_v10 = vrot.slane %v2511_v2, 4  ;;  %v5677_v42 = vsel %vm9031_vm1, %v5675_v32, %v5676_v16  ;;  %v10297_v36 = vld [vmem:[%s8098_s18 + $0xe0] sm:$0xc]  ;;  %v5592_v32 = vld [vmem:[%s8098_s18 + $0x64] sm:$0xe] }
 0x1af   : >> { %v6532_v9 = vrot.slane %v10275_v27, 10  ;;  %v2518_v41 = vrot.slane %v7894_v43, 6  ;;  %v6792_v31 = vcombine.low %v5674_v37, %v5677_v42  ;;  %v5681_v24 = vsel %vm9031_vm1, %v6775_v49, %v5680_v7 }
 0x1b0   : >> { %7175 = vmatmul.mubr.msk.bf16.gmra.mrb[20].mxu1 %vm726_vm5, %v6548_v38  ;;  %v2515_v25 = vsel %vm10006_vm9, %v2513_v10, %v2514_v62  ;;  %v5682_v23 = vrot.slane %v5680_v7, 4  ;;  %v2521_v0 = vrot.slane %v9914_v40, 6  ;;  %v6776_v51 = vrot.slane %v5591_v17, 9  ;;  %v7895_v10 = vld [vmem:[%s8098_s18 + $0xe4] sm:$0xf] }
 0x1b1   : >> { %v6549_v28 = vcombine.low %v2512_v11, %v2515_v25  ;;  %v2519_v16 = vsel %vm10006_vm9, %v6532_v9, %v2518_v41  ;;  %v2520_v5 = vrot.slane %v2518_v41, 4  ;;  %v5687_v62 = vrot.slane %v9925_v1, 5  ;;  %v10313_v7 = vld [vmem:[%s8098_s18 + $0xf0] sm:$0xc] }
 0x1b2   : >> { %v5684_v2 = vsel %vm9031_vm1, %v5682_v23, %v5683_v50  ;;  %v5690_v37 = vrot.slane %v9934_v58, 5  ;;  %v6533_v11 = vrot.slane %v10297_v36, 10  ;;  %v2525_v40 = vrot.slane %v7895_v10, 6  ;;  %v7896_v23 = vld [vmem:[%s8098_s18 + $0xf4] sm:$0xf] }
 0x1b3   : >> { %7178 = vmatprep.mubr.msk.bf16.mxu1 %vm726_vm5, %v6549_v28  ;;  %v6793_v49 = vcombine.low %v5681_v24, %v5684_v2  ;;  %v2522_v38 = vsel %vm10006_vm9, %v2520_v5, %v2521_v0  ;;  %7363 = vmatmul.mubr.msk.bf16.gmra.mrb[4].mxu0 %vm726_vm5, %v6792_v31  ;;  %v5688_v58 = vsel %vm9031_vm1, %v6776_v51, %v5687_v62  ;;  %v5689_v42 = vrot.slane %v5687_v62, 4 }
 0x1b4   : >> { %v6550_v1 = vcombine.low %v2519_v16, %v2522_v38  ;;  %v2528_v50 = vrot.slane %v9945_v63, 6  ;;  %v2526_v9 = vsel %vm10006_vm9, %v6533_v11, %v2525_v40  ;;  %v2527_v43 = vrot.slane %v2525_v40, 4  ;;  %v5593_v16 = vld [vmem:[%s8098_s18 + $0x74] sm:$0xe] }
 0x1b5   : >> { %7366 = vmatprep.mubr.msk.bf16.mxu0 %vm726_vm5, %v6793_v49  ;;  %v6777_v41 = vrot.slane %v5592_v32, 9  ;;  %v5694_v17 = vrot.slane %v9955_v30, 5  ;;  %v5691_v25 = vsel %vm9031_vm1, %v5689_v42, %v5690_v37  ;;  %v5697_v31 = vrot.slane %v9963_v6, 5 }
 0x1b6   : >> { %v6534_v24 = vrot.slane %v10313_v7, 10  ;;  %v2532_v28 = vrot.slane %v7896_v23, 6  ;;  %v6794_v63 = vcombine.low %v5688_v58, %v5691_v25  ;;  %v2529_v5 = vsel %vm10006_vm9, %v2527_v43, %v2528_v50  ;;  %v7897_v43 = vld [vmem:[%s8098_s18 + $0x88] sm:$0x7] }
 0x1b7   : >> { %v5695_v0 = vsel %vm9031_vm1, %v6777_v41, %v5694_v17  ;;  %v5696_v2 = vrot.slane %v5694_v17, 4  ;;  %v6551_v30 = vcombine.low %v2526_v9, %v2529_v5  ;;  %v2535_v62 = vrot.slane %v9973_v53, 6  ;;  %v5594_v53 = vld [vmem:[%s8098_s18 + $0x84] sm:$0xe] }
 0x1b8   : >> { %7179 = vmatmul.mubr.msk.bf16.gmra.mrb[24].mxu1 %vm726_vm5, %v6550_v1  ;;  %v2533_v6 = vsel %vm10006_vm9, %v6534_v24, %v2532_v28  ;;  %v2534_v51 = vrot.slane %v2532_v28, 4  ;;  %v6778_v32 = vrot.slane %v5593_v16, 9  ;;  %v5701_v49 = vrot.slane %v9984_v26, 5  ;;  %v5595_v16 = vld [vmem:[%s8098_s18 + $0x94] sm:$0xe] }
 0x1b9   : >> { %v5698_v37 = vsel %vm9031_vm1, %v5696_v2, %v5697_v31  ;;  %v5704_v38 = vrot.slane %v9992_v22, 5  ;;  %7182 = vmatprep.mubr.msk.bf16.mxu1 %vm726_vm5, %v6551_v30  ;;  %v3037_v40 = vshrl.u32 %v10188_v12, 16  ;;  %v3040_v1 = vshll.u32 %v10188_v12, 16 }
 0x1ba   : >> { %v6795_v11 = vcombine.low %v5695_v0, %v5698_v37  ;;  %v2536_v10 = vsel %vm10006_vm9, %v2534_v51, %v2535_v62  ;;  %v5702_v42 = vsel %vm9031_vm1, %v6778_v32, %v5701_v49  ;;  %v5703_v50 = vrot.slane %v5701_v49, 4 }
 0x1bb   : >> { %v6552_v58 = vcombine.low %v2533_v6, %v2536_v10  ;;  %v3045_v26 = vrot.slane %v10920_v15, 6  ;;  %7367 = vmatmul.mubr.msk.bf16.gmra.mrb[8].mxu0 %vm726_vm5, %v6794_v63  ;;  %v3039_v22 = vrot.slane %v3037_v40, 6  ;;  %v3042_v9 = vrot.slane %v3040_v1, 7 }
 0x1bc   : >> { %v3046_v39 = vrot.slane %v10921_v54, 7  ;;  %v3051_v41 = vshrl.u32 %v7897_v43, 16  ;;  %7370 = vmatprep.mubr.msk.bf16.mxu0 %vm726_vm5, %v6795_v11  ;;  %v5705_v12 = vsel %vm9031_vm1, %v5703_v50, %v5704_v38  ;;  %v3054_v17 = vshll.u32 %v7897_v43, 16  ;;  %v10957_v43 = vld [vmem:[#allocation48_spill] sm:$0xff] }
 0x1bd   : >> { %v6779_v25 = vrot.slane %v5594_v53, 9  ;;  %v5708_v31 = vrot.slane %v10013_v29, 5  ;;  %v6796_v24 = vcombine.low %v5702_v42, %v5705_v12  ;;  %v3043_v15 = vor.u32 %v3042_v9, %v3039_v22  ;;  %v5596_v42 = vld [vmem:[%s8098_s18 + $0xa4] sm:$0xe] }
 0x1be   : >> { %v3047_v23 = vor.u32 %v3046_v39, %v3045_v26  ;;  %v3053_v28 = vrot.slane %v3051_v41, 6  ;;  %v3056_v63 = vrot.slane %v3054_v17, 7  ;;  %v5711_v0 = vrot.slane %v10017_v3, 5  ;;  %v10956_v39 = vld [vmem:[#allocation50_spill] sm:$0xff]  ;;  %v7898_v17 = vld [vmem:[%s8098_s18 + $0xa8] sm:$0x7] }
 0x1bf   : >> { %v5709_v54 = vsel %vm9031_vm1, %v6779_v25, %v5708_v31  ;;  %v5710_v5 = vrot.slane %v5708_v31, 4  ;;  %v3044_v2 = vrot.slane %v3043_v15, 4  ;;  %v3068_v6 = vrot.slane %v10923_v48, 6 }
 0x1c0   : >> { %7183 = vmatmul.mubr.msk.bf16.gmra.mrb[28].mxu1 %vm726_vm5, %v6552_v58  ;;  %v3049_v30 = vrot.slane %v3047_v23, 4  ;;  %v3069_v29 = vrot.slane %v10925_v46, 7  ;;  %v3057_v51 = vor.u32 %v3056_v63, %v3053_v28  ;;  %v6780_v37 = vrot.slane %v5595_v16, 9 }
 0x1c1   : >> { %v5712_v62 = vsel %vm9031_vm1, %v5710_v5, %v5711_v0  ;;  %v5715_v32 = vrot.slane %v10031_v61, 5  ;;  %v3048_v38 = vsel %vm8166_vm7, %v3044_v2, %v3047_v23  ;;  %v5718_v10 = vrot.slane %v10039_v47, 5 }
 0x1c2   : >> { %v6797_v3 = vcombine.low %v5709_v54, %v5712_v62  ;;  %v3070_v11 = vor.u32 %v3069_v29, %v3068_v6  ;;  %v3058_v48 = vsel %vm8166_vm7, %v3049_v30, %v3057_v51  ;;  %v3083_v1 = vshrl.u32 %v10224_v4, 16 }
 0x1c3   : >> { %v5716_v46 = vsel %vm9031_vm1, %v6780_v37, %v5715_v32  ;;  %v5717_v40 = vrot.slane %v5715_v32, 4  ;;  %7371 = vmatmul.mubr.msk.bf16.gmra.mrb[12].mxu0 %vm726_vm5, %v6796_v24  ;;  %v6579_v61 = vcombine.low %v3048_v38, %v3058_v48  ;;  %v3086_v47 = vshll.u32 %v10224_v4, 16  ;;  %v5597_v37 = vld [vmem:[%s8098_s18 + $0xb4] sm:$0xe]  ;;  %v7899_v38 = vld [vmem:[%s8098_s18 + $0xb8] sm:$0x7] }
 0x1c4   : >> { %v3071_v53 = vsel %vm8166_vm7, %v10253_v18, %v3070_v11  ;;  %v3072_v58 = vrot.slane %v3070_v11, 4  ;;  %7374 = vmatprep.mubr.msk.bf16.mxu0 %vm726_vm5, %v6797_v3  ;;  %v3085_v26 = vrot.slane %v3083_v1, 6  ;;  %v3091_v22 = vrot.slane %v10927_v19, 6 }
 0x1c5   : >> { %v5719_v50 = vsel %vm9031_vm1, %v5717_v40, %v5718_v10  ;;  %v3092_v9 = vrot.slane %v10928_v59, 7  ;;  %7204 = vmatprep.mubr.msk.bf16.mxu1 %vm726_vm5, %v6579_v61  ;;  %v10958_v41 = vor.u32 %v10956_v39, %v10957_v43  ;;  %v3088_v12 = vrot.slane %v3086_v47, 7 }
 0x1c6   : >> { %v6798_v4 = vcombine.low %v5716_v46, %v5719_v50  ;;  %v3097_v25 = vshrl.u32 %v7898_v17, 16  ;;  %v3100_v15 = vshll.u32 %v7898_v17, 16  ;;  %v6781_v23 = vrot.slane %v5596_v42, 9  ;;  %v7900_v17 = vld [vmem:[%s8098_s18 + $0xc8] sm:$0x7] }
 0x1c7   : >> { %v3081_v18 = vsel %vm8166_vm7, %v3072_v58, %v10958_v41  ;;  %v3093_v24 = vor.u32 %v3092_v9, %v3091_v22  ;;  %v3089_v28 = vor.u32 %v3088_v12, %v3085_v26  ;;  %v5722_v59 = vrot.slane %v10057_v14, 5 }
 0x1c8   : >> { %v6580_v31 = vcombine.low %v3071_v53, %v3081_v18  ;;  %v3099_v19 = vrot.slane %v3097_v25, 6  ;;  %v5725_v16 = vrot.slane %v10066_v44, 5  ;;  %v3102_v54 = vrot.slane %v3100_v15, 7  ;;  %v5598_v18 = vld [vmem:[%s8098_s18 + $0xc4] sm:$0xe] }
 0x1c9   : >> { %v3095_v63 = vrot.slane %v3093_v24, 4  ;;  %v3106_v5 = vshrl.u32 %v10238_v21, 16  ;;  %v3109_v0 = vshll.u32 %v10238_v21, 16  ;;  %v3090_v2 = vrot.slane %v3089_v28, 4 }
 0x1ca   : >> { %7205 = vmatmul.mubr.msk.bf16.vlgmr.msra.gmra.mrb[16].mxu1 %vm726_vm5, %v6580_v31  ;;  %v5723_v30 = vsel %vm9031_vm1, %v6781_v23, %v5722_v59  ;;  %v5724_v6 = vrot.slane %v5722_v59, 4  ;;  %v3114_v29 = vrot.slane %v10930_v13, 6  ;;  %v3103_v51 = vor.u32 %v3102_v54, %v3099_v19 }
 0x1cb   : >> { %v3108_v14 = vrot.slane %v3106_v5, 6  ;;  %v3111_v62 = vrot.slane %v3109_v0, 7  ;;  %v3115_v44 = vrot.slane %v10931_v55, 7  ;;  %7375 = vmatmul.mubr.msk.bf16.gmra.mrb[16].mxu0 %vm726_vm5, %v6798_v4  ;;  %v3094_v32 = vsel %vm8166_vm7, %v3090_v2, %v3093_v24 }
 0x1cc   : >> { %v5726_v21 = vsel %vm9031_vm1, %v5724_v6, %v5725_v16  ;;  %v3120_v3 = vshrl.u32 %v7899_v38, 16  ;;  %v3123_v11 = vshll.u32 %v7899_v38, 16  ;;  %v3104_v13 = vsel %vm8166_vm7, %v3095_v63, %v3103_v51  ;;  %v10959_v51 = vld [vmem:[#allocation37_spill] sm:$0xff] }
 0x1cd   : >> { %v6799_v10 = vcombine.low %v5723_v30, %v5726_v21  ;;  %v3112_v48 = vor.u32 %v3111_v62, %v3108_v14  ;;  %v3116_v46 = vor.u32 %v3115_v44, %v3114_v29  ;;  %v6581_v40 = vcombine.low %v3094_v32, %v3104_v13  ;;  %v7901_v44 = vld [vmem:[%s8098_s18 + $0xd8] sm:$0x7]  ;;  %v5599_v32 = vld [vmem:[%s8098_s18 + $0xd4] sm:$0xe] }
 0x1ce   : >> { %v3122_v55 = vrot.slane %v3120_v3, 6  ;;  %v3125_v1 = vrot.slane %v3123_v11, 7  ;;  %v6782_v61 = vrot.slane %v5597_v37, 9  ;;  %v5729_v47 = vrot.slane %v10082_v57, 5 }
 0x1cf   : >> { %7378 = vmatprep.mubr.msk.bf16.mxu0 %vm726_vm5, %v6799_v10  ;;  %v3113_v53 = vrot.slane %v3112_v48, 4  ;;  %v3118_v58 = vrot.slane %v3116_v46, 4  ;;  %v5732_v42 = vrot.slane %v10089_v8, 5  ;;  %7208 = vmatprep.mubr.msk.bf16.mxu1 %vm726_vm5, %v6581_v40  ;;  %v3129_v26 = vshrl.u32 %v10259_v60, 16 }
 0x1d0   : >> { %v3126_v50 = vor.u32 %v3125_v1, %v3122_v55  ;;  %v3132_v22 = vshll.u32 %v10259_v60, 16  ;;  %v3137_v9 = vrot.slane %v10933_v56, 6  ;;  %v5730_v43 = vsel %vm9031_vm1, %v6782_v61, %v5729_v47  ;;  %v10960_v55 = vld [vmem:[#allocation35_spill] sm:$0xff] }
 0x1d1   : >> { %v3117_v39 = vsel %vm8166_vm7, %v3113_v53, %v3116_v46  ;;  %v5731_v41 = vrot.slane %v5729_v47, 4  ;;  %v3138_v57 = vrot.slane %v10934_v33, 7  ;;  %v3131_v4 = vrot.slane %v3129_v26, 6 }
 0x1d2   : >> { %v3127_v8 = vsel %vm8166_vm7, %v3118_v58, %v3126_v50  ;;  %v3134_v12 = vrot.slane %v3132_v22, 7  ;;  %v3143_v25 = vshrl.u32 %v7900_v17, 16  ;;  %v3146_v24 = vshll.u32 %v7900_v17, 16  ;;  %v10961_v22 = vld [vmem:[#allocation42_spill] sm:$0xff] }
 0x1d3   : >> { %v6582_v60 = vcombine.low %v3117_v39, %v3127_v8  ;;  %v5733_v56 = vsel %vm9031_vm1, %v5731_v41, %v5732_v42  ;;  %v3139_v31 = vor.u32 %v3138_v57, %v3137_v9  ;;  %v6783_v19 = vrot.slane %v5598_v18, 9  ;;  %v10962_v57 = vld [vmem:[#allocation41_spill] sm:$0xff]  ;;  %v5600_v8 = vld [vmem:[%s8098_s18 + $0xe4] sm:$0xe] }
 0x1d4   : >> { %v6800_v15 = vcombine.low %v5730_v43, %v5733_v56  ;;  %v3135_v23 = vor.u32 %v3134_v12, %v3131_v4  ;;  %v3145_v28 = vrot.slane %v3143_v25, 6  ;;  %v3148_v59 = vrot.slane %v3146_v24, 7  ;;  %v7902_v4 = vld [vmem:[%s8098_s18 + $0xe8] sm:$0x7] }
 0x1d5   : >> { %7209 = vmatmul.mubr.msk.bf16.gmra.mrb[20].mxu1 %vm726_vm5, %v6582_v60  ;;  %v3141_v33 = vrot.slane %v3139_v31, 4  ;;  %v5736_v16 = vrot.slane %v10106_v45, 5  ;;  %v5739_v63 = vrot.slane %v10111_v20, 5  ;;  %v3152_v5 = vshrl.u32 %v10275_v27, 16 }
 0x1d6   : >> { %7379 = vmatmul.mubr.msk.bf16.gmra.mrb[20].mxu0 %vm726_vm5, %v6800_v15  ;;  %v3136_v54 = vrot.slane %v3135_v23, 4  ;;  %v3155_v0 = vshll.u32 %v10275_v27, 16  ;;  %v3160_v2 = vrot.slane %v10936_v34, 6  ;;  %v3149_v30 = vor.u32 %v3148_v59, %v3145_v28  ;;  %v10963_v28 = vld [vmem:[#allocation36_spill] sm:$0xff] }
 0x1d7   : >> { %v5737_v6 = vsel %vm9031_vm1, %v6783_v19, %v5736_v16  ;;  %v5738_v29 = vrot.slane %v5736_v16, 4  ;;  %v3161_v14 = vrot.slane %v10959_v51, 7  ;;  %v3154_v20 = vrot.slane %v3152_v5, 6  ;;  %v10964_v16 = vld [vmem:[#allocation13_spill] sm:$0xff]  ;;  %v10965_v51 = vld [vmem:[#allocation46_spill] sm:$0xff] }
 0x1d8   : >> { %v3140_v45 = vsel %vm8166_vm7, %v3136_v54, %v3139_v31  ;;  %v3157_v62 = vrot.slane %v3155_v0, 7  ;;  %v3166_v37 = vshrl.u32 %v7901_v44, 16  ;;  %v3150_v27 = vsel %vm8166_vm7, %v3141_v33, %v3149_v30 }
 0x1d9   : >> { %v5740_v34 = vsel %vm9031_vm1, %v5738_v29, %v5739_v63  ;;  %v3162_v21 = vor.u32 %v3161_v14, %v3160_v2  ;;  %v3169_v38 = vshll.u32 %v7901_v44, 16  ;;  %v6583_v3 = vcombine.low %v3140_v45, %v3150_v27  ;;  %v10966_v45 = vld [vmem:[#allocation45_spill] sm:$0xff]  ;;  %v7903_v27 = vld [vmem:[%s8098_s18 + $0xf8] sm:$0x7] }
 0x1da   : >> { %v6801_v11 = vcombine.low %v5737_v6, %v5740_v34  ;;  %v3158_v13 = vor.u32 %v3157_v62, %v3154_v20  ;;  %v3168_v10 = vrot.slane %v3166_v37, 6  ;;  %v6784_v40 = vrot.slane %v5599_v32, 9  ;;  %v5601_v62 = vld [vmem:[%s8098_s18 + $0xf4] sm:$0xe] }
 0x1db   : >> { %v3164_v48 = vrot.slane %v3162_v21, 4  ;;  %v3171_v46 = vrot.slane %v3169_v38, 7  ;;  %v5743_v1 = vrot.slane %v10960_v55, 5  ;;  %7212 = vmatprep.mubr.msk.bf16.mxu1 %vm726_vm5, %v6583_v3  ;;  %v5746_v53 = vrot.slane %v10135_v52, 5 }
 0x1dc   : >> { %7382 = vmatprep.mubr.msk.bf16.mxu0 %vm726_vm5, %v6801_v11  ;;  %v3159_v61 = vrot.slane %v3158_v13, 4  ;;  %v3175_v58 = vshrl.u32 %v10297_v36, 16  ;;  %v3178_v47 = vshll.u32 %v10297_v36, 16  ;;  %v3183_v9 = vrot.slane %v10961_v22, 6 }
 0x1dd   : >> { %v3172_v42 = vor.u32 %v3171_v46, %v3168_v10  ;;  %v5744_v50 = vsel %vm9031_vm1, %v6784_v40, %v5743_v1  ;;  %v5745_v26 = vrot.slane %v5743_v1, 4  ;;  %v3184_v18 = vrot.slane %v10962_v57, 7  ;;  %v10968_v1 = vld [vmem:[#allocation38_spill] sm:$0xff] }
 0x1de   : >> { %v3163_v39 = vsel %vm8166_vm7, %v3159_v61, %v3162_v21  ;;  %v3177_v43 = vrot.slane %v3175_v58, 6  ;;  %v3180_v41 = vrot.slane %v3178_v47, 7  ;;  %v3189_v12 = vshrl.u32 %v7902_v4, 16 }
 0x1df   : >> { %v3173_v52 = vsel %vm8166_vm7, %v3164_v48, %v3172_v42  ;;  %v5747_v36 = vsel %vm9031_vm1, %v5745_v26, %v5746_v53  ;;  %v3192_v17 = vshll.u32 %v7902_v4, 16  ;;  %v3185_v31 = vor.u32 %v3184_v18, %v3183_v9  ;;  %v10967_v48 = vld [vmem:[#allocation12_spill] sm:$0xff] }
 0x1e0   : >> { %v6584_v25 = vcombine.low %v3163_v39, %v3173_v52  ;;  %v6802_v60 = vcombine.low %v5744_v50, %v5747_v36  ;;  %v3181_v56 = vor.u32 %v3180_v41, %v3177_v43  ;;  %v3191_v24 = vrot.slane %v3189_v12, 6 }
 0x1e1   : >> { %v3194_v15 = vrot.slane %v3192_v17, 7  ;;  %v6785_v23 = vrot.slane %v5600_v8, 9  ;;  %v5750_v19 = vrot.slane %v10963_v28, 5  ;;  %v3187_v59 = vrot.slane %v3185_v31, 4 }
 0x1e2   : >> { %7213 = vmatmul.mubr.msk.bf16.gmra.mrb[24].mxu1 %vm726_vm5, %v6584_v25  ;;  %7383 = vmatmul.mubr.msk.bf16.gmra.mrb[24].mxu0 %vm726_vm5, %v6802_v60  ;;  %v3182_v33 = vrot.slane %v3181_v56, 4  ;;  %v5753_v63 = vrot.slane %v10964_v16, 5  ;;  %v3198_v54 = vshrl.u32 %v10313_v7, 16  ;;  %v3201_v30 = vshll.u32 %v10313_v7, 16  ;;  %v6061_v16 = vld [vmem:[#allocation2 + $0x18] sm:$0xff] }
 0x1e3   : >> { %v3195_v5 = vor.u32 %v3194_v15, %v3191_v24  ;;  %v5751_v0 = vsel %vm9031_vm1, %v6785_v23, %v5750_v19  ;;  %v5752_v2 = vrot.slane %v5750_v19, 4  ;;  %v3206_v14 = vrot.slane %v10965_v51, 6  ;;  %v6060_v15 = vld [vmem:[#allocation2 + $0x10] sm:$0xff]  ;;  %v6058_v19 = vld [vmem:[#allocation2] sm:$0xff] }
 0x1e4   : >> { %v3186_v6 = vsel %vm8166_vm7, %v3182_v33, %v3185_v31  ;;  %v3200_v29 = vrot.slane %v3198_v54, 6  ;;  %v3207_v20 = vrot.slane %v10966_v45, 7  ;;  %v3203_v32 = vrot.slane %v3201_v30, 7 }
 0x1e5   : >> { %v3196_v44 = vsel %vm8166_vm7, %v3187_v59, %v3195_v5  ;;  %v5754_v37 = vsel %vm9031_vm1, %v5752_v2, %v5753_v63  ;;  %v3212_v34 = vshrl.u32 %v7903_v27, 16  ;;  %v3215_v3 = vshll.u32 %v7903_v27, 16 }
 0x1e6   : >> { %v6585_v21 = vcombine.low %v3186_v6, %v3196_v44  ;;  %v6803_v7 = vcombine.low %v5751_v0, %v5754_v37  ;;  %v3208_v38 = vor.u32 %v3207_v20, %v3206_v14  ;;  %v3204_v11 = vor.u32 %v3203_v32, %v3200_v29  ;;  %v6059_v0 = vld [vmem:[#allocation2 + $0x8] sm:$0xff]  ;;  %v6064_v14 = vld [vmem:[#allocation2 + $0x30] sm:$0xff]  ;;  %v6065_v32 = vld [vmem:[#allocation2 + $0x38] sm:$0xff] }
 0x1e7   : >> { %v3214_v13 = vrot.slane %v3212_v34, 6  ;;  %v6786_v10 = vrot.slane %v5601_v62, 9  ;;  %v5757_v46 = vrot.slane %v10967_v48, 5  ;;  %v3217_v55 = vrot.slane %v3215_v3, 7  ;;  %v6062_v62 = vld [vmem:[#allocation2 + $0x20] sm:$0xff]  ;;  %v6068_v48 = vld [vmem:[#allocation2 + $0x50] sm:$0xff] }
 0x1e8   : >> { %7216 = vmatprep.mubr.msk.bf16.mxu1 %vm726_vm5, %v6585_v21  ;;  %7386 = vmatprep.mubr.msk.bf16.mxu0 %vm726_vm5, %v6803_v7  ;;  %v3210_v40 = vrot.slane %v3208_v38, 4  ;;  %v5760_v61 = vrot.slane %v10968_v1, 5  ;;  %v3205_v53 = vrot.slane %v3204_v11, 4  ;;  %v6063_v7 = vld [vmem:[#allocation2 + $0x28] sm:$0xff] }
 0x1e9   : >> { %v5758_v58 = vsel %vm9031_vm1, %v6786_v10, %v5757_v46  ;;  %v5759_v47 = vrot.slane %v5757_v46, 4  ;;  %v3218_v42 = vor.u32 %v3217_v55, %v3214_v13  ;;  %v6066_v55 = vld [vmem:[#allocation2 + $0x40] sm:$0xff] }
 0x1ea   : >> { %v3209_v50 = vsel %vm8166_vm7, %v3205_v53, %v3208_v38  ;;  %v6069_v53 = vld [vmem:[#allocation2 + $0x58] sm:$0xff] }
 0x1eb   : >> { %v5761_v26 = vsel %vm9031_vm1, %v5759_v47, %v5760_v61  ;;  %v3219_v22 = vsel %vm8166_vm7, %v3210_v40, %v3218_v42 }
 0x1ec   : >> { %v6804_v9 = vcombine.low %v5758_v58, %v5761_v26  ;;  %v6586_v39 = vcombine.low %v3209_v50, %v3219_v22  ;;  %v6067_v50 = vld [vmem:[#allocation2 + $0x48] sm:$0xff] }
 0x1ee   : >> { %7387 = vmatmul.mubr.msk.bf16.gmra.mrb[28].mxu0 %vm726_vm5, %v6804_v9  ;;  %7217 = vmatmul.mubr.msk.bf16.gmra.mrb[28].mxu1 %vm726_vm5, %v6586_v39 }
 0x24b   : >> { %v7156_v43 = vpop.f32.mrb[0].mxu1 }
 0x24c   : >> { %v2674_v41 = vpop.f32.mrb[1].mxu1 }
 0x24d   : >> { %v7157_v57 = vpop.f32.mrb[2].mxu1 }
 0x24e   : >> { %v2677_v18 = vpop.f32.mrb[3].mxu1 }
 0x258   : >> { %v7160_v8 = vpop.f32.mrb[4].mxu1 }
 0x259   : >> { %v2690_v52 = vpop.f32.mrb[5].mxu1 }
 0x25a   : >> { %v7161_v36 = vpop.f32.mrb[6].mxu1 }
 0x25b   : >> { %v2693_v4 = vpop.f32.mrb[7].mxu1 }
 0x265   : >> { %v7164_v12 = vpop.f32.mrb[8].mxu1 }
 0x266   : >> { %v2706_v35 = vpop.f32.mrb[9].mxu1 }
 0x267   : >> { %v7165_v17 = vpop.f32.mrb[10].mxu1 }
 0x268   : >> { %v2709_v25 = vpop.f32.mrb[11].mxu1 }
 0x270   : >> { %v10497_v49 = vpop.f32.mrb[12].mxu1 }
 0x271   : >> { %v10499_v60 = vpop.f32.mrb[13].mxu1 }
 0x272   : >> { %v10501_v56 = vpop.f32.mrb[14].mxu1 }
 0x273   : >> { %v10503_v31 = vpop.f32.mrb[15].mxu1 }
 0x27e   : >> { %v7360_v24 = vpop.f32.mrb[0].mxu0 }
 0x27f   : >> { %v7392_v23 = vadd.f32 %v7360_v24, %v7156_v43  ;;  %v5899_v28 = vpop.f32.mrb[1].mxu0 }
 0x280   : >> { %v7393_v33 = vadd.f32 %v5899_v28, %v2674_v41  ;;  %v7361_v59 = vpop.f32.mrb[2].mxu0  ;;  %v6072_v41 = vld [vmem:[#allocation2 + $0x70] sm:$0xff] }
 0x281   : >> { %v6092_v63 = vadd.f32 %v7392_v23, %v6060_v15  ;;  %v7394_v54 = vadd.f32 %v7361_v59, %v7157_v57  ;;  %v5902_v5 = vpop.f32.mrb[3].mxu0  ;;  %v6076_v59 = vld [vmem:[#allocation2 + $0x90] sm:$0xff] }
 0x282   : >> { %v6090_v2 = vadd.f32 %v7393_v33, %v6058_v19  ;;  %v7395_v30 = vadd.f32 %v5902_v5, %v2677_v18 }
 0x283   : >> { %6124 = vst [vmem:[#allocation2 + $0x10] sm:$0xff] %v6092_v63  ;;  %v6093_v6 = vadd.f32 %v7394_v54, %v6061_v16 }
 0x284   : >> { %6122 = vst [vmem:[#allocation2] sm:$0xff] %v6090_v2  ;;  %v6091_v29 = vadd.f32 %v7395_v30, %v6059_v0  ;;  %v6077_v2 = vld [vmem:[#allocation2 + $0x98] sm:$0xff] }
 0x285   : >> { %6125 = vst [vmem:[#allocation2 + $0x18] sm:$0xff] %v6093_v6 }
 0x286   : >> { %6123 = vst [vmem:[#allocation2 + $0x8] sm:$0xff] %v6091_v29  ;;  %v7364_v51 = vpop.f32.mrb[4].mxu0  ;;  %v6075_v29 = vld [vmem:[#allocation2 + $0x88] sm:$0xff] }
 0x287   : >> { %v7396_v45 = vadd.f32 %v7364_v51, %v7160_v8  ;;  %v5915_v20 = vpop.f32.mrb[5].mxu0  ;;  %v6070_v8 = vld [vmem:[#allocation2 + $0x60] sm:$0xff] }
 0x288   : >> { %v7397_v44 = vadd.f32 %v5915_v20, %v2690_v52  ;;  %v7365_v37 = vpop.f32.mrb[6].mxu0 }
 0x289   : >> { %v6096_v27 = vadd.f32 %v7396_v45, %v6064_v14  ;;  %v7398_v34 = vadd.f32 %v7365_v37, %v7161_v36  ;;  %v5918_v21 = vpop.f32.mrb[7].mxu0  ;;  %v6080_v37 = vld [vmem:[#allocation2 + $0xb0] sm:$0xff] }
 0x28a   : >> { %v6094_v38 = vadd.f32 %v7397_v44, %v6062_v62  ;;  %v7399_v3 = vadd.f32 %v5918_v21, %v2693_v4  ;;  %v6073_v4 = vld [vmem:[#allocation2 + $0x78] sm:$0xff]  ;;  %v6078_v21 = vld [vmem:[#allocation2 + $0xa0] sm:$0xff] }
 0x28b   : >> { %6128 = vst [vmem:[#allocation2 + $0x30] sm:$0xff] %v6096_v27  ;;  %v6097_v11 = vadd.f32 %v7398_v34, %v6065_v32 }
 0x28c   : >> { %6126 = vst [vmem:[#allocation2 + $0x20] sm:$0xff] %v6094_v38  ;;  %v6095_v13 = vadd.f32 %v7399_v3, %v6063_v7 }
 0x28d   : >> { %6129 = vst [vmem:[#allocation2 + $0x38] sm:$0xff] %v6097_v11  ;;  %v6081_v11 = vld [vmem:[#allocation2 + $0xb8] sm:$0xff] }
 0x28e   : >> { %6127 = vst [vmem:[#allocation2 + $0x28] sm:$0xff] %v6095_v13  ;;  %v7368_v10 = vpop.f32.mrb[8].mxu0 }
 0x28f   : >> { %v7400_v46 = vadd.f32 %v7368_v10, %v7164_v12  ;;  %v5931_v40 = vpop.f32.mrb[9].mxu0 }
 0x290   : >> { %v7401_v1 = vadd.f32 %v5931_v40, %v2706_v35  ;;  %v7369_v61 = vpop.f32.mrb[10].mxu0  ;;  %v6079_v40 = vld [vmem:[#allocation2 + $0xa8] sm:$0xff] }
 0x291   : >> { %v6100_v58 = vadd.f32 %v7400_v46, %v6068_v48  ;;  %v7402_v47 = vadd.f32 %v7369_v61, %v7165_v17  ;;  %v5934_v42 = vpop.f32.mrb[11].mxu0 }
 0x292   : >> { %v6098_v26 = vadd.f32 %v7401_v1, %v6066_v55  ;;  %v7403_v22 = vadd.f32 %v5934_v42, %v2709_v25  ;;  %v6071_v25 = vld [vmem:[#allocation2 + $0x68] sm:$0xff]  ;;  %v6084_v42 = vld [vmem:[#allocation2 + $0xd0] sm:$0xff] }
 0x293   : >> { %6132 = vst [vmem:[#allocation2 + $0x50] sm:$0xff] %v6100_v58  ;;  %v6101_v9 = vadd.f32 %v7402_v47, %v6069_v53 }
 0x294   : >> { %6130 = vst [vmem:[#allocation2 + $0x40] sm:$0xff] %v6098_v26  ;;  %v6099_v39 = vadd.f32 %v7403_v22, %v6067_v50 }
 0x295   : >> { %6133 = vst [vmem:[#allocation2 + $0x58] sm:$0xff] %v6101_v9  ;;  %v6082_v9 = vld [vmem:[#allocation2 + $0xc0] sm:$0xff] }
 0x296   : >> { %6131 = vst [vmem:[#allocation2 + $0x48] sm:$0xff] %v6099_v39  ;;  %v7372_v43 = vpop.f32.mrb[12].mxu0 }
 0x297   : >> { %v7404_v57 = vadd.f32 %v7372_v43, %v10497_v49  ;;  %v5947_v18 = vpop.f32.mrb[13].mxu0 }
 0x298   : >> { %v7405_v52 = vadd.f32 %v5947_v18, %v10499_v60  ;;  %v7373_v36 = vpop.f32.mrb[14].mxu0 }
 0x299   : >> { %v6104_v12 = vadd.f32 %v7404_v57, %v6072_v41  ;;  %v7406_v35 = vadd.f32 %v7373_v36, %v10501_v56  ;;  %v5950_v17 = vpop.f32.mrb[15].mxu0  ;;  %v6074_v56 = vld [vmem:[#allocation2 + $0x80] sm:$0xff]  ;;  %v6085_v57 = vld [vmem:[#allocation2 + $0xd8] sm:$0xff] }
 0x29a   : >> { %v6102_v24 = vadd.f32 %v7405_v52, %v6070_v8  ;;  %v7407_v15 = vadd.f32 %v5950_v17, %v10503_v31 }
 0x29b   : >> { %6136 = vst [vmem:[#allocation2 + $0x70] sm:$0xff] %v6104_v12  ;;  %v6105_v23 = vadd.f32 %v7406_v35, %v6073_v4  ;;  %v6083_v4 = vld [vmem:[#allocation2 + $0xc8] sm:$0xff] }
 0x29c   : >> { %6134 = vst [vmem:[#allocation2 + $0x60] sm:$0xff] %v6102_v24  ;;  %v6103_v19 = vadd.f32 %v7407_v15, %v6071_v25 }
 0x29d   : >> { %v7206_v28 = vpop.f32.mrb[16].mxu1  ;;  %6137 = vst [vmem:[#allocation2 + $0x78] sm:$0xff] %v6105_v23  ;;  %v6088_v23 = vld [vmem:[#allocation2 + $0xf0] sm:$0xff] }
 0x29e   : >> { %v3421_v49 = vpop.f32.mrb[17].mxu1  ;;  %6135 = vst [vmem:[#allocation2 + $0x68] sm:$0xff] %v6103_v19  ;;  %v7376_v60 = vpop.f32.mrb[16].mxu0 }
 0x29f   : >> { %v7207_v33 = vpop.f32.mrb[18].mxu1  ;;  %v7408_v63 = vadd.f32 %v7376_v60, %v7206_v28  ;;  %v5963_v54 = vpop.f32.mrb[17].mxu0 }
 0x2a0   : >> { %v3424_v16 = vpop.f32.mrb[19].mxu1  ;;  %v7409_v5 = vadd.f32 %v5963_v54, %v3421_v49  ;;  %v7377_v0 = vpop.f32.mrb[18].mxu0 }
 0x2a1   : >> { %v6108_v30 = vadd.f32 %v7408_v63, %v6076_v59  ;;  %v7410_v31 = vadd.f32 %v7377_v0, %v7207_v33  ;;  %v5966_v6 = vpop.f32.mrb[19].mxu0  ;;  %v6086_v33 = vld [vmem:[#allocation2 + $0xe0] sm:$0xff]  ;;  %v6089_v63 = vld [vmem:[#allocation2 + $0xf8] sm:$0xff] }
 0x2a2   : >> { %v6106_v51 = vadd.f32 %v7409_v5, %v6074_v56  ;;  %v7411_v14 = vadd.f32 %v5966_v6, %v3424_v16 }
 0x2a3   : >> { %6140 = vst [vmem:[#allocation2 + $0x90] sm:$0xff] %v6108_v30  ;;  %v6109_v45 = vadd.f32 %v7410_v31, %v6077_v2  ;;  %v6087_v2 = vld [vmem:[#allocation2 + $0xe8] sm:$0xff] }
 0x2a4   : >> { %6138 = vst [vmem:[#allocation2 + $0x80] sm:$0xff] %v6106_v51  ;;  %v6107_v20 = vadd.f32 %v7411_v14, %v6075_v29  ;;  %v6154_v51 = vld [vmem:[#allocation2] sm:$0xff] (%p227_p12)  ;;  %v6155_v14 = vld [vmem:[#allocation2 + $0x8] sm:$0xff] (%p227_p12) }
 0x2a5   : >> { %6141 = vst [vmem:[#allocation2 + $0x98] sm:$0xff] %v6109_v45  ;;  %v6156_v45 = vld [vmem:[#allocation2 + $0x10] sm:$0xff] (%p227_p12)  ;;  %6186 = vst [vmem:[%s8088_s8] sm:$0xff] (%p227_p12), %v6154_v51 }
 0x2a6   : >> { %6139 = vst [vmem:[#allocation2 + $0x88] sm:$0xff] %v6107_v20  ;;  %6187 = vst [vmem:[%s8088_s8 + $0x8] sm:$0xff] (%p227_p12), %v6155_v14  ;;  %v6157_v20 = vld [vmem:[#allocation2 + $0x18] sm:$0xff] (%p227_p12) }
 0x2a7   : > { %6188 = vst [vmem:[%s8088_s8 + $0x10] sm:$0xff] (%p227_p12), %v6156_v45  ;;  %6189 = vst [vmem:[%s8088_s8 + $0x18] sm:$0xff] (%p227_p12), %v6157_v20 }
 0x2a8   : >> { %v7210_v62 = vpop.f32.mrb[20].mxu1 }
 0x2a9   : >> { %v7380_v44 = vpop.f32.mrb[20].mxu0  ;;  %v3437_v32 = vpop.f32.mrb[21].mxu1 }
 0x2aa   : >> { %v7412_v27 = vadd.f32 %v7380_v44, %v7210_v62  ;;  %v5979_v34 = vpop.f32.mrb[21].mxu0  ;;  %v7211_v7 = vpop.f32.mrb[22].mxu1  ;;  %v6158_v62 = vld [vmem:[#allocation2 + $0x20] sm:$0xff] (%p227_p12)  ;;  %v6159_v44 = vld [vmem:[#allocation2 + $0x28] sm:$0xff] (%p227_p12) }
 0x2ab   : >> { %v7413_v38 = vadd.f32 %v5979_v34, %v3437_v32  ;;  %v7381_v3 = vpop.f32.mrb[22].mxu0  ;;  %v3440_v13 = vpop.f32.mrb[23].mxu1  ;;  %6190 = vst [vmem:[%s8088_s8 + $0x20] sm:$0xff] (%p227_p12), %v6158_v62  ;;  %6191 = vst [vmem:[%s8088_s8 + $0x28] sm:$0xff] (%p227_p12), %v6159_v44  ;;  %v6161_v32 = vld [vmem:[#allocation2 + $0x38] sm:$0xff] (%p227_p12)  ;;  %v6163_v34 = vld [vmem:[#allocation2 + $0x48] sm:$0xff] (%p227_p12) }
 0x2ac   : >> { %v6112_v10 = vadd.f32 %v7412_v27, %v6080_v37  ;;  %v7414_v48 = vadd.f32 %v7381_v3, %v7211_v7  ;;  %v5982_v46 = vpop.f32.mrb[23].mxu0  ;;  %v6160_v37 = vld [vmem:[#allocation2 + $0x30] sm:$0xff] (%p227_p12)  ;;  %v6162_v27 = vld [vmem:[#allocation2 + $0x40] sm:$0xff] (%p227_p12)  ;;  %6193 = vst [vmem:[%s8088_s8 + $0x38] sm:$0xff] (%p227_p12), %v6161_v32  ;;  %v6165_v7 = vld [vmem:[#allocation2 + $0x58] sm:$0xff] (%p227_p12) }
 0x2ad   : >> { %v6110_v55 = vadd.f32 %v7413_v38, %v6078_v21  ;;  %v7415_v1 = vadd.f32 %v5982_v46, %v3440_v13  ;;  %6192 = vst [vmem:[%s8088_s8 + $0x30] sm:$0xff] (%p227_p12), %v6160_v37  ;;  %6194 = vst [vmem:[%s8088_s8 + $0x40] sm:$0xff] (%p227_p12), %v6162_v27  ;;  %v6164_v21 = vld [vmem:[#allocation2 + $0x50] sm:$0xff] (%p227_p12)  ;;  %v6166_v38 = vld [vmem:[#allocation2 + $0x60] sm:$0xff] (%p227_p12) }
 0x2ae   : >> { %6144 = vst [vmem:[#allocation2 + $0xb0] sm:$0xff] %v6112_v10  ;;  %v6113_v61 = vadd.f32 %v7414_v48, %v6081_v11  ;;  %6195 = vst [vmem:[%s8088_s8 + $0x48] sm:$0xff] (%p227_p12), %v6163_v34  ;;  %v6167_v3 = vld [vmem:[#allocation2 + $0x68] sm:$0xff] (%p227_p12)  ;;  %v6168_v11 = vld [vmem:[#allocation2 + $0x70] sm:$0xff] (%p227_p12) }
 0x2af   : >> { %6142 = vst [vmem:[#allocation2 + $0xa0] sm:$0xff] %v6110_v55  ;;  %v6111_v53 = vadd.f32 %v7415_v1, %v6079_v40  ;;  %6196 = vst [vmem:[%s8088_s8 + $0x50] sm:$0xff] (%p227_p12), %v6164_v21  ;;  %v6169_v13 = vld [vmem:[#allocation2 + $0x78] sm:$0xff] (%p227_p12)  ;;  %v6170_v10 = vld [vmem:[#allocation2 + $0x80] sm:$0xff] (%p227_p12) }
 0x2b0   : >> { %6145 = vst [vmem:[#allocation2 + $0xb8] sm:$0xff] %v6113_v61  ;;  %6197 = vst [vmem:[%s8088_s8 + $0x58] sm:$0xff] (%p227_p12), %v6165_v7  ;;  %v6171_v48 = vld [vmem:[#allocation2 + $0x88] sm:$0xff] (%p227_p12)  ;;  %v6172_v46 = vld [vmem:[#allocation2 + $0x90] sm:$0xff] (%p227_p12) }
 0x2b1   : >> { %6143 = vst [vmem:[#allocation2 + $0xa8] sm:$0xff] %v6111_v53  ;;  %6198 = vst [vmem:[%s8088_s8 + $0x60] sm:$0xff] (%p227_p12), %v6166_v38  ;;  %v6173_v40 = vld [vmem:[#allocation2 + $0x98] sm:$0xff] (%p227_p12) }
 0x2b2   : > { %6199 = vst [vmem:[%s8088_s8 + $0x68] sm:$0xff] (%p227_p12), %v6167_v3  ;;  %6200 = vst [vmem:[%s8088_s8 + $0x70] sm:$0xff] (%p227_p12), %v6168_v11 }
 0x2b3   : > { %6201 = vst [vmem:[%s8088_s8 + $0x78] sm:$0xff] (%p227_p12), %v6169_v13  ;;  %6202 = vst [vmem:[%s8088_s8 + $0x80] sm:$0xff] (%p227_p12), %v6170_v10 }
 0x2b4   : > { %6203 = vst [vmem:[%s8088_s8 + $0x88] sm:$0xff] (%p227_p12), %v6171_v48  ;;  %6204 = vst [vmem:[%s8088_s8 + $0x90] sm:$0xff] (%p227_p12), %v6172_v46 }
 0x2b5   : >> { %v7214_v58 = vpop.f32.mrb[24].mxu1  ;;  %v7384_v47 = vpop.f32.mrb[24].mxu0  ;;  %6205 = vst [vmem:[%s8088_s8 + $0x98] sm:$0xff] (%p227_p12), %v6173_v40  ;;  %v6176_v61 = vld [vmem:[#allocation2 + $0xb0] sm:$0xff] (%p227_p12) }
 0x2b6   : >> { %v7416_v50 = vadd.f32 %v7384_v47, %v7214_v58  ;;  %v3453_v26 = vpop.f32.mrb[25].mxu1  ;;  %v5995_v22 = vpop.f32.mrb[25].mxu0  ;;  %v6174_v55 = vld [vmem:[#allocation2 + $0xa0] sm:$0xff] (%p227_p12)  ;;  %6208 = vst [vmem:[%s8088_s8 + $0xb0] sm:$0xff] (%p227_p12), %v6176_v61 }
 0x2b7   : >> { %v7417_v39 = vadd.f32 %v5995_v22, %v3453_v26  ;;  %v7215_v43 = vpop.f32.mrb[26].mxu1  ;;  %v7385_v41 = vpop.f32.mrb[26].mxu0  ;;  %6206 = vst [vmem:[%s8088_s8 + $0xa0] sm:$0xff] (%p227_p12), %v6174_v55  ;;  %v6177_v53 = vld [vmem:[#allocation2 + $0xb8] sm:$0xff] (%p227_p12) }
 0x2b8   : >> { %v6116_v18 = vadd.f32 %v7416_v50, %v6084_v42  ;;  %v7418_v8 = vadd.f32 %v7385_v41, %v7215_v43  ;;  %v3456_v52 = vpop.f32.mrb[27].mxu1  ;;  %v5998_v36 = vpop.f32.mrb[27].mxu0  ;;  %v6175_v1 = vld [vmem:[#allocation2 + $0xa8] sm:$0xff] (%p227_p12)  ;;  %6209 = vst [vmem:[%s8088_s8 + $0xb8] sm:$0xff] (%p227_p12), %v6177_v53 }
 0x2b9   : >> { %v6114_v12 = vadd.f32 %v7417_v39, %v6082_v9  ;;  %v7419_v35 = vadd.f32 %v5998_v36, %v3456_v52  ;;  %6207 = vst [vmem:[%s8088_s8 + $0xa8] sm:$0xff] (%p227_p12), %v6175_v1 }
 0x2ba   : >> { %6148 = vst [vmem:[#allocation2 + $0xd0] sm:$0xff] %v6116_v18  ;;  %v6117_v17 = vadd.f32 %v7418_v8, %v6085_v57 }
 0x2bb   : >> { %6146 = vst [vmem:[#allocation2 + $0xc0] sm:$0xff] %v6114_v12  ;;  %v6115_v25 = vadd.f32 %v7419_v35, %v6083_v4 }
 0x2bc   : >> { %6149 = vst [vmem:[#allocation2 + $0xd8] sm:$0xff] %v6117_v17 }
 0x2bd   : >> { %6147 = vst [vmem:[#allocation2 + $0xc8] sm:$0xff] %v6115_v25 }
 0x2c1   : >> { %v7388_v24 = vpop.f32.mrb[28].mxu0  ;;  %v7218_v15 = vpop.f32.mrb[28].mxu1  ;;  %v6180_v42 = vld [vmem:[#allocation2 + $0xd0] sm:$0xff] (%p227_p12) }
 0x2c2   : >> { %v6011_v28 = vpop.f32.mrb[29].mxu0  ;;  %v7420_v19 = vadd.f32 %v7388_v24, %v7218_v15  ;;  %v3469_v49 = vpop.f32.mrb[29].mxu1  ;;  %v6178_v58 = vld [vmem:[#allocation2 + $0xc0] sm:$0xff] (%p227_p12)  ;;  %6212 = vst [vmem:[%s8088_s8 + $0xd0] sm:$0xff] (%p227_p12), %v6180_v42 }
 0x2c3   : >> { %v7389_v60 = vpop.f32.mrb[30].mxu0  ;;  %v7421_v59 = vadd.f32 %v6011_v28, %v3469_v49  ;;  %v7219_v16 = vpop.f32.mrb[30].mxu1  ;;  %229 = sbr.rel (!%p227_p12) target bundleno = 31 (0x1f), region = 86  ;;  %6210 = vst [vmem:[%s8088_s8 + $0xc0] sm:$0xff] (%p227_p12), %v6178_v58  ;;  %v6181_v50 = vld [vmem:[#allocation2 + $0xd8] sm:$0xff] (%p227_p12) }
 0x2c4   : >> { %v6014_v54 = vpop.f32.mrb[31].mxu0  ;;  %v6120_v56 = vadd.f32 %v7420_v19, %v6088_v23  ;;  %v7422_v5 = vadd.f32 %v7389_v60, %v7219_v16  ;;  %v3472_v0 = vpop.f32.mrb[31].mxu1  ;;  %v6179_v47 = vld [vmem:[#allocation2 + $0xc8] sm:$0xff] (%p227_p12)  ;;  %6213 = vst [vmem:[%s8088_s8 + $0xd8] sm:$0xff] (%p227_p12), %v6181_v50 }
 0x2c5   : >> { %v6118_v30 = vadd.f32 %v7421_v59, %v6086_v33  ;;  %v7423_v31 = vadd.f32 %v6014_v54, %v3472_v0  ;;  %6211 = vst [vmem:[%s8088_s8 + $0xc8] sm:$0xff] (%p227_p12), %v6179_v47 }
 0x2c6   : >> { %6152 = vst [vmem:[#allocation2 + $0xf0] sm:$0xff] %v6120_v56  ;;  %v6121_v6 = vadd.f32 %v7422_v5, %v6089_v63 }
 0x2c7   : >> { %6150 = vst [vmem:[#allocation2 + $0xe0] sm:$0xff] %v6118_v30  ;;  %v6119_v29 = vadd.f32 %v7423_v31, %v6087_v2 }
 0x2c8   : >> { %6153 = vst [vmem:[#allocation2 + $0xf8] sm:$0xff] %v6121_v6 }
 0x2c9   : >> { %6151 = vst [vmem:[#allocation2 + $0xe8] sm:$0xff] %v6119_v29 }
 0x2cd   : > { %v6184_v9 = vld [vmem:[#allocation2 + $0xf0] sm:$0xff] }
 0x2ce   : > { %v6182_v26 = vld [vmem:[#allocation2 + $0xe0] sm:$0xff]  ;;  %6216 = vst [vmem:[%s8088_s8 + $0xf0] sm:$0xff] %v6184_v9 }
 0x2cf   : > { %6214 = vst [vmem:[%s8088_s8 + $0xe0] sm:$0xff] %v6182_v26  ;;  %v6185_v39 = vld [vmem:[#allocation2 + $0xf8] sm:$0xff] }
 0x2d0   : > { %v6183_v22 = vld [vmem:[#allocation2 + $0xe8] sm:$0xff]  ;;  %6217 = vst [vmem:[%s8088_s8 + $0xf8] sm:$0xff] %v6185_v39 }
 0x2d1   : > { %6215 = vst [vmem:[%s8088_s8 + $0xe8] sm:$0xff] %v6183_v22 }
 0x2d2   : > { %7917 = shalt.err (!%p7914_p6)
}
 0x2d3   : > { %s7918_s26 = scalar_lea.hbm %s10541_s30, 4096  ;;  %s7922_s11 = scalar_lea.hbm %s10604_s3, 8192 }
 0x2d4   : > { %p7919_p7 = scmp.ne.s32.totalorder %s10541_s30, %s7918_s26  ;;  %p7923_p11 = scmp.lt.u32.totalorder %s10541_s30, %s10604_s3 }
 0x2d5   : > { %p7924_p12 = scmp.lt.u32.totalorder %s7922_s11, %s7918_s26  ;;  %p7926_p0 = scmp.lt.u32.totalorder %s7918_s26, %s10541_s30 }
 0x2d6   : > { %p7920_p9 = pnand %p7919_p7, %p8055_p4 }
 0x2d7   : > { %p7925_p13 = por %p7924_p12, %p7923_p11 }
 0x2d8   : > { %p7921_p10 = pneg %p7920_p9 }
 0x2d9   : > { %p7927_p1 = por %p7926_p0, %p7925_p13 }
 0x2db   : > { %p7928_p2 = pnand %p7927_p1, %p7921_p10 }
 0x2dd   : > { %7931 = shalt.err (!%p7928_p2)
}
 0x2de   : > { %s7993_s21 = smov 128   ;;  %s7994_s23 = smov 8  }
 0x2df   : > { %7725 = dma.vmem_to_hbm [thread:$0]  (%p8055_p4), %s10543_s28, 4096, %s10541_s30, %s10555_s4, %s7993_s21, %s7993_s21, %s7994_s23  }
 0x2e0 PF: > { %p7731_p3 = scmp.ge.s32.totalorder %s7986_s17, 2  ;;  %s6249_s27 = sand.u32 1, %s7966_s12  }
 0x2e1   : > { %s6250_s15 = scalar_lea.sflag [#allocation4], %s6249_s27 }
 0x2e2   : > { %p7728_p5 = pnand %p7731_p3, %p8062_p8 }
 0x2e4   : > { %7961 = dma.done.wait (!%p7728_p5), %s6250_s15, 4096  }
 0x2e5   : > { %7963 = vsyncadd (!%p7728_p5), %s6250_s15, 4294963200  ;;  %s16_s17 = sadd.s32 1, %s7986_s17   ;;  %s10969_s12 = smov %s7970_s13 }
 0x2e6   : > { %p13_p6 = scmp.ge.s32.totalorder %s16_s17, 4   ;;  %s10970_s13 = smov %s7974_s14 }
 0x2e7   : > { %s10971_s14 = smov %s8068_s25  ;;  %s10972_s15 = smov %s7982_s16 }
 0x2e8   : > { %s10973_s16 = smov %s10975_s20  ;;  %15 = sbr.rel (!%p13_p6) target bundleno = 4 (0x4), region = 97 }
 0x2ef   :  { %6255 = vsyncpa [#allocation4], 1 }
 0x2f0   :  { %6257 = vsyncpa [#allocation4 + $0x1], 1 }

</bundles_post_ra>
